<compile_context>
chip_gen: v5e
topology: v5e:2x2
jax: 0.10.0
libtpu: 0.0.40
codegen_flags: <defaults>
</compile_context>

<pallas_src>
import math
import functools

import jax
import jax.numpy as jnp
from jax import lax
from jax.experimental import pallas as pl
from jax.experimental.pallas import tpu as pltpu

_EPS = 1e-6
_BIG = 1e30  # folded into padded squared norms so exp() underflows to 0


def _rpm_kernel(src_e_ref, tgt_e_ref, s_sq_ref, t_sq_ref, src_ref, tgt_aug_ref,
                scores_ref, packed_ref, *, alpha, beta, num_iters, num_dims):
    # Per grid step: a block of TB batch elements (padded N, M).
    src_e = src_e_ref[...]                               # (TB, N, D) native dtype
    tgt_e = tgt_e_ref[...]                               # (TB, D, M) native dtype
    s_sq = s_sq_ref[...]                                 # (TB, N, 1) f32 (+BIG on padded rows)
    t_sq = t_sq_ref[...]                                 # (TB, 1, M) f32 (+BIG on padded cols)
    src = src_ref[...].astype(jnp.float32)               # (TB, N, 3)
    tgt_aug = tgt_aug_ref[...].astype(jnp.float32)       # (TB, M, 4) = [tgt^T | 1]

    # ---- pairwise squared feature distance, (TB, N, M) -------------------
    inner = lax.dot_general(
        src_e, tgt_e,
        dimension_numbers=(((2,), (1,)), ((0,), (0,))),
        preferred_element_type=jnp.float32)               # (TB, N, M)
    feat_dist = (s_sq + t_sq - 2.0 * inner) * (1.0 / math.sqrt(num_dims))

    # scores = beta * (alpha - feat_distance)   (learned_alpha/beta = None path)
    # Padded rows/cols get ~-beta*BIG/sqrt(D): exp underflows to exactly 0,
    # so they never perturb any normalization or reduction below.
    log_a0 = beta * (alpha - feat_dist)                   # (TB, N, M)
    tb, n, m = log_a0.shape

    # ---- slack Sinkhorn (log domain): row pass then column pass ----------
    # Padded (N+1, M+1) matrix: main block + slack column c (N,1) + slack row
    # r (1,M); the corner never participates in any normalization.
    c0 = jnp.zeros((tb, n, 1), jnp.float32)
    r0 = jnp.zeros((tb, 1, m), jnp.float32)
    # Hoisted ones vectors: the per-iteration sum-reductions run on the MXU
    # (idle during Sinkhorn) instead of the XLU; max-reductions stay on XLU.
    ones_m = jnp.ones((tb, m, 1), jnp.float32)
    ones_n = jnp.ones((tb, 1, n), jnp.float32)

    def sinkhorn_iter(_, carry):
        log_a, c, r = carry
        # Row normalization over the M real columns + slack column.
        row_max = jnp.maximum(jnp.max(log_a, axis=2, keepdims=True), c)
        e_row = jnp.exp(log_a - row_max)                  # (TB, N, M)
        sum_r = lax.dot_general(
            e_row, ones_m,
            dimension_numbers=(((2,), (1,)), ((0,), (0,))),
            preferred_element_type=jnp.float32)           # (TB, N, 1)
        lse_r = row_max + jnp.log(sum_r + jnp.exp(c - row_max))
        log_a = log_a - lse_r
        c = c - lse_r
        # Column normalization over the N real rows + slack row.
        # exp computed directly from the row-normalized log_a (no rescaling of
        # e_row) -> no 0*inf / underflow hazard, one fewer live (N,M) buffer.
        col_max = jnp.maximum(jnp.max(log_a, axis=1, keepdims=True), r)
        e_col = jnp.exp(log_a - col_max)                  # (TB, N, M)
        sum_c = lax.dot_general(
            ones_n, e_col,
            dimension_numbers=(((2,), (1,)), ((0,), (0,))),
            preferred_element_type=jnp.float32)           # (TB, 1, M)
        lse_c = col_max + jnp.log(sum_c + jnp.exp(r - col_max))
        log_a = log_a - lse_c
        r = r - lse_c
        return log_a, c, r

    log_a, _, _ = lax.fori_loop(0, num_iters, sinkhorn_iter, (log_a0, c0, r0),
                                unroll=True)

    # scores = exp(padded_scores[:-1, :-1]); M padded to 128-multiple -> the
    # store is lane-dense (unmasked vst).
    p = jnp.exp(log_a)                                    # (TB, N, M)
    scores_ref[...] = p

    # ---- soft correspondences & weighted cross-covariance ----------------
    # One matmul produces [src_corr numerator | row_sum]: (TB, N, 4)
    corr_rs = lax.dot_general(
        p, tgt_aug,
        dimension_numbers=(((2,), (1,)), ((0,), (0,))),
        preferred_element_type=jnp.float32)
    row_sum = corr_rs[:, :, 3:4]                          # (TB, N, 1)
    src_corr = corr_rs[:, :, 0:3] / (row_sum + _EPS)      # (TB, N, 3)

    conf = row_sum / (jnp.sum(row_sum, axis=1, keepdims=True) + _EPS)   # (TB,N,1)

    cent_src = jnp.sum(src * conf, axis=1, keepdims=True)               # (TB,1,3)
    cent_src_corr = jnp.sum(src_corr * conf, axis=1, keepdims=True)     # (TB,1,3)

    src_c = src - cent_src
    src_corr_c = src_corr - cent_src_corr
    # H[c,d] = sum_n (src_c*conf)[n,c] * src_corr_c[n,d]  -> (TB, 3, 3)
    h = lax.dot_general(
        src_c * conf, src_corr_c,
        dimension_numbers=(((1,), (1,)), ((0,), (0,))),
        preferred_element_type=jnp.float32)

    # Pack the three tiny results into a single output block (one DMA).
    packed_ref[:, 0:3, :] = h
    packed_ref[:, 3:4, :] = cent_src
    packed_ref[:, 4:5, :] = cent_src_corr


def _pad_axis(x, axis, target, value=0.0):
    pad = target - x.shape[axis]
    if pad <= 0:
        return x
    widths = [(0, 0)] * x.ndim
    widths[axis] = (0, pad)
    return jnp.pad(x, widths, constant_values=value)


def robust_rpm_svd_head(src_embedding, tgt_embedding, src, tgt,
                        alpha=0.2, beta=1.0, num_iters=5):
    """Non-weighted-Procrustes path of Robust_RPM_SVDHead.forward."""
    B, D, N = src_embedding.shape
    M = tgt_embedding.shape[2]

    # ---- lane / sublane padding (N -> 8k, M -> 128k) ----------------------
    Np = -(-N // 8) * 8
    Mp = -(-M // 128) * 128

    emb_bytes = int(jnp.dtype(src_embedding.dtype).itemsize)

    # ---- generation-dependent VMEM sizing ---------------------------------
    try:
        info = pltpu.get_tpu_info()
        vmem_phys = int(getattr(info, "vmem_capacity_bytes", 64 * 1024 * 1024))
    except Exception:
        vmem_phys = 64 * 1024 * 1024  # conservative fallback (v7x-like)

    if vmem_phys >= 100 * 1024 * 1024:          # v5e / v6e: 128 MiB physical
        vmem_limit = 100 * 1024 * 1024
        small_vmem_two_core = False
    else:                                        # v7x-class: 64 MiB / TC, 2 TCs
        vmem_limit = min(48 * 1024 * 1024, int(vmem_phys * 3 // 4))
        small_vmem_two_core = True
    budget = int(vmem_limit * 3 // 4)            # headroom for compiler scratch

    # Per-batch working set: double-buffered inputs + double-buffered scores
    # output + ~3x N*M f32 Sinkhorn live temporaries.
    per_batch = (
        2 * (Np * D + D * Mp) * emb_bytes        # dbuf embedding inputs
        + 2 * (Np + Mp) * 4                      # dbuf squared-norm inputs
        + 2 * (3 * Np + 4 * Mp) * 4              # dbuf point inputs
        + 2 * Np * Mp * 4                        # dbuf scores output
        + 3 * Np * Mp * 4                        # Sinkhorn live temporaries
        + 2 * 5 * 3 * 4                          # dbuf packed output
    )
    tb = max(1, min(B, budget // max(1, per_batch)))
    if small_vmem_two_core and B >= 2:
        # Keep >= 2 grid steps so the "parallel" axis shards across both TCs.
        tb = min(tb, max(1, -(-B // 2)))
    n_blocks = -(-B // tb)
    b_pad = n_blocks * tb

    # ---- pre-orient / pad operands in the wrapper --------------------------
    src_e_t = jnp.swapaxes(src_embedding, 1, 2)                       # (B, N, D)
    tgt_e = tgt_embedding                                             # (B, D, M)
    # Hoisted squared norms (kernel no longer needs f32 embedding copies).
    s_sq = jnp.sum(jnp.square(src_e_t.astype(jnp.float32)),
                   axis=2, keepdims=True)                             # (B, N, 1)
    t_sq = jnp.sum(jnp.square(tgt_e.astype(jnp.float32)),
                   axis=1, keepdims=True)                             # (B, 1, M)
    src_t = jnp.swapaxes(src, 1, 2).astype(jnp.float32)               # (B, N, 3)
    tgt_aug = jnp.concatenate(
        [jnp.swapaxes(tgt, 1, 2).astype(jnp.float32),
         jnp.ones((B, M, 1), jnp.float32)], axis=2)                   # (B, M, 4)

    # Pad N / M; padded rows/cols are killed via +BIG in the squared norms.
    src_e_t = _pad_axis(src_e_t, 1, Np)
    tgt_e = _pad_axis(tgt_e, 2, Mp)
    s_sq = _pad_axis(s_sq, 1, Np, value=_BIG)
    t_sq = _pad_axis(t_sq, 2, Mp, value=_BIG)
    src_t = _pad_axis(src_t, 1, Np)
    tgt_aug = _pad_axis(tgt_aug, 1, Mp)

    # Pad batch to a multiple of tb.
    if b_pad != B:
        src_e_t, tgt_e, s_sq, t_sq, src_t, tgt_aug = (
            _pad_axis(x, 0, b_pad)
            for x in (src_e_t, tgt_e, s_sq, t_sq, src_t, tgt_aug))

    kernel = functools.partial(_rpm_kernel, alpha=alpha, beta=beta,
                               num_iters=num_iters, num_dims=D)

    flops = (2 * b_pad * Np * Mp * D                  # feature inner product
             + 4 * num_iters * b_pad * Np * Mp        # MXU sum-reductions
             + 2 * b_pad * Np * Mp * 4                # scores @ [tgt | 1]
             + 2 * b_pad * Np * 9)                    # H
    transcendentals = b_pad * Np * Mp * (2 * num_iters + 1)
    bytes_accessed = (emb_bytes * b_pad * (Np * D + D * Mp)
                      + 4 * b_pad * (Np + Mp + 3 * Np + 4 * Mp + Np * Mp + 15))

    scores, packed = pl.pallas_call(
        kernel,
        out_shape=(
            jax.ShapeDtypeStruct((b_pad, Np, Mp), jnp.float32),   # exp'd scores
            jax.ShapeDtypeStruct((b_pad, 5, 3), jnp.float32),     # [H; cent_src; cent_src_corr]
        ),
        grid=(n_blocks,),
        in_specs=[
            pl.BlockSpec((tb, Np, D), lambda b: (b, 0, 0)),
            pl.BlockSpec((tb, D, Mp), lambda b: (b, 0, 0)),
            pl.BlockSpec((tb, Np, 1), lambda b: (b, 0, 0)),
            pl.BlockSpec((tb, 1, Mp), lambda b: (b, 0, 0)),
            pl.BlockSpec((tb, Np, 3), lambda b: (b, 0, 0)),
            pl.BlockSpec((tb, Mp, 4), lambda b: (b, 0, 0)),
        ],
        out_specs=(
            pl.BlockSpec((tb, Np, Mp), lambda b: (b, 0, 0)),
            pl.BlockSpec((tb, 5, 3), lambda b: (b, 0, 0)),
        ),
        compiler_params=pltpu.CompilerParams(
            dimension_semantics=("parallel",),
            vmem_limit_bytes=vmem_limit),
        cost_estimate=pl.CostEstimate(
            flops=flops, transcendentals=transcendentals,
            bytes_accessed=bytes_accessed),
    )(src_e_t, tgt_e, s_sq, t_sq, src_t, tgt_aug)

    scores = scores[:B, :N, :M]
    packed = packed[:B]
    H = packed[:, 0:3, :]
    cent_src = jnp.swapaxes(packed[:, 3:4, :], 1, 2)        # (B, 3, 1)
    cent_src_corr = jnp.swapaxes(packed[:, 4:5, :], 1, 2)   # (B, 3, 1)

    # TODO(synk): 3x3 batched SVD / det (Kabsch solve) has no Pallas/TPU kernel
    # primitive; this closure is plain-JAX glue matching torch.svd semantics.
    U, S, Vh = jnp.linalg.svd(H, full_matrices=True)
    V = jnp.swapaxes(Vh, 1, 2)                 # torch.svd returns V with A = U S V^T
    Ut = jnp.swapaxes(U, 1, 2)
    R_pos = V @ Ut
    V_neg = V.at[:, :, 2].multiply(-1.0)
    R_neg = V_neg @ Ut
    det_pos = jnp.linalg.det(R_pos)
    R = jnp.where(det_pos[:, None, None] > 0, R_pos, R_neg)

    t = -jnp.matmul(R, cent_src) + cent_src_corr            # (B, 3, 1)
    bot_row = jnp.broadcast_to(
        jnp.array([[[0.0, 0.0, 0.0, 1.0]]], dtype=jnp.float32), (B, 1, 4))
    T = jnp.concatenate([jnp.concatenate([R, t], axis=2), bot_row], axis=1)
    return T, scores


if __name__ == "__main__":
    B, D, N, M = 2, 32, 16, 16
    key = jax.random.PRNGKey(0)
    k1, k2, k3, k4 = jax.random.split(key, 4)
    src_embedding = jax.random.normal(k1, (B, D, N), dtype=jnp.float32)
    tgt_embedding = jax.random.normal(k2, (B, D, M), dtype=jnp.float32)
    src = jax.random.normal(k3, (B, 3, N), dtype=jnp.float32)
    tgt = jax.random.normal(k4, (B, 3, M), dtype=jnp.float32)

    T, scores = jax.jit(robust_rpm_svd_head)(src_embedding, tgt_embedding, src, tgt)
    jax.block_until_ready((T, scores))

    assert T.shape == (B, 4, 4) and scores.shape == (B, N, M)
    assert bool(jnp.all(jnp.isfinite(T))) and bool(jnp.all(jnp.isfinite(scores)))
    assert bool(jnp.all(jnp.linalg.det(T[:, :3, :3]) > 0))
    print("KERNEL_OK")
</pallas_src>

<mosaic_0001>
module attributes {stable_mosaic.version = 11 : i64} {
  func.func @_rpm_kernel(%arg0: i32, %arg1: memref<1x16x32xf32, #tpu.memory_space<vmem>>, %arg2: memref<1x32x128xf32, #tpu.memory_space<vmem>>, %arg3: memref<1x16x1xf32, #tpu.memory_space<vmem>>, %arg4: memref<1x1x128xf32, #tpu.memory_space<vmem>>, %arg5: memref<1x16x3xf32, #tpu.memory_space<vmem>>, %arg6: memref<1x128x4xf32, #tpu.memory_space<vmem>>, %arg7: memref<1x16x128xf32, #tpu.memory_space<vmem>>, %arg8: memref<1x5x3xf32, #tpu.memory_space<vmem>>) attributes {dimension_semantics = [#tpu.dimension_semantics<parallel>], iteration_bounds = array<i64: 2>, scalar_prefetch = 0 : i64, scratch_operands = 0 : i64, tpu.core_type = #tpu.core_type<tc>, window_params = [{transform_indices = @transform_0, window_bounds = array<i64: 1, 16, 32>}, {transform_indices = @transform_1, window_bounds = array<i64: 1, 32, 128>}, {transform_indices = @transform_2, window_bounds = array<i64: 1, 16, 1>}, {transform_indices = @transform_3, window_bounds = array<i64: 1, 1, 128>}, {transform_indices = @transform_4, window_bounds = array<i64: 1, 16, 3>}, {transform_indices = @transform_5, window_bounds = array<i64: 1, 128, 4>}, {transform_indices = @transform_6, window_bounds = array<i64: 1, 16, 128>}, {transform_indices = @transform_7, window_bounds = array<i64: 1, 5, 3>}]} {
    %c0 = arith.constant 0 : index
    %c0_0 = arith.constant 0 : index
    %c0_1 = arith.constant 0 : index
    %0 = vector.load %arg1[%c0, %c0_0, %c0_1] : memref<1x16x32xf32, #tpu.memory_space<vmem>>, vector<1x16x32xf32>
    %c0_2 = arith.constant 0 : index
    %c0_3 = arith.constant 0 : index
    %c0_4 = arith.constant 0 : index
    %1 = vector.load %arg2[%c0_2, %c0_3, %c0_4] : memref<1x32x128xf32, #tpu.memory_space<vmem>>, vector<1x32x128xf32>
    %c0_5 = arith.constant 0 : index
    %c0_6 = arith.constant 0 : index
    %c0_7 = arith.constant 0 : index
    %2 = vector.load %arg3[%c0_5, %c0_6, %c0_7] : memref<1x16x1xf32, #tpu.memory_space<vmem>>, vector<1x16x1xf32>
    %c0_8 = arith.constant 0 : index
    %c0_9 = arith.constant 0 : index
    %c0_10 = arith.constant 0 : index
    %3 = vector.load %arg4[%c0_8, %c0_9, %c0_10] : memref<1x1x128xf32, #tpu.memory_space<vmem>>, vector<1x1x128xf32>
    %c0_11 = arith.constant 0 : index
    %c0_12 = arith.constant 0 : index
    %c0_13 = arith.constant 0 : index
    %4 = vector.load %arg5[%c0_11, %c0_12, %c0_13] : memref<1x16x3xf32, #tpu.memory_space<vmem>>, vector<1x16x3xf32>
    %c0_14 = arith.constant 0 : index
    %c0_15 = arith.constant 0 : index
    %c0_16 = arith.constant 0 : index
    %5 = vector.load %arg6[%c0_14, %c0_15, %c0_16] : memref<1x128x4xf32, #tpu.memory_space<vmem>>, vector<1x128x4xf32>
    %cst = arith.constant dense<0.000000e+00> : vector<1x16x128xf32>
    %6 = tpu.matmul %0, %1, %cst {dimension_numbers = #tpu.dot_dimension_numbers<[2], [1], [1], [2], [0, 0, 0, 1, 1, 2], [0], [0]>} : vector<1x16x32xf32>, vector<1x32x128xf32>, vector<1x16x128xf32> -> vector<1x16x128xf32>
    %7 = vector.broadcast %2 : vector<1x16x1xf32> to vector<1x16x128xf32>
    %8 = vector.broadcast %3 : vector<1x1x128xf32> to vector<1x16x128xf32>
    %9 = arith.addf %7, %8 : vector<1x16x128xf32>
    %cst_17 = arith.constant 2.000000e+00 : f32
    %10 = vector.broadcast %cst_17 : f32 to vector<1x16x128xf32>
    %11 = arith.mulf %10, %6 : vector<1x16x128xf32>
    %12 = arith.subf %9, %11 : vector<1x16x128xf32>
    %cst_18 = arith.constant 0.176776692 : f32
    %13 = vector.broadcast %cst_18 : f32 to vector<1x16x128xf32>
    %14 = arith.mulf %12, %13 : vector<1x16x128xf32>
    %cst_19 = arith.constant 2.000000e-01 : f32
    %15 = vector.broadcast %cst_19 : f32 to vector<1x16x128xf32>
    %16 = arith.subf %15, %14 : vector<1x16x128xf32>
    %cst_20 = arith.constant 1.000000e+00 : f32
    %17 = vector.broadcast %cst_20 : f32 to vector<1x16x128xf32>
    %18 = arith.mulf %17, %16 : vector<1x16x128xf32>
    %cst_21 = arith.constant 0.000000e+00 : f32
    %19 = vector.broadcast %cst_21 : f32 to vector<1x16x1xf32>
    %cst_22 = arith.constant 0.000000e+00 : f32
    %20 = vector.broadcast %cst_22 : f32 to vector<1x1x128xf32>
    %cst_23 = arith.constant 1.000000e+00 : f32
    %21 = vector.broadcast %cst_23 : f32 to vector<1x128x1xf32>
    %cst_24 = arith.constant 1.000000e+00 : f32
    %22 = vector.broadcast %cst_24 : f32 to vector<1x1x16xf32>
    %c0_i32 = arith.constant 0 : i32
    %cst_25 = arith.constant dense<0xFF800000> : vector<1x16xf32>
    %23 = vector.multi_reduction <maximumf>, %18, %cst_25 [2] : vector<1x16x128xf32> to vector<1x16xf32>
    %24 = vector.shape_cast %23 : vector<1x16xf32> to vector<1x16x1xf32>
    %25 = arith.maximumf %24, %19 : vector<1x16x1xf32>
    %26 = vector.broadcast %25 : vector<1x16x1xf32> to vector<1x16x128xf32>
    %27 = arith.subf %18, %26 : vector<1x16x128xf32>
    %28 = math.exp %27 : vector<1x16x128xf32>
    %cst_26 = arith.constant dense<0.000000e+00> : vector<1x16x1xf32>
    %29 = tpu.matmul %28, %21, %cst_26 {dimension_numbers = #tpu.dot_dimension_numbers<[2], [1], [1], [2], [0, 0, 0, 1, 1, 2], [0], [0]>} : vector<1x16x128xf32>, vector<1x128x1xf32>, vector<1x16x1xf32> -> vector<1x16x1xf32>
    %30 = arith.subf %19, %25 : vector<1x16x1xf32>
    %31 = math.exp %30 : vector<1x16x1xf32>
    %32 = arith.addf %29, %31 : vector<1x16x1xf32>
    %33 = math.log %32 : vector<1x16x1xf32>
    %34 = arith.addf %25, %33 : vector<1x16x1xf32>
    %35 = vector.broadcast %34 : vector<1x16x1xf32> to vector<1x16x128xf32>
    %36 = arith.subf %18, %35 : vector<1x16x128xf32>
    %37 = arith.subf %19, %34 : vector<1x16x1xf32>
    %cst_27 = arith.constant dense<0xFF800000> : vector<1x128xf32>
    %38 = vector.multi_reduction <maximumf>, %36, %cst_27 [1] : vector<1x16x128xf32> to vector<1x128xf32>
    %39 = vector.shape_cast %38 : vector<1x128xf32> to vector<1x1x128xf32>
    %40 = arith.maximumf %39, %20 : vector<1x1x128xf32>
    %41 = vector.broadcast %40 : vector<1x1x128xf32> to vector<1x16x128xf32>
    %42 = arith.subf %36, %41 : vector<1x16x128xf32>
    %43 = math.exp %42 : vector<1x16x128xf32>
    %cst_28 = arith.constant dense<0.000000e+00> : vector<1x1x128xf32>
    %44 = tpu.matmul %22, %43, %cst_28 {dimension_numbers = #tpu.dot_dimension_numbers<[2], [1], [1], [2], [0, 0, 0, 1, 1, 2], [0], [0]>} : vector<1x1x16xf32>, vector<1x16x128xf32>, vector<1x1x128xf32> -> vector<1x1x128xf32>
    %45 = arith.subf %20, %40 : vector<1x1x128xf32>
    %46 = math.exp %45 : vector<1x1x128xf32>
    %47 = arith.addf %44, %46 : vector<1x1x128xf32>
    %48 = math.log %47 : vector<1x1x128xf32>
    %49 = arith.addf %40, %48 : vector<1x1x128xf32>
    %50 = vector.broadcast %49 : vector<1x1x128xf32> to vector<1x16x128xf32>
    %51 = arith.subf %36, %50 : vector<1x16x128xf32>
    %52 = arith.subf %20, %49 : vector<1x1x128xf32>
    %c1_i32 = arith.constant 1 : i32
    %cst_29 = arith.constant dense<0xFF800000> : vector<1x16xf32>
    %53 = vector.multi_reduction <maximumf>, %51, %cst_29 [2] : vector<1x16x128xf32> to vector<1x16xf32>
    %54 = vector.shape_cast %53 : vector<1x16xf32> to vector<1x16x1xf32>
    %55 = arith.maximumf %54, %37 : vector<1x16x1xf32>
    %56 = vector.broadcast %55 : vector<1x16x1xf32> to vector<1x16x128xf32>
    %57 = arith.subf %51, %56 : vector<1x16x128xf32>
    %58 = math.exp %57 : vector<1x16x128xf32>
    %cst_30 = arith.constant dense<0.000000e+00> : vector<1x16x1xf32>
    %59 = tpu.matmul %58, %21, %cst_30 {dimension_numbers = #tpu.dot_dimension_numbers<[2], [1], [1], [2], [0, 0, 0, 1, 1, 2], [0], [0]>} : vector<1x16x128xf32>, vector<1x128x1xf32>, vector<1x16x1xf32> -> vector<1x16x1xf32>
    %60 = arith.subf %37, %55 : vector<1x16x1xf32>
    %61 = math.exp %60 : vector<1x16x1xf32>
    %62 = arith.addf %59, %61 : vector<1x16x1xf32>
    %63 = math.log %62 : vector<1x16x1xf32>
    %64 = arith.addf %55, %63 : vector<1x16x1xf32>
    %65 = vector.broadcast %64 : vector<1x16x1xf32> to vector<1x16x128xf32>
    %66 = arith.subf %51, %65 : vector<1x16x128xf32>
    %67 = arith.subf %37, %64 : vector<1x16x1xf32>
    %cst_31 = arith.constant dense<0xFF800000> : vector<1x128xf32>
    %68 = vector.multi_reduction <maximumf>, %66, %cst_31 [1] : vector<1x16x128xf32> to vector<1x128xf32>
    %69 = vector.shape_cast %68 : vector<1x128xf32> to vector<1x1x128xf32>
    %70 = arith.maximumf %69, %52 : vector<1x1x128xf32>
    %71 = vector.broadcast %70 : vector<1x1x128xf32> to vector<1x16x128xf32>
    %72 = arith.subf %66, %71 : vector<1x16x128xf32>
    %73 = math.exp %72 : vector<1x16x128xf32>
    %cst_32 = arith.constant dense<0.000000e+00> : vector<1x1x128xf32>
    %74 = tpu.matmul %22, %73, %cst_32 {dimension_numbers = #tpu.dot_dimension_numbers<[2], [1], [1], [2], [0, 0, 0, 1, 1, 2], [0], [0]>} : vector<1x1x16xf32>, vector<1x16x128xf32>, vector<1x1x128xf32> -> vector<1x1x128xf32>
    %75 = arith.subf %52, %70 : vector<1x1x128xf32>
    %76 = math.exp %75 : vector<1x1x128xf32>
    %77 = arith.addf %74, %76 : vector<1x1x128xf32>
    %78 = math.log %77 : vector<1x1x128xf32>
    %79 = arith.addf %70, %78 : vector<1x1x128xf32>
    %80 = vector.broadcast %79 : vector<1x1x128xf32> to vector<1x16x128xf32>
    %81 = arith.subf %66, %80 : vector<1x16x128xf32>
    %82 = arith.subf %52, %79 : vector<1x1x128xf32>
    %c2_i32 = arith.constant 2 : i32
    %cst_33 = arith.constant dense<0xFF800000> : vector<1x16xf32>
    %83 = vector.multi_reduction <maximumf>, %81, %cst_33 [2] : vector<1x16x128xf32> to vector<1x16xf32>
    %84 = vector.shape_cast %83 : vector<1x16xf32> to vector<1x16x1xf32>
    %85 = arith.maximumf %84, %67 : vector<1x16x1xf32>
    %86 = vector.broadcast %85 : vector<1x16x1xf32> to vector<1x16x128xf32>
    %87 = arith.subf %81, %86 : vector<1x16x128xf32>
    %88 = math.exp %87 : vector<1x16x128xf32>
    %cst_34 = arith.constant dense<0.000000e+00> : vector<1x16x1xf32>
    %89 = tpu.matmul %88, %21, %cst_34 {dimension_numbers = #tpu.dot_dimension_numbers<[2], [1], [1], [2], [0, 0, 0, 1, 1, 2], [0], [0]>} : vector<1x16x128xf32>, vector<1x128x1xf32>, vector<1x16x1xf32> -> vector<1x16x1xf32>
    %90 = arith.subf %67, %85 : vector<1x16x1xf32>
    %91 = math.exp %90 : vector<1x16x1xf32>
    %92 = arith.addf %89, %91 : vector<1x16x1xf32>
    %93 = math.log %92 : vector<1x16x1xf32>
    %94 = arith.addf %85, %93 : vector<1x16x1xf32>
    %95 = vector.broadcast %94 : vector<1x16x1xf32> to vector<1x16x128xf32>
    %96 = arith.subf %81, %95 : vector<1x16x128xf32>
    %97 = arith.subf %67, %94 : vector<1x16x1xf32>
    %cst_35 = arith.constant dense<0xFF800000> : vector<1x128xf32>
    %98 = vector.multi_reduction <maximumf>, %96, %cst_35 [1] : vector<1x16x128xf32> to vector<1x128xf32>
    %99 = vector.shape_cast %98 : vector<1x128xf32> to vector<1x1x128xf32>
    %100 = arith.maximumf %99, %82 : vector<1x1x128xf32>
    %101 = vector.broadcast %100 : vector<1x1x128xf32> to vector<1x16x128xf32>
    %102 = arith.subf %96, %101 : vector<1x16x128xf32>
    %103 = math.exp %102 : vector<1x16x128xf32>
    %cst_36 = arith.constant dense<0.000000e+00> : vector<1x1x128xf32>
    %104 = tpu.matmul %22, %103, %cst_36 {dimension_numbers = #tpu.dot_dimension_numbers<[2], [1], [1], [2], [0, 0, 0, 1, 1, 2], [0], [0]>} : vector<1x1x16xf32>, vector<1x16x128xf32>, vector<1x1x128xf32> -> vector<1x1x128xf32>
    %105 = arith.subf %82, %100 : vector<1x1x128xf32>
    %106 = math.exp %105 : vector<1x1x128xf32>
    %107 = arith.addf %104, %106 : vector<1x1x128xf32>
    %108 = math.log %107 : vector<1x1x128xf32>
    %109 = arith.addf %100, %108 : vector<1x1x128xf32>
    %110 = vector.broadcast %109 : vector<1x1x128xf32> to vector<1x16x128xf32>
    %111 = arith.subf %96, %110 : vector<1x16x128xf32>
    %112 = arith.subf %82, %109 : vector<1x1x128xf32>
    %c3_i32 = arith.constant 3 : i32
    %cst_37 = arith.constant dense<0xFF800000> : vector<1x16xf32>
    %113 = vector.multi_reduction <maximumf>, %111, %cst_37 [2] : vector<1x16x128xf32> to vector<1x16xf32>
    %114 = vector.shape_cast %113 : vector<1x16xf32> to vector<1x16x1xf32>
    %115 = arith.maximumf %114, %97 : vector<1x16x1xf32>
    %116 = vector.broadcast %115 : vector<1x16x1xf32> to vector<1x16x128xf32>
    %117 = arith.subf %111, %116 : vector<1x16x128xf32>
    %118 = math.exp %117 : vector<1x16x128xf32>
    %cst_38 = arith.constant dense<0.000000e+00> : vector<1x16x1xf32>
    %119 = tpu.matmul %118, %21, %cst_38 {dimension_numbers = #tpu.dot_dimension_numbers<[2], [1], [1], [2], [0, 0, 0, 1, 1, 2], [0], [0]>} : vector<1x16x128xf32>, vector<1x128x1xf32>, vector<1x16x1xf32> -> vector<1x16x1xf32>
    %120 = arith.subf %97, %115 : vector<1x16x1xf32>
    %121 = math.exp %120 : vector<1x16x1xf32>
    %122 = arith.addf %119, %121 : vector<1x16x1xf32>
    %123 = math.log %122 : vector<1x16x1xf32>
    %124 = arith.addf %115, %123 : vector<1x16x1xf32>
    %125 = vector.broadcast %124 : vector<1x16x1xf32> to vector<1x16x128xf32>
    %126 = arith.subf %111, %125 : vector<1x16x128xf32>
    %127 = arith.subf %97, %124 : vector<1x16x1xf32>
    %cst_39 = arith.constant dense<0xFF800000> : vector<1x128xf32>
    %128 = vector.multi_reduction <maximumf>, %126, %cst_39 [1] : vector<1x16x128xf32> to vector<1x128xf32>
    %129 = vector.shape_cast %128 : vector<1x128xf32> to vector<1x1x128xf32>
    %130 = arith.maximumf %129, %112 : vector<1x1x128xf32>
    %131 = vector.broadcast %130 : vector<1x1x128xf32> to vector<1x16x128xf32>
    %132 = arith.subf %126, %131 : vector<1x16x128xf32>
    %133 = math.exp %132 : vector<1x16x128xf32>
    %cst_40 = arith.constant dense<0.000000e+00> : vector<1x1x128xf32>
    %134 = tpu.matmul %22, %133, %cst_40 {dimension_numbers = #tpu.dot_dimension_numbers<[2], [1], [1], [2], [0, 0, 0, 1, 1, 2], [0], [0]>} : vector<1x1x16xf32>, vector<1x16x128xf32>, vector<1x1x128xf32> -> vector<1x1x128xf32>
    %135 = arith.subf %112, %130 : vector<1x1x128xf32>
    %136 = math.exp %135 : vector<1x1x128xf32>
    %137 = arith.addf %134, %136 : vector<1x1x128xf32>
    %138 = math.log %137 : vector<1x1x128xf32>
    %139 = arith.addf %130, %138 : vector<1x1x128xf32>
    %140 = vector.broadcast %139 : vector<1x1x128xf32> to vector<1x16x128xf32>
    %141 = arith.subf %126, %140 : vector<1x16x128xf32>
    %142 = arith.subf %112, %139 : vector<1x1x128xf32>
    %c4_i32 = arith.constant 4 : i32
    %cst_41 = arith.constant dense<0xFF800000> : vector<1x16xf32>
    %143 = vector.multi_reduction <maximumf>, %141, %cst_41 [2] : vector<1x16x128xf32> to vector<1x16xf32>
    %144 = vector.shape_cast %143 : vector<1x16xf32> to vector<1x16x1xf32>
    %145 = arith.maximumf %144, %127 : vector<1x16x1xf32>
    %146 = vector.broadcast %145 : vector<1x16x1xf32> to vector<1x16x128xf32>
    %147 = arith.subf %141, %146 : vector<1x16x128xf32>
    %148 = math.exp %147 : vector<1x16x128xf32>
    %cst_42 = arith.constant dense<0.000000e+00> : vector<1x16x1xf32>
    %149 = tpu.matmul %148, %21, %cst_42 {dimension_numbers = #tpu.dot_dimension_numbers<[2], [1], [1], [2], [0, 0, 0, 1, 1, 2], [0], [0]>} : vector<1x16x128xf32>, vector<1x128x1xf32>, vector<1x16x1xf32> -> vector<1x16x1xf32>
    %150 = arith.subf %127, %145 : vector<1x16x1xf32>
    %151 = math.exp %150 : vector<1x16x1xf32>
    %152 = arith.addf %149, %151 : vector<1x16x1xf32>
    %153 = math.log %152 : vector<1x16x1xf32>
    %154 = arith.addf %145, %153 : vector<1x16x1xf32>
    %155 = vector.broadcast %154 : vector<1x16x1xf32> to vector<1x16x128xf32>
    %156 = arith.subf %141, %155 : vector<1x16x128xf32>
    %157 = arith.subf %127, %154 : vector<1x16x1xf32>
    %cst_43 = arith.constant dense<0xFF800000> : vector<1x128xf32>
    %158 = vector.multi_reduction <maximumf>, %156, %cst_43 [1] : vector<1x16x128xf32> to vector<1x128xf32>
    %159 = vector.shape_cast %158 : vector<1x128xf32> to vector<1x1x128xf32>
    %160 = arith.maximumf %159, %142 : vector<1x1x128xf32>
    %161 = vector.broadcast %160 : vector<1x1x128xf32> to vector<1x16x128xf32>
    %162 = arith.subf %156, %161 : vector<1x16x128xf32>
    %163 = math.exp %162 : vector<1x16x128xf32>
    %cst_44 = arith.constant dense<0.000000e+00> : vector<1x1x128xf32>
    %164 = tpu.matmul %22, %163, %cst_44 {dimension_numbers = #tpu.dot_dimension_numbers<[2], [1], [1], [2], [0, 0, 0, 1, 1, 2], [0], [0]>} : vector<1x1x16xf32>, vector<1x16x128xf32>, vector<1x1x128xf32> -> vector<1x1x128xf32>
    %165 = arith.subf %142, %160 : vector<1x1x128xf32>
    %166 = math.exp %165 : vector<1x1x128xf32>
    %167 = arith.addf %164, %166 : vector<1x1x128xf32>
    %168 = math.log %167 : vector<1x1x128xf32>
    %169 = arith.addf %160, %168 : vector<1x1x128xf32>
    %170 = vector.broadcast %169 : vector<1x1x128xf32> to vector<1x16x128xf32>
    %171 = arith.subf %156, %170 : vector<1x16x128xf32>
    %172 = arith.subf %142, %169 : vector<1x1x128xf32>
    %173 = math.exp %171 : vector<1x16x128xf32>
    %c0_45 = arith.constant 0 : index
    %c0_46 = arith.constant 0 : index
    %c0_47 = arith.constant 0 : index
    %174 = vector.load %arg7[%c0_45, %c0_46, %c0_47] : memref<1x16x128xf32, #tpu.memory_space<vmem>>, vector<1x16x128xf32>
    tpu.vector_store %arg7[%c0_45, %c0_46, %c0_47], %173 {strides = array<i32>} : memref<1x16x128xf32, #tpu.memory_space<vmem>>, vector<1x16x128xf32>,
    %cst_48 = arith.constant dense<0.000000e+00> : vector<1x16x4xf32>
    %175 = tpu.matmul %173, %5, %cst_48 {dimension_numbers = #tpu.dot_dimension_numbers<[2], [1], [1], [2], [0, 0, 0, 1, 1, 2], [0], [0]>} : vector<1x16x128xf32>, vector<1x128x4xf32>, vector<1x16x4xf32> -> vector<1x16x4xf32>
    %176 = vector.extract_strided_slice %175 {offsets = [0, 0, 3], sizes = [1, 16, 1], strides = [1, 1, 1]} : vector<1x16x4xf32> to vector<1x16x1xf32>
    %177 = vector.extract_strided_slice %175 {offsets = [0, 0, 0], sizes = [1, 16, 3], strides = [1, 1, 1]} : vector<1x16x4xf32> to vector<1x16x3xf32>
    %cst_49 = arith.constant 9.99999997E-7 : f32
    %178 = vector.broadcast %cst_49 : f32 to vector<1x16x1xf32>
    %179 = arith.addf %176, %178 : vector<1x16x1xf32>
    %180 = vector.broadcast %179 : vector<1x16x1xf32> to vector<1x16x3xf32>
    %181 = arith.divf %177, %180 : vector<1x16x3xf32>
    %cst_50 = arith.constant dense<0.000000e+00> : vector<1x1xf32>
    %182 = vector.multi_reduction <add>, %176, %cst_50 [1] : vector<1x16x1xf32> to vector<1x1xf32>
    %183 = vector.shape_cast %182 : vector<1x1xf32> to vector<1x1x1xf32>
    %cst_51 = arith.constant 9.99999997E-7 : f32
    %184 = vector.broadcast %cst_51 : f32 to vector<1x1x1xf32>
    %185 = arith.addf %183, %184 : vector<1x1x1xf32>
    %186 = vector.broadcast %185 : vector<1x1x1xf32> to vector<1x16x1xf32>
    %187 = arith.divf %176, %186 : vector<1x16x1xf32>
    %188 = vector.broadcast %187 : vector<1x16x1xf32> to vector<1x16x3xf32>
    %189 = arith.mulf %4, %188 : vector<1x16x3xf32>
    %cst_52 = arith.constant dense<0.000000e+00> : vector<1x3xf32>
    %190 = vector.multi_reduction <add>, %189, %cst_52 [1] : vector<1x16x3xf32> to vector<1x3xf32>
    %191 = vector.shape_cast %190 : vector<1x3xf32> to vector<1x1x3xf32>
    %192 = vector.broadcast %187 : vector<1x16x1xf32> to vector<1x16x3xf32>
    %193 = arith.mulf %181, %192 : vector<1x16x3xf32>
    %cst_53 = arith.constant dense<0.000000e+00> : vector<1x3xf32>
    %194 = vector.multi_reduction <add>, %193, %cst_53 [1] : vector<1x16x3xf32> to vector<1x3xf32>
    %195 = vector.shape_cast %194 : vector<1x3xf32> to vector<1x1x3xf32>
    %196 = vector.broadcast %191 : vector<1x1x3xf32> to vector<1x16x3xf32>
    %197 = arith.subf %4, %196 : vector<1x16x3xf32>
    %198 = vector.broadcast %195 : vector<1x1x3xf32> to vector<1x16x3xf32>
    %199 = arith.subf %181, %198 : vector<1x16x3xf32>
    %200 = vector.broadcast %187 : vector<1x16x1xf32> to vector<1x16x3xf32>
    %201 = arith.mulf %197, %200 : vector<1x16x3xf32>
    %cst_54 = arith.constant dense<0.000000e+00> : vector<1x3x3xf32>
    %202 = tpu.matmul %201, %199, %cst_54 {dimension_numbers = #tpu.dot_dimension_numbers<[1], [1], [2], [2], [0, 0, 0, 2, 1, 2], [0], [0]>} : vector<1x16x3xf32>, vector<1x16x3xf32>, vector<1x3x3xf32> -> vector<1x3x3xf32>
    %c0_55 = arith.constant 0 : index
    %c0_56 = arith.constant 0 : index
    %c0_57 = arith.constant 0 : index
    %203 = vector.load %arg8[%c0_55, %c0_56, %c0_57] : memref<1x5x3xf32, #tpu.memory_space<vmem>>, vector<1x3x3xf32>
    tpu.vector_store %arg8[%c0_55, %c0_56, %c0_57], %202 {strides = array<i32>} : memref<1x5x3xf32, #tpu.memory_space<vmem>>, vector<1x3x3xf32>,
    %c0_58 = arith.constant 0 : index
    %c3 = arith.constant 3 : index
    %c0_59 = arith.constant 0 : index
    %204 = vector.load %arg8[%c0_58, %c3, %c0_59] : memref<1x5x3xf32, #tpu.memory_space<vmem>>, vector<1x1x3xf32>
    tpu.vector_store %arg8[%c0_58, %c3, %c0_59], %191 {strides = array<i32>} : memref<1x5x3xf32, #tpu.memory_space<vmem>>, vector<1x1x3xf32>,
    %c0_60 = arith.constant 0 : index
    %c4 = arith.constant 4 : index
    %c0_61 = arith.constant 0 : index
    %205 = vector.load %arg8[%c0_60, %c4, %c0_61] : memref<1x5x3xf32, #tpu.memory_space<vmem>>, vector<1x1x3xf32>
    tpu.vector_store %arg8[%c0_60, %c4, %c0_61], %195 {strides = array<i32>} : memref<1x5x3xf32, #tpu.memory_space<vmem>>, vector<1x1x3xf32>,
    return
  }
  func.func @transform_0(%arg0: i32) -> (i32, i32, i32) {
    %c0_i32 = arith.constant 0 : i32
    %c0_i32_0 = arith.constant 0 : i32
    %c0_i32_1 = arith.constant 0 : i32
    return %arg0, %c0_i32, %c0_i32_0 : i32, i32, i32
  }
  func.func @transform_1(%arg0: i32) -> (i32, i32, i32) {
    %c0_i32 = arith.constant 0 : i32
    %c0_i32_0 = arith.constant 0 : i32
    %c0_i32_1 = arith.constant 0 : i32
    return %arg0, %c0_i32, %c0_i32_0 : i32, i32, i32
  }
  func.func @transform_2(%arg0: i32) -> (i32, i32, i32) {
    %c0_i32 = arith.constant 0 : i32
    %c0_i32_0 = arith.constant 0 : i32
    %c0_i32_1 = arith.constant 0 : i32
    return %arg0, %c0_i32, %c0_i32_0 : i32, i32, i32
  }
  func.func @transform_3(%arg0: i32) -> (i32, i32, i32) {
    %c0_i32 = arith.constant 0 : i32
    %c0_i32_0 = arith.constant 0 : i32
    %c0_i32_1 = arith.constant 0 : i32
    return %arg0, %c0_i32, %c0_i32_0 : i32, i32, i32
  }
  func.func @transform_4(%arg0: i32) -> (i32, i32, i32) {
    %c0_i32 = arith.constant 0 : i32
    %c0_i32_0 = arith.constant 0 : i32
    %c0_i32_1 = arith.constant 0 : i32
    return %arg0, %c0_i32, %c0_i32_0 : i32, i32, i32
  }
  func.func @transform_5(%arg0: i32) -> (i32, i32, i32) {
    %c0_i32 = arith.constant 0 : i32
    %c0_i32_0 = arith.constant 0 : i32
    %c0_i32_1 = arith.constant 0 : i32
    return %arg0, %c0_i32, %c0_i32_0 : i32, i32, i32
  }
  func.func @transform_6(%arg0: i32) -> (i32, i32, i32) {
    %c0_i32 = arith.constant 0 : i32
    %c0_i32_0 = arith.constant 0 : i32
    %c0_i32_1 = arith.constant 0 : i32
    return %arg0, %c0_i32, %c0_i32_0 : i32, i32, i32
  }
  func.func @transform_7(%arg0: i32) -> (i32, i32, i32) {
    %c0_i32 = arith.constant 0 : i32
    %c0_i32_0 = arith.constant 0 : i32
    %c0_i32_1 = arith.constant 0 : i32
    return %arg0, %c0_i32, %c0_i32_0 : i32, i32, i32
  }
}

</mosaic_0001>

<bundles_post_ra>
// kernel: custom-call.57
= control target key start
LH: loop header
LB: loop body
LE: loop exit
PB: predicated region body
PF: predicated region fallthrough
CT: control target
= control target key end

     0   :  { %s724_s9 = smov 0   ;;  %s726_s10 = smov 0   ;;  %s903_s0 = inlined_call_operand.vmem [shape: f32[2,6,3], index: 0, kind: input, shape index: {}]   ;;  %s904_s1 = inlined_call_operand.vmem [shape: f32[2,6,3], index: 1, kind: output, shape index: {0}]   ;;  %s905_s2 = inlined_call_operand.vmem [shape: f32[2,3], index: 2, kind: output, shape index: {1}]  }
   0x1   :  { %s728_s11 = smov 0   ;;  %s730_s12 = smov 0  }
   0x2   :  { %s732_s13 = smov 0  }
   0x3 LB: > { %s28_s14 = sadd.s32 1, %s697_s12  ;;  %s579_s15 = sadd.s32 4294967295, %s701_s13   ;;  %s701_s13 = sphi %s732_s13, %s9_s13   ;;  %s697_s12 = sphi %s730_s12, %s914_s12   ;;  %s693_s11 = sphi %s728_s11, %s913_s11   ;;  %s689_s10 = sphi %s726_s10, %s912_s10   ;;  %s685_s9 = sphi %s724_s9, %s911_s9  }
   0x4   : > { %p30_p0 = scmp.ge.s32.totalorder %s28_s14, 2  ;;  %s33_s16 = ssub.s32 0, %s697_s12 }
   0x5   : > { %s581_s17 = smin.u32 %s697_s12, %s33_s16  ;;  %p57_p1 = scmp.ne.s32.totalorder %s689_s10, %s685_s9 }
   0x6   : > { %s916_s14 = smov (%p30_p0, %s28_s14), 0  ;;  %s35_s18 = sshrl.u32 %s581_s17, 3 }
   0x7   : > { %s39_s19 = ssub.s32 0, %s916_s14  ;;  %p58_p2 = scmp.eq.s32.totalorder %s579_s15, 1 }
   0x8   : > { %s582_s20 = smin.u32 %s39_s19, %s916_s14  ;;  %s47_s24 = sadd.s32 1, %s689_s10 }
   0x9   : > { %s41_s21 = sshrl.u32 %s582_s20, 3  ;;  %p759_p3 = por %p58_p2, %p57_p1 }
   0xa   : > { %s44_s23 = ssub.s32 %s35_s18, %s41_s21  ;;  %p584_p5 = scmp.ge.s32.totalorder %s701_s13, 2 }
   0xb   : > { %p45_p4 = scmp.eq.s32.totalorder %s44_s23, 0  ;;  %s82_s26 = sand.u32 (!%p584_p5), 1, %s701_s13  }
   0xc   : > { %80 = sbr.rel (%p584_p5) target bundleno = 19 (0x13), region = 16  ;;  %s586_s27 = sshll.u32 (!%p584_p5), %s697_s12, 3 }
   0xd   : > { %s765_s25 = scalar_select %p45_p4, %s689_s10, %s47_s24  }
   0xe   : > { %s585_s28 = sshll.u32 (!%p584_p5), %s82_s26, 3  ;;  %s88_s3 = scalar_lea.vmem (!%p584_p5), %s903_s0, %s586_s27 }
   0xf   : > { %s84_s4 = scalar_lea.vmem (!%p584_p5), [#allocation0], %s585_s28 }
  0x11   : > { %v117_v0 = vld [vmem:[%s88_s3] sm:$0xff] }
  0x12   : > { %118 = vst [vmem:[%s84_s4] sm:$0xff] %v117_v0 }
  0x13 PF: > { %p587_p6 = scmp.ge.s32.totalorder %s701_s13, 1  ;;  %p123_p7 = scmp.lt.s32.totalorder %s701_s13, 3 }
  0x15   : > { %p124_p8 = pnand %p587_p6, %p123_p7 }
  0x17   : > { %127 = sbr.rel (%p124_p8) target bundleno = 326 (0x146), region = 54 }
  0x1c   : > { %s130_s5 = sand.u32 1, %s579_s15   ;;  %s144_s6 = sand.u32 1, %s685_s9   ;;  %v707_v2 = vmov 0.0  }
  0x1d   : > { %s588_s7 = sshll.u32 %s130_s5, 3  ;;  %s776_s8 = sshll.u32 %s144_s6, 1 }
  0x1e   : > { %s153_s16 = sand.u32 7, %s693_s11   ;;  %s132_s17 = scalar_lea.vmem [#allocation0], %s588_s7 }
  0x1f   : > { %v155_v1 = vld [vmem:[%s132_s17] sm:$0xff]  ;;  %s779_s18 = scalar_lea.vmem [#allocation1], %s588_s7  ;;  %s782_s19 = scalar_lea.vmem [#allocation2], %s153_s16 }
  0x20   : > { %156 = vst [vmem:[%s779_s18] sm:$0xff] %v155_v1  ;;  %s146_s15 = scalar_lea.vmem [#allocation3], %s776_s8  ;;  %s786_s20 = smov 0  }
  0x21   : > { %157 = vst [vmem:[%s782_s19] sm:$0x1] %v707_v2 }
  0x22 LB: >> { %v165_v3 = vlaneseq  ;;  %v795_v5 = vstv %s705_s20  ;;  %s197_s9 = scalar_lea.vmem %s779_s18, %s705_s20 [#allocation1]  ;;  %s325_s21 = scalar_lea.vmem [#allocation4], %s705_s20  ;;  %s705_s20 = sphi %s786_s20, %s163_s20  }
  0x23   : >> { %s342_s23 = smov [#allocation4] }
  0x24   : >> { %v792_v4 = vshrl.u32 %v165_v3, 7 }
  0x26   : >> { %vm169_vm0 = vcmp.gt.s32.totalorder %v792_v4, %v795_v5  ;;  %vm170_vm1 = vcmp.lt.s32.totalorder %v792_v4, 6  ;;  %v293_v4 = vmov %v792_v4 }
  0x27   : >> { %v164_v6 = vld [vmem:[%s779_s18] sm:$0xff]  ;;  %vm171_vm2 = vmand %vm169_vm0, %vm170_vm1  ;;  %v807_v19 = vld [vmem:[%s197_s9] ss:$0 sm:$0xff]  ;;  %vm297_vm13 = vcmp.gt.s32.totalorder %v293_v4, %v795_v5  ;;  %vm298_vm14 = vcmp.lt.s32.totalorder %v293_v4, 6  ;;  %s290_s18 = smov %s779_s18  ;;  %v345_v4 = vmov %v792_v4 }
  0x28   : >> { %v172_v7 = vsel %vm171_vm2, %v164_v6, 0.0  ;;  %v199_v22 = vand.u32 2147483647, %v807_v19  ;;  %vm268_vm12 = vcmp.lt.f32.partialorder %v807_v19, 0.0 }
  0x29   : >> { %v173_v8 = vmul.f32 %v172_v7, %v172_v7 }
  0x2a   : >> { %v200_v26 = vmax.f32 %v199_v22, 0.0 }
  0x2b   : >> { %v174_v9 = vrot.slane %v173_v8, 4 }
  0x2d   : >> { %v175_v10 = vadd.f32 %v174_v9, %v173_v8 }
  0x2f   : >> { %v176_v11 = vrot.slane %v175_v10, 2 }
  0x31   : >> { %v177_v12 = vadd.f32 %v176_v11, %v175_v10 }
  0x33   : >> { %v178_v13 = vrot.slane %v177_v12, 1 }
  0x35   : >> { %v801_v14 = vadd.f32 %v178_v13, %v177_v12 }
  0x37   : >> { %649 = vrsqrt.f32 %v801_v14  ;;  %vm187_vm3 = vcmp.eq.f32.partialorder %v801_v14, inf  ;;  %v190_v23 = vand.u32 2147483648, %v801_v14  ;;  %vm189_vm4 = vcmp.eq.f32.partialorder %v801_v14, 0.0 }
  0x3d   : >> { %v650_v15 = vpop.eup %649 }
  0x3e   : >> { %v181_v16 = vmul.f32 %v650_v15, %v801_v14 }
  0x40   : >> { %v182_v17 = vmul.f32 %v650_v15, %v181_v16 }
  0x42   : >> { %v183_v18 = vmul.f32 0.5, %v182_v17  ;;  %v294_v17 = vld [vmem:[%s290_s18] sm:$0xff]  ;;  %s341_s18 = smov %s779_s18 }
  0x44   : >> { %v184_v20 = vsub.f32 1.5, %v183_v18 }
  0x46   : >> { %v185_v21 = vmul.f32 %v650_v15, %v184_v20 }
  0x48   : >> { %v186_v24 = vmul.f32 %v185_v21, %v801_v14  ;;  %v319_v21 = vand.u32 127, %v165_v3 }
  0x4a   : >> { %v188_v25 = vsel %vm187_vm3, %v801_v14, %v186_v24 }
  0x4b   : >> { %v191_v27 = vsel %vm189_vm4, %v190_v23, %v188_v25 }
  0x4c   : >> { %v201_v28 = vand.u32 2147483647, %v191_v27 }
  0x4e   : >> { %v202_v29 = vmax.f32 %v200_v26, %v201_v28 }
  0x50   : >> { %651 = vrcp.f32 %v202_v29  ;;  %v214_v32 = vand.u32 2147483648, %v202_v29  ;;  %vm208_vm5 = vweird.f32 %v202_v29  ;;  %v212_v34 = vand.u32 2147483647, %v202_v29 }
  0x51   : >> { %vm253_vm11 = vcmp.eq.f32.partialorder %v202_v29, 0.0 }
  0x52   : >> { %v215_v36 = vor.u32 1.1754944e-38, %v214_v32  ;;  %vm213_vm8 = vcmp.eq.f32.partialorder %v212_v34, 8.507059e+37 }
  0x56   : >> { %v652_v30 = vpop.eup %651 }
  0x57   : >> { %v204_v31 = vmul.f32 %v652_v30, %v202_v29  ;;  %vm209_vm6 = vweird.f32 %v652_v30 }
  0x58   : >> { %vm210_vm7 = vmor %vm208_vm5, %vm209_vm6 }
  0x59   : >> { %v205_v33 = vsub.f32 1.0, %v204_v31  ;;  %vm299_vm5 = vmand %vm297_vm13, %vm298_vm14 }
  0x5a   : >> { %v300_v25 = vsel %vm299_vm5, %v294_v17, 0.0 }
  0x5b   : >> { %v206_v35 = vmul.f32 %v652_v30, %v205_v33 }
  0x5d   : >> { %v207_v37 = vadd.f32 %v652_v30, %v206_v35 }
  0x5f   : >> { %v211_v38 = vsel %vm210_vm7, %v652_v30, %v207_v37  ;;  %v338_v37 = vld [vmem:[%s782_s19] ss:$0 sm:$0xff] }
  0x60   : >> { %v216_v39 = vsel %vm213_vm8, %v215_v36, %v211_v38  ;;  %v708_v36 = vmov 1.0   ;;  %v348_v38 = vld [vmem:[%s341_s18] sm:$0xff]  ;;  %s358_s18 = smov %s341_s18 }
  0x61   : >> { %v217_v40 = vmul.f32 %v216_v39, %v199_v22  ;;  %v233_v41 = vmul.f32 0.0, %v216_v39  ;;  %v250_v42 = vmul.f32 %v216_v39, %v201_v28  ;;  %s383_s24 = scalar_lea.vmem %s358_s18, %s705_s20  ;;  %s163_s20 = sadd.s32 1, %s705_s20  }
  0x62   : >> { %p160_p9 = scmp.ge.s32.totalorder %s163_s20, 3  }
  0x63   : >> { %v218_v43 = vmul.f32 %v217_v40, %v217_v40  ;;  %v234_v44 = vmul.f32 %v233_v41, %v233_v41  ;;  %v251_v45 = vmul.f32 %v250_v42, %v250_v42  ;;  %s594_s26 = sshll.u32 (%p160_p9), %s693_s11, 3 }
  0x64   : > { %s408_s29 = scalar_lea.vmem (%p160_p9), %s904_s1, %s594_s26 }
  0x65   : >> { %v235_v46 = vadd.f32 %v234_v44, %v218_v43 }
  0x67   : >> { %v252_v47 = vadd.f32 %v251_v45, %v235_v46 }
  0x69   : >> { %653 = vrsqrt.f32 %v252_v47  ;;  %vm261_vm9 = vcmp.eq.f32.partialorder %v252_v47, inf  ;;  %v264_v54 = vand.u32 2147483648, %v252_v47  ;;  %vm263_vm10 = vcmp.eq.f32.partialorder %v252_v47, 0.0 }
  0x6f   : >> { %v654_v48 = vpop.eup %653 }
  0x70   : >> { %v255_v49 = vmul.f32 %v654_v48, %v252_v47 }
  0x72   : >> { %v256_v50 = vmul.f32 %v654_v48, %v255_v49 }
  0x74   : >> { %v257_v51 = vmul.f32 0.5, %v256_v50 }
  0x76   : >> { %v258_v52 = vsub.f32 1.5, %v257_v51  ;;  %v369_v51 = vld [vmem:[%s358_s18] sm:$0xff] }
  0x78   : >> { %v259_v53 = vmul.f32 %v654_v48, %v258_v52 }
  0x7a   : >> { %v260_v55 = vmul.f32 %v259_v53, %v252_v47 }
  0x7c   : >> { %v262_v56 = vsel %vm261_vm9, %v252_v47, %v260_v55  ;;  %vm840_vm9 = vcmp.eq.s32.totalorder %v319_v21, %v795_v5 }
  0x7d   : >> { %v265_v57 = vsel %vm263_vm10, %v264_v54, %v262_v56  ;;  %vm350_vm10 = vcmp.lt.s32.totalorder %v345_v4, 6  ;;  %v362_v4 = vmov %v792_v4 }
  0x7e   : >> { %v266_v58 = vmul.f32 %v265_v57, %v202_v29 }
  0x80   : >> { %v267_v59 = vsel %vm253_vm11, 0.0, %v266_v58  ;;  %vm371_vm11 = vcmp.gt.s32.totalorder %v319_v21, %v795_v5 }
  0x81   : >> { %v269_v60 = vxor.u32 2147483648, %v267_v59 }
  0x83   : >> { %v270_v61 = vsel %vm268_vm12, %v267_v59, %v269_v60 }
  0x84   : >> { %v821_v62 = vsel %vm189_vm4, %v807_v19, %v270_v61  ;;  %655 = vrcp.f32 %v270_v61  ;;  %vm277_vm15 = vweird.f32 %v270_v61  ;;  %v281_v10 = vand.u32 2147483647, %v270_v61 }
  0x85   : >> { %v289_v63 = vsub.f32 %v807_v19, %v821_v62  ;;  %v283_v11 = vand.u32 2147483648, %v270_v61  ;;  %v271_v27 = vsub.f32 %v270_v61, %v807_v19 }
  0x86   : >> { %vm282_vm8 = vcmp.eq.f32.partialorder %v281_v10, 8.507059e+37 }
  0x87   : >> { %657 = vrcp.f32 %v289_v63  ;;  %v312_v8 = vand.u32 2147483648, %v289_v63  ;;  %vm306_vm1 = vweird.f32 %v289_v63  ;;  %v310_v13 = vand.u32 2147483647, %v289_v63 }
  0x88   : >> { %v284_v22 = vor.u32 1.1754944e-38, %v283_v11 }
  0x89   : >> { %v313_v20 = vor.u32 1.1754944e-38, %v312_v8  ;;  %vm311_vm7 = vcmp.eq.f32.partialorder %v310_v13, 8.507059e+37 }
  0x8a   : >> { %v656_v0 = vpop.eup %655 }
  0x8b   : >> { %v273_v1 = vmul.f32 %v656_v0, %v270_v61  ;;  %vm278_vm0 = vweird.f32 %v656_v0 }
  0x8c   : >> { %vm828_vm3 = vmor %vm277_vm15, %vm278_vm0 }
  0x8d   : >> { %v658_v2 = vpop.eup %657  ;;  %v274_v6 = vsub.f32 1.0, %v273_v1 }
  0x8e   : >> { %v302_v7 = vmul.f32 %v658_v2, %v289_v63  ;;  %vm307_vm2 = vweird.f32 %v658_v2 }
  0x8f   : >> { %v275_v9 = vmul.f32 %v656_v0, %v274_v6  ;;  %vm308_vm6 = vmor %vm306_vm1, %vm307_vm2 }
  0x90   : >> { %v303_v12 = vsub.f32 1.0, %v302_v7 }
  0x91   : >> { %v276_v15 = vadd.f32 %v656_v0, %v275_v9 }
  0x92   : >> { %v304_v18 = vmul.f32 %v658_v2, %v303_v12 }
  0x93   : >> { %v280_v24 = vsel %vm828_vm3, %v656_v0, %v276_v15 }
  0x94   : >> { %v305_v23 = vadd.f32 %v658_v2, %v304_v18  ;;  %v285_v29 = vsel %vm282_vm8, %v284_v22, %v280_v24 }
  0x95   : >> { %v286_v32 = vmul.f32 %v285_v29, %v271_v27 }
  0x96   : >> { %v309_v26 = vsel %vm308_vm6, %v658_v2, %v305_v23 }
  0x97   : >> { %v314_v28 = vsel %vm311_vm7, %v313_v20, %v309_v26  ;;  %v288_v19 = vsel %vm189_vm4, 0.0, %v286_v32 }
  0x98   : >> { %v315_v30 = vmul.f32 %v314_v28, %v300_v25  ;;  %v331_v34 = vsel %vm840_vm9, %v288_v19, 0.0 }
  0x9a   : >> { %v316_v31 = vsel %vm189_vm4, 0.0, %v315_v30  ;;  %vm379_vm4 = vcmp.ge.s32.totalorder %v362_v4, %v795_v5 }
  0x9b   : >> { %v321_v33 = vsel %vm840_vm9, %v316_v31, 0.0  ;;  %vm380_vm12 = vmand %vm840_vm9, %vm379_vm4 }
  0x9c   : >> { %322 = vadd.xlane.f32.xlu0 %v321_v33 }
  0xa4   : >> { %332 = vadd.xlane.f32.xlu0 %v331_v34 }
 0x10f   : >> { %v323_v35 = vpop.xlane.xlu0 %322 }
 0x110   : >> { %324 = vst [vmem:[#allocation4] sm:$0xff] %v323_v35 }
 0x111   : >> { %326 = vst [vmem:[%s325_s21] sm:$0x1] %v708_v36 }
 0x117   : >> { %v333_v39 = vpop.xlane.xlu0 %332 }
 0x118   : >> { %v347_v40 = vld [vmem:[%s342_s23] sm:$0xff]  ;;  %v339_v14 = vsel %vm840_vm9, %v333_v39, %v338_v37  ;;  %s359_s23 = smov %s342_s23 }
 0x119   : >> { %v349_v41 = vmul.f32 %v348_v38, %v347_v40  ;;  %340 = vst [vmem:[%s782_s19] sm:$0x1] %v339_v14  ;;  %v367_v50 = vld [vmem:[%s359_s23] sm:$0xff] }
 0x11b   : >> { %v351_v42 = vsel %vm350_vm10, %v349_v41, 0.0 }
 0x11c   : >> { %v352_v43 = vrot.slane %v351_v42, 4 }
 0x11e   : >> { %v353_v44 = vadd.f32 %v352_v43, %v351_v42 }
 0x120   : >> { %v354_v45 = vrot.slane %v353_v44, 2  ;;  %v393_v4 = vld [vmem:[#allocation2] sm:$0x3] (%p160_p9) }
 0x121   : > { %396 = vst [vmem:[%s146_s15] sm:$0x3] (%p160_p9), %v393_v4 }
 0x122   : >> { %v355_v46 = vadd.f32 %v354_v45, %v353_v44 }
 0x124   : >> { %v356_v47 = vrot.slane %v355_v46, 1 }
 0x126   : >> { %v357_v48 = vadd.f32 %v356_v47, %v355_v46 }
 0x128   : >> { %v363_v49 = vmul.f32 %v357_v48, %v333_v39 }
 0x12a   : >> { %v368_v52 = vmul.f32 %v367_v50, %v363_v49 }
 0x12c   : >> { %v372_v53 = vsub.f32 %v369_v51, %v368_v52 }
 0x12e   : >> { %v373_v54 = vsel %vm371_vm11, %v372_v53, %v369_v51 }
 0x12f   : >> { %v381_v55 = vsel %vm380_vm12, %v367_v50, %v373_v54 }
 0x130   : >> { %382 = vst [vmem:[%s358_s18] sm:$0xff] %v381_v55 }
 0x135   : > { %162 = sbr.rel (!%p160_p9) target bundleno = 34 (0x22), region = 175 }
 0x137   : >> { %v384_v56 = vld [vmem:[%s383_s24] ss:$0 sm:$0xff] }
 0x138   : >> { %v389_v57 = vsel %vm840_vm9, %v821_v62, %v384_v56 }
 0x139   : >> { %390 = vst [vmem:[%s383_s24] sm:$0x1] %v389_v57 }
 0x13a   : > { %p445_p10 = scmp.lt.s32.totalorder (%p759_p3), %s693_s11, 0  ;;  %s446_s30 = ssub.s32 (%p759_p3), 0, %s693_s11  ;;  %v469_v58 = vld [vmem:[%s146_s15] sm:$0x3] (%p759_p3) }
 0x13b   : > { %s595_s3 = smin.u32 (%p759_p3), %s693_s11, %s446_s30 }
 0x13c   : > { %s448_s4 = sshrl.u32 (%p759_p3), %s595_s3, 3 }
 0x13d   : > { %444 = sbr.rel (!%p759_p3) target bundleno = 326 (0x146), region = 99  ;;  %s449_s5 = ssub.s32 (%p759_p3), 0, %s448_s4 }
 0x140   : > { %v437_v5 = vld [vmem:[%s779_s18] sm:$0xff] }
 0x141   : > { %438 = vst [vmem:[%s408_s29] sm:$0xff] %v437_v5 }
 0x142   : > { %s918_s5 = smov (!%p445_p10, %s449_s5), %s448_s4 }
 0x143   : > { %s596_s6 = sshll.u32 %s918_s5, 1 }
 0x144   : > { %s452_s17 = scalar_lea.vmem %s905_s2, %s596_s6 }
 0x145   : > { %470 = vst [vmem:[%s452_s17] sm:$0x3] %v469_v58 }
 0x146 PF: > { %s9_s13 = sadd.s32 1, %s701_s13   ;;  %s911_s9 = smov %s689_s10 }
 0x147   : > { %p6_p11 = scmp.ge.s32.totalorder %s9_s13, 4   ;;  %s912_s10 = smov %s765_s25 }
 0x148   : > { %s913_s11 = smov %s697_s12  ;;  %s914_s12 = smov %s916_s14 }
 0x149   :  { %8 = sbr.rel (!%p6_p11) target bundleno = 3 (0x3), region = 186 }

// kernel: custom-call.58
= control target key start
LH: loop header
LB: loop body
LE: loop exit
PB: predicated region body
PF: predicated region fallthrough
CT: control target
= control target key end

     0   :  { %s240_s6 = smov 0   ;;  %s267_s0 = inlined_call_operand.vmem [shape: f32[2,3,3], index: 0, kind: input, shape index: {}]   ;;  %s268_s1 = inlined_call_operand.vmem [shape: f32[2,3,3], index: 1, kind: output, shape index: {}]  }
   0x1 LB: > { %s202_s7 = sadd.s32 4294967295, %s228_s6   ;;  %p204_p0 = scmp.ge.s32.totalorder %s228_s6, 2  ;;  %s228_s6 = sphi %s240_s6, %s7_s6  }
   0x2   : > { %s23_s8 = sand.u32 (!%p204_p0), 1, %s228_s6   ;;  %s206_s9 = sshll.u32 (!%p204_p0), %s228_s6, 2 }
   0x3   : > { %21 = sbr.rel (%p204_p0) target bundleno = 10 (0xa), region = 16  ;;  %s205_s10 = sshll.u32 (!%p204_p0), %s23_s8, 2 }
   0x4   : > { %s27_s13 = scalar_lea.vmem (!%p204_p0), %s267_s0, %s206_s9  ;;  %s25_s14 = scalar_lea.vmem (!%p204_p0), [#allocation1], %s205_s10 }
   0x8   : > { %v44_v0 = vld [vmem:[%s27_s13] sm:$0xf] }
   0x9   : > { %45 = vst [vmem:[%s25_s14] sm:$0xf] %v44_v0 }
   0xa PF: > { %p207_p1 = scmp.ge.s32.totalorder %s228_s6, 1  ;;  %p62_p2 = scmp.lt.s32.totalorder %s228_s6, 3 }
   0xc   : > { %p63_p3 = pnand %p207_p1, %p62_p2 }
   0xd   : > { %s256_s15 = sand.u32 (!%p63_p3), 1, %s202_s7   ;;  %s211_s19 = sshll.u32 (!%p63_p3), %s202_s7, 2 }
   0xe   : > { %66 = sbr.rel (%p63_p3) target bundleno = 285 (0x11d), region = 50  ;;  %s208_s16 = sshll.u32 (!%p63_p3), %s256_s15, 2 }
   0xf   : > { %s75_s17 = scalar_lea.vmem (!%p63_p3), [#allocation1], %s208_s16  ;;  %s79_s18 = scalar_lea.vmem (!%p63_p3), [#allocation3], %s208_s16 }
  0x10   : > { %s130_s22 = scalar_lea.vmem (!%p63_p3), %s268_s1, %s211_s19 }
  0x13   : > { %v84_v1 = vlaneseq  ;;  %v82_v2 = vld [vmem:[%s75_s17] sm:$0xf]  ;;  %vm98_vm1 = vcmask 23552  }
  0x14   : > { %83 = vst [vmem:[#allocation0] sm:$0xf] %v82_v2 }
  0x15   : > { %v85_v3 = vand.u32 127, %v84_v1  ;;  %v87_v4 = vshrl.u32 %v84_v1, 7 }
  0x17   : > { %vm93_vm0 = vcmp.eq.s32.totalorder %v85_v3, 0  ;;  %vm89_vm2 = vcmp.eq.s32.totalorder %v85_v3, %v87_v4  ;;  %vm102_vm3 = vcmp.eq.s32.totalorder %v85_v3, 1  ;;  %vm113_vm4 = vcmp.eq.s32.totalorder %v85_v3, 2 }
  0x1b   : > { %v90_v5 = vld [vmem:[#allocation0] sm:$0xff] }
  0x1c   : > { %v97_v6 = vld [vmem:[#allocation0 + $0x1] ss:$0 sm:$0xff]  ;;  %v94_v7 = vsel %vm93_vm0, %v90_v5, 1.0  ;;  %v108_v11 = vld [vmem:[#allocation0 + $0x2] ss:$0 sm:$0xff] }
  0x1d   : > { %v99_v8 = vsel %vm98_vm1, %v97_v6, 0.0  ;;  %v95_v9 = vsel %vm89_vm2, %v94_v7, 0.0  ;;  %v110_v12 = vsel %vm98_vm1, %v108_v11, 0.0 }
  0x1e   : > { %v103_v10 = vmul.f32 %v99_v8, %v95_v9 }
  0x20   : > { %104 = vadd.xlane.f32.xlu0 %v103_v10 }
  0x93   : > { %v105_v13 = vpop.xlane.xlu0 %104 }
  0x94   : > { %v106_v14 = vsel %vm102_vm3, %v105_v13, %v95_v9 }
  0x95   : > { %v114_v15 = vmul.f32 %v110_v12, %v106_v14 }
  0x97   : > { %115 = vadd.xlane.f32.xlu0 %v114_v15 }
 0x10a   : > { %v116_v16 = vpop.xlane.xlu0 %115 }
 0x10b   : > { %v117_v17 = vsel %vm113_vm4, %v116_v16, %v106_v14 }
 0x10c   : > { %118 = vst [vmem:[#allocation2] sm:$0xff] %v117_v17 }
 0x113   : > { %v121_v18 = vld [vmem:[#allocation2] sm:$0xf] }
 0x114   : > { %124 = vst [vmem:[%s79_s18] sm:$0xf] %v121_v18 }
 0x11b   : > { %v147_v19 = vld [vmem:[%s79_s18] sm:$0xf] }
 0x11c   : > { %148 = vst [vmem:[%s130_s22] sm:$0xf] %v147_v19 }
 0x11d PF: > { %s7_s6 = sadd.s32 1, %s228_s6  }
 0x11e   : > { %p4_p4 = scmp.ge.s32.totalorder %s7_s6, 4  }
 0x120   :  { %6 = sbr.rel (!%p4_p4) target bundleno = 1 (0x1), region = 112 }

// kernel: custom-call.50
= control target key start
LH: loop header
LB: loop body
LE: loop exit
PB: predicated region body
PF: predicated region fallthrough
CT: control target
= control target key end

     0   :  { %s6_s0 = inlined_call_operand.hbm [shape: pred[2], index: 0, kind: output, shape index: {}]  }

// kernel: custom-call.55
= control target key start
LH: loop header
LB: loop body
LE: loop exit
PB: predicated region body
PF: predicated region fallthrough
CT: control target
= control target key end

     0   :  { %s374_s6 = smov 0   ;;  %s376_s7 = smov 0   ;;  %s426_s0 = inlined_call_operand.vmem [shape: f32[2,3,3], index: 0, kind: input, shape index: {}]   ;;  %s427_s1 = inlined_call_operand.vmem [shape: f32[2,3,3], index: 1, kind: output, shape index: {}]  }
   0x1   :  { %s378_s8 = smov 0  }
   0x2 LB: > { %s296_s9 = sadd.s32 4294967295, %s361_s8   ;;  %s26_s10 = sadd.s32 1, %s357_s7  ;;  %s361_s8 = sphi %s378_s8, %s7_s8   ;;  %s357_s7 = sphi %s376_s7, %s429_s7   ;;  %s353_s6 = sphi %s374_s6, %s428_s6  }
   0x3   : > { %p28_p0 = scmp.ge.s32.totalorder %s26_s10, 2  ;;  %p298_p1 = scmp.ge.s32.totalorder %s361_s8, 2 }
   0x4   : > { %s42_s11 = sand.u32 (!%p298_p1), 1, %s361_s8   ;;  %s300_s12 = sshll.u32 (!%p298_p1), %s357_s7, 2 }
   0x5   : > { %s431_s10 = smov (%p28_p0, %s26_s10), 0  ;;  %40 = sbr.rel (%p298_p1) target bundleno = 12 (0xc), region = 16 }
   0x6   : > { %s299_s13 = sshll.u32 (!%p298_p1), %s42_s11, 2  ;;  %s48_s16 = scalar_lea.vmem (!%p298_p1), %s426_s0, %s300_s12 }
   0x7   : > { %s44_s17 = scalar_lea.vmem (!%p298_p1), [#allocation1], %s299_s13 }
   0xa   : > { %v65_v0 = vld [vmem:[%s48_s16] sm:$0xf] }
   0xb   : > { %66 = vst [vmem:[%s44_s17] sm:$0xf] %v65_v0 }
   0xc PF: > { %p301_p2 = scmp.ge.s32.totalorder %s361_s8, 1  ;;  %p83_p3 = scmp.lt.s32.totalorder %s361_s8, 3 }
   0xe   : > { %p84_p4 = pnand %p301_p2, %p83_p3 }
   0xf   : > { %s401_s18 = sand.u32 (!%p84_p4), 1, %s296_s9   ;;  %s305_s22 = sshll.u32 (!%p84_p4), %s353_s6, 2 }
  0x10   : > { %87 = sbr.rel (%p84_p4) target bundleno = 490 (0x1ea), region = 50  ;;  %s302_s19 = sshll.u32 (!%p84_p4), %s401_s18, 2 }
  0x11   : > { %s96_s20 = scalar_lea.vmem (!%p84_p4), [#allocation1], %s302_s19  ;;  %s100_s21 = scalar_lea.vmem (!%p84_p4), [#allocation3], %s302_s19 }
  0x12   : > { %s208_s25 = scalar_lea.vmem (!%p84_p4), %s427_s1, %s305_s22 }
  0x15   : > { %v363_v1 = vmov 0.0   ;;  %v103_v5 = vld [vmem:[%s96_s20] sm:$0xf]  ;;  %vm106_vm3 = vcmask 7168   ;;  %vm133_vm5 = vcmask 15368   ;;  %vm159_vm6 = vcmask 1047553  }
  0x16   : > { %105 = vst [vmem:[#allocation2] sm:$0xff] %v363_v1  ;;  %vm160_vm9 = vmand %vm133_vm5, %vm159_vm6  ;;  %vm164_vm11 = vcmask 23568   ;;  %vm190_vm12 = vcmask 1047554  }
  0x17   : > { %104 = vst [vmem:[#allocation0] sm:$0xf] %v103_v5  ;;  %vm191_vm15 = vmand %vm164_vm11, %vm190_vm12 }
  0x1d   : > { %v107_v2 = vld [vmem:[#allocation2] ss:$0 sm:$0xff] }
  0x1e   : > { %v109_v3 = vmul.f32 %v107_v2, %v107_v2  ;;  %v125_v4 = vmul.f32 0.0, %v107_v2  ;;  %v108_v6 = vld [vmem:[#allocation0] ss:$0 sm:$0xff]  ;;  %v137_v24 = vld [vmem:[#allocation0 + $0x1] ss:$0 sm:$0xff] }
  0x1f   : > { %v406_v14 = vld [vmem:[#allocation0] sm:$0xff] }
  0x20   : > { %110 = vadd.xlane.f32.xlu0 %v109_v3  ;;  %v168_v42 = vld [vmem:[#allocation0 + $0x2] ss:$0 sm:$0xff] }
  0x28   : > { %126 = vadd.xlane.f32.xlu0 %v125_v4 }
  0x93   : > { %v111_v7 = vpop.xlane.xlu0 %110 }
  0x94   : > { %v112_v8 = vsub.f32 %v108_v6, %v111_v7 }
  0x96   : > { %333 = vrsqrt.f32 %v112_v8  ;;  %vm119_vm1 = vweird.f32 %v112_v8 }
  0x9b   : > { %v127_v13 = vpop.xlane.xlu0 %126 }
  0x9c   : > { %v334_v9 = vpop.eup %333  ;;  %v128_v16 = vsub.f32 %v406_v14, %v127_v13 }
  0x9d   : > { %v114_v10 = vmul.f32 %v334_v9, %v112_v8  ;;  %vm120_vm0 = vweird.f32 %v334_v9 }
  0x9e   : > { %vm121_vm2 = vmor %vm119_vm1, %vm120_vm0 }
  0x9f   : > { %v115_v11 = vmul.f32 %v334_v9, %v114_v10 }
  0xa1   : > { %v116_v12 = vmul.f32 0.5, %v115_v11 }
  0xa3   : > { %v117_v15 = vsub.f32 1.5, %v116_v12 }
  0xa5   : > { %v118_v17 = vmul.f32 %v334_v9, %v117_v15 }
  0xa7   : > { %v122_v18 = vsel %vm121_vm2, %v334_v9, %v118_v17 }
  0xa8   : > { %v129_v19 = vmul.f32 %v128_v16, %v122_v18 }
  0xaa   : > { %v130_v20 = vsel %vm106_vm3, %v129_v19, 0.0 }
  0xab   : > { %132 = vst [vmem:[#allocation2] sm:$0xff] %v130_v20 }
  0xb2   : > { %v135_v21 = vld [vmem:[#allocation2 + $0x1] ss:$0 sm:$0xff] }
  0xb3   : > { %v138_v22 = vmul.f32 %v135_v21, %v135_v21  ;;  %v154_v23 = vmul.f32 %v135_v21, %v130_v20 }
  0xb5   : > { %139 = vadd.xlane.f32.xlu1 %v138_v22 }
  0xbd   : > { %155 = vadd.xlane.f32.xlu1 %v154_v23 }
 0x128   : > { %v140_v25 = vpop.xlane.xlu1 %139 }
 0x129   : > { %v141_v26 = vsub.f32 %v137_v24, %v140_v25 }
 0x12b   : > { %335 = vrsqrt.f32 %v141_v26  ;;  %vm148_vm7 = vweird.f32 %v141_v26 }
 0x130   : > { %v156_v32 = vpop.xlane.xlu1 %155 }
 0x131   : > { %v336_v27 = vpop.eup %335  ;;  %v157_v34 = vsub.f32 %v406_v14, %v156_v32 }
 0x132   : > { %v143_v28 = vmul.f32 %v336_v27, %v141_v26  ;;  %vm149_vm4 = vweird.f32 %v336_v27 }
 0x133   : > { %vm150_vm8 = vmor %vm148_vm7, %vm149_vm4 }
 0x134   : > { %v144_v29 = vmul.f32 %v336_v27, %v143_v28 }
 0x136   : > { %v145_v30 = vmul.f32 0.5, %v144_v29 }
 0x138   : > { %v146_v31 = vsub.f32 1.5, %v145_v30 }
 0x13a   : > { %v147_v33 = vmul.f32 %v336_v27, %v146_v31 }
 0x13c   : > { %v151_v35 = vsel %vm150_vm8, %v336_v27, %v147_v33 }
 0x13d   : > { %v158_v36 = vmul.f32 %v157_v34, %v151_v35 }
 0x13f   : > { %v161_v37 = vsel %vm160_vm9, %v158_v36, 0.0 }
 0x140   : > { %v162_v38 = vadd.f32 %v161_v37, %v130_v20 }
 0x142   : > { %163 = vst [vmem:[#allocation2] sm:$0xff] %v162_v38 }
 0x149   : > { %v166_v39 = vld [vmem:[#allocation2 + $0x2] ss:$0 sm:$0xff] }
 0x14a   : > { %v169_v40 = vmul.f32 %v166_v39, %v166_v39  ;;  %v185_v41 = vmul.f32 %v166_v39, %v162_v38 }
 0x14c   : > { %170 = vadd.xlane.f32.xlu2 %v169_v40 }
 0x154   : > { %186 = vadd.xlane.f32.xlu2 %v185_v41 }
 0x1bf   : > { %v171_v43 = vpop.xlane.xlu2 %170 }
 0x1c0   : > { %v172_v44 = vsub.f32 %v168_v42, %v171_v43 }
 0x1c2   : > { %337 = vrsqrt.f32 %v172_v44  ;;  %vm179_vm13 = vweird.f32 %v172_v44 }
 0x1c7   : > { %v187_v50 = vpop.xlane.xlu2 %186 }
 0x1c8   : > { %v338_v45 = vpop.eup %337  ;;  %v188_v52 = vsub.f32 %v406_v14, %v187_v50 }
 0x1c9   : > { %v174_v46 = vmul.f32 %v338_v45, %v172_v44  ;;  %vm180_vm10 = vweird.f32 %v338_v45 }
 0x1ca   : > { %vm181_vm14 = vmor %vm179_vm13, %vm180_vm10 }
 0x1cb   : > { %v175_v47 = vmul.f32 %v338_v45, %v174_v46 }
 0x1cd   : > { %v176_v48 = vmul.f32 0.5, %v175_v47 }
 0x1cf   : > { %v177_v49 = vsub.f32 1.5, %v176_v48 }
 0x1d1   : > { %v178_v51 = vmul.f32 %v338_v45, %v177_v49 }
 0x1d3   : > { %v182_v53 = vsel %vm181_vm14, %v338_v45, %v178_v51 }
 0x1d4   : > { %v189_v54 = vmul.f32 %v188_v52, %v182_v53 }
 0x1d6   : > { %v192_v55 = vsel %vm191_vm15, %v189_v54, 0.0 }
 0x1d7   : > { %v193_v56 = vadd.f32 %v192_v55, %v162_v38 }
 0x1d9   : > { %194 = vst [vmem:[#allocation2] sm:$0xff] %v193_v56 }
 0x1e0   : > { %v197_v57 = vld [vmem:[#allocation2] sm:$0xf] }
 0x1e1   : > { %200 = vst [vmem:[%s100_s21] sm:$0xf] %v197_v57 }
 0x1e8   : > { %v225_v58 = vld [vmem:[%s100_s21] sm:$0xf] }
 0x1e9   : > { %226 = vst [vmem:[%s208_s25] sm:$0xf] %v225_v58 }
 0x1ea PF: > { %s7_s8 = sadd.s32 1, %s361_s8   ;;  %s428_s6 = smov %s357_s7 }
 0x1eb   : > { %p4_p5 = scmp.ge.s32.totalorder %s7_s8, 4   ;;  %s429_s7 = smov %s431_s10 }
 0x1ed   :  { %6 = sbr.rel (!%p4_p5) target bundleno = 2 (0x2), region = 114 }

// kernel: custom-call.56
= control target key start
LH: loop header
LB: loop body
LE: loop exit
PB: predicated region body
PF: predicated region fallthrough
CT: control target
= control target key end

     0   :  { %s373_s6 = smov 0   ;;  %s375_s7 = smov 0   ;;  %s422_s0 = inlined_call_operand.vmem [shape: f32[2,1,3,3], index: 0, kind: input, shape index: {}]   ;;  %s423_s1 = inlined_call_operand.vmem [shape: f32[2,1,3,3], index: 1, kind: output, shape index: {}]  }
   0x1   :  { %s377_s8 = smov 0  }
   0x2 LB: > { %s299_s9 = sadd.s32 4294967295, %s360_s8   ;;  %s33_s10 = sadd.s32 1, %s356_s7  ;;  %s360_s8 = sphi %s377_s8, %s7_s8   ;;  %s356_s7 = sphi %s375_s7, %s425_s7   ;;  %s352_s6 = sphi %s373_s6, %s424_s6  }
   0x3   : > { %p35_p0 = scmp.ge.s32.totalorder %s33_s10, 2  ;;  %p301_p1 = scmp.ge.s32.totalorder %s360_s8, 2 }
   0x4   : > { %s49_s11 = sand.u32 (!%p301_p1), 1, %s360_s8   ;;  %s303_s12 = sshll.u32 (!%p301_p1), %s356_s7, 2 }
   0x5   : > { %s427_s10 = smov (%p35_p0, %s33_s10), 0  ;;  %47 = sbr.rel (%p301_p1) target bundleno = 12 (0xc), region = 16 }
   0x6   : > { %s302_s13 = sshll.u32 (!%p301_p1), %s49_s11, 2  ;;  %s56_s16 = scalar_lea.vmem (!%p301_p1), %s422_s0, %s303_s12 }
   0x7   : > { %s51_s17 = scalar_lea.vmem (!%p301_p1), [#allocation1], %s302_s13 }
   0xa   : > { %v73_v0 = vld [vmem:[%s56_s16] sm:$0xf] }
   0xb   : > { %74 = vst [vmem:[%s51_s17] sm:$0xf] %v73_v0 }
   0xc PF: > { %p304_p2 = scmp.ge.s32.totalorder %s360_s8, 1  ;;  %p91_p3 = scmp.lt.s32.totalorder %s360_s8, 3 }
   0xe   : > { %p92_p4 = pnand %p304_p2, %p91_p3 }
  0x10   : > { %95 = sbr.rel (%p92_p4) target bundleno = 437 (0x1b5), region = 50 }
  0x15   : > { %s400_s18 = sand.u32 1, %s299_s9   ;;  %v113_v1 = vlaneseq  ;;  %v362_v20 = vmov -1.0   ;;  %s308_s22 = sshll.u32 %s352_s6, 2 }
  0x16   : > { %s305_s19 = sshll.u32 %s400_s18, 2  ;;  %s206_s25 = scalar_lea.vmem %s423_s1, %s308_s22 }
  0x17   : > { %s104_s20 = scalar_lea.vmem [#allocation1], %s305_s19  ;;  %v114_v3 = vand.u32 127, %v113_v1  ;;  %v117_v4 = vshrl.u32 %v113_v1, 7  ;;  %s108_s21 = scalar_lea.vmem [#allocation3], %s305_s19 }
  0x18   : > { %v111_v2 = vld [vmem:[%s104_s20] sm:$0xf] }
  0x19   : > { %112 = vst [vmem:[#allocation0] sm:$0xf] %v111_v2  ;;  %vm119_vm0 = vcmp.eq.s32.totalorder %v117_v4, %v114_v3  ;;  %vm115_vm1 = vcmp.lt.s32.totalorder %v114_v3, 3  ;;  %vm124_vm2 = vcmp.ge.s32.totalorder %v117_v4, %v114_v3  ;;  %vm151_vm8 = vcmp.eq.s32.totalorder %v114_v3, 0 }
  0x1a   : > { %vm125_vm3 = vmand %vm124_vm2, %vm115_vm1  ;;  %vm148_vm9 = vcmp.eq.s32.totalorder %v114_v3, %v117_v4  ;;  %v152_v21 = vsel %vm151_vm8, 1.0, %v362_v20  ;;  %vm159_vm10 = vcmp.eq.s32.totalorder %v114_v3, 1  ;;  %vm169_vm11 = vcmp.eq.s32.totalorder %v114_v3, 2 }
  0x1b   : > { %v153_v22 = vsel %vm148_vm9, %v152_v21, 0.0 }
  0x20   : > { %v120_v5 = vld [vmem:[#allocation0] sm:$0xff] }
  0x21   : > { %v121_v6 = vsel %vm119_vm0, %v120_v5, 0.0  ;;  %v126_v15 = vsel %vm125_vm3, %v120_v5, 0.0 }
  0x22   : > { %122 = vadd.xlane.f32.xlu0 %v121_v6 }
  0x95   : > { %v123_v7 = vpop.xlane.xlu0 %122 }
  0x96   : > { %336 = vrcp.f32 %v123_v7  ;;  %v138_v11 = vand.u32 2147483648, %v123_v7  ;;  %v136_v13 = vand.u32 2147483647, %v123_v7  ;;  %vm132_vm5 = vweird.f32 %v123_v7 }
  0x98   : > { %v139_v16 = vor.u32 1.1754944e-38, %v138_v11  ;;  %vm137_vm7 = vcmp.eq.f32.partialorder %v136_v13, 8.507059e+37 }
  0x9c   : > { %v337_v8 = vpop.eup %336 }
  0x9d   : > { %v128_v9 = vmul.f32 %v337_v8, %v123_v7  ;;  %vm133_vm4 = vweird.f32 %v337_v8 }
  0x9e   : > { %vm134_vm6 = vmor %vm132_vm5, %vm133_vm4 }
  0x9f   : > { %v129_v10 = vsub.f32 1.0, %v128_v9 }
  0xa1   : > { %v130_v12 = vmul.f32 %v337_v8, %v129_v10 }
  0xa3   : > { %v131_v14 = vadd.f32 %v337_v8, %v130_v12 }
  0xa5   : > { %v135_v17 = vsel %vm134_vm6, %v337_v8, %v131_v14 }
  0xa6   : > { %v140_v18 = vsel %vm137_vm7, %v139_v16, %v135_v17 }
  0xa7   : > { %v141_v19 = vmul.f32 %v140_v18, %v126_v15 }
  0xa9   : > { %142 = vst [vmem:[#allocation4] sm:$0xff] %v141_v19 }
  0xb0   : > { %v155_v23 = vld [vmem:[#allocation4 + $0x1] ss:$0 sm:$0xff]  ;;  %v165_v26 = vld [vmem:[#allocation4 + $0x2] ss:$0 sm:$0xff] }
  0xb1   : > { %v156_v24 = vxor.u32 2147483648, %v155_v23  ;;  %v166_v28 = vxor.u32 2147483648, %v165_v26 }
  0xb3   : > { %v160_v25 = vmul.f32 %v156_v24, %v153_v22 }
  0xb5   : > { %161 = vadd.xlane.f32.xlu0 %v160_v25 }
 0x128   : > { %v162_v27 = vpop.xlane.xlu0 %161 }
 0x129   : > { %v163_v29 = vsel %vm159_vm10, %v162_v27, %v153_v22 }
 0x12a   : > { %v170_v30 = vmul.f32 %v166_v28, %v163_v29 }
 0x12c   : > { %171 = vadd.xlane.f32.xlu1 %v170_v30 }
 0x19f   : > { %v172_v31 = vpop.xlane.xlu1 %171 }
 0x1a0   : > { %v173_v32 = vsel %vm169_vm11, %v172_v31, %v163_v29 }
 0x1a1   : > { %v188_v33 = vmul.f32 %v173_v32, %v140_v18 }
 0x1a3   : > { %v190_v34 = vsel %vm132_vm5, %v173_v32, %v188_v33 }
 0x1a4   : > { %191 = vst [vmem:[#allocation2] sm:$0xff] %v190_v34 }
 0x1ab   : > { %v194_v35 = vld [vmem:[#allocation2] sm:$0xf] }
 0x1ac   : > { %197 = vst [vmem:[%s108_s21] sm:$0xf] %v194_v35 }
 0x1b3   : > { %v223_v36 = vld [vmem:[%s108_s21] sm:$0xf] }
 0x1b4   : > { %224 = vst [vmem:[%s206_s25] sm:$0xf] %v223_v36 }
 0x1b5 PF: > { %s7_s8 = sadd.s32 1, %s360_s8   ;;  %s424_s6 = smov %s356_s7 }
 0x1b6   : > { %p4_p5 = scmp.ge.s32.totalorder %s7_s8, 4   ;;  %s425_s7 = smov %s427_s10 }
 0x1b8   :  { %6 = sbr.rel (!%p4_p5) target bundleno = 2 (0x2), region = 112 }

// kernel: robust_rpm_svd_head.1
= control target key start
LH: loop header
LB: loop body
LE: loop exit
PB: predicated region body
PF: predicated region fallthrough
CT: control target
= control target key end

     0   :  { %13 = vsyncpa [#allocation3], 0  ;;  %s2024_s0 = inlined_call_operand.vmem [shape: f32[2,16,32], index: 0, kind: input, shape index: {}]   ;;  %s2025_s1 = inlined_call_operand.vmem [shape: f32[2,32,128], index: 1, kind: input, shape index: {}]   ;;  %s2026_s2 = inlined_call_operand.vmem [shape: f32[2,16,1], index: 2, kind: input, shape index: {}]   ;;  %s2027_s3 = inlined_call_operand.vmem [shape: f32[2,1,128], index: 3, kind: input, shape index: {}]   ;;  %s2028_s4 = inlined_call_operand.vmem [shape: f32[2,16,3], index: 4, kind: input, shape index: {}]   ;;  %s2029_s5 = inlined_call_operand.vmem [shape: f32[2,128,4], index: 5, kind: input, shape index: {}]   ;;  %s2030_s6 = inlined_call_operand.hbm [shape: f32[2,16,128], index: 6, kind: output, shape index: {0}]   ;;  %s2031_s7 = inlined_call_operand.vmem [shape: f32[2,5,3], index: 7, kind: output, shape index: {1}]  }
   0x1   :  { %15 = vsyncpa [#allocation3 + $0x1], 0  ;;  %s1701_s24 = smov 0   ;;  %s1703_s25 = smov 0  }
   0x2   :  { %s1705_s26 = smov 0   ;;  %s1707_s27 = smov 0  }
   0x3 LB: > { %s1722_s28 = sadd.s32 4294967295, %s1654_s27   ;;  %s1395_s29 = sadd.s32 4294967294, %s1654_s27   ;;  %s1654_s27 = sphi %s1707_s27, %s2037_s27   ;;  %s1650_s26 = sphi %s1705_s26, %s2036_s26   ;;  %s1646_s25 = sphi %s1703_s25, %s2035_s25   ;;  %s1642_s24 = sphi %s1701_s24, %s2034_s24  }
   0x4   : > { %s1726_s30 = sadd.s32 1, %s1654_s27   ;;  %s184_s8 = sadd.s32 1, %s1650_s26 }
   0x5   : > { %s181_s9 = ssub.s32 %s1654_s27, %s1726_s30  ;;  %p194_p0 = scmp.ne.s32.totalorder %s1650_s26, %s1646_s25 }
   0x6   : > { %p182_p1 = scmp.eq.s32.totalorder %s181_s9, 0  ;;  %p195_p2 = scmp.eq.s32.totalorder %s1722_s28, 1 }
   0x7   : > { %p200_p3 = scmp.ne.s32.totalorder %s1646_s25, %s1642_s24  ;;  %p201_p4 = scmp.eq.s32.totalorder %s1395_s29, 1 }
   0x8   : > { %s1737_s10 = scalar_select %p182_p1, %s1650_s26, %s184_s8  }
   0x9   : > { %p1739_p5 = por %p195_p2, %p194_p0  ;;  %p1743_p6 = por %p201_p4, %p200_p3 }
   0xa   : > { %p1398_p7 = scmp.ge.s32.totalorder %s1654_s27, 1  ;;  %p291_p8 = scmp.lt.s32.totalorder %s1654_s27, 3 }
   0xc   : > { %p292_p9 = pnand %p1398_p7, %p291_p8 }
   0xd   : > { %p350_p10 = scmp.lt.s32.totalorder (!%p292_p9), %s1722_s28, 1  ;;  %s341_s22 = sand.u32 (!%p292_p9), 1, %s1646_s25  }
   0xe   : > { %295 = sbr.rel (%p292_p9) target bundleno = 4021 (0xfb5), region = 44  ;;  %s1399_s23 = sshll.u32 (!%p292_p9), %s341_s22, 4 }
   0xf   : > { %s1230_s9 = scalar_lea.sflag (!%p292_p9), [#allocation3], %s341_s22  ;;  %s1612_s16 = scalar_lea.hbm (!%p292_p9), %s2030_s6, 32 }
  0x13   : > { %v1656_v0 = vmov 0   ;;  %s1751_s13 = scalar_select %p350_p10, %s1722_s28, 1  ;;  %vm409_vm0 = vcmask 261120   ;;  %v1657_v9 = vmov 1.0   ;;  %vm540_vm1 = vcmask 130048  }
  0x14   : > { %1475 = vset.pattern.permute.xlu0 %v1656_v0  ;;  %1476 = vset.pattern.permute.xlu2 %v1656_v0  ;;  %vm1103_vm2 = vcmask 31768   ;;  %vm1142_vm15 = vcmask 23552  }
  0x15   : > { %1477 = vset.pattern.permute.xlu1 %v1656_v0  ;;  %s1425_s14 = sshll.u32 %s1751_s13, 5  ;;  %s1758_s18 = sshll.u32 %s1751_s13, 4  ;;  %480 = vmatpush.msra.mxu1 %v1657_v9 }
  0x16   : > { %s359_s17 = scalar_lea.vmem %s2025_s1, %s1425_s14  ;;  %s367_s21 = scalar_lea.vmem %s2027_s3, %s1751_s13  ;;  %599 = vmatpush.msra.mxu3 %v1657_v9 }
  0x17   : > { %v387_v1 = vld [vmem:[%s359_s17 + $0x18] sm:$0xff]  ;;  %v386_v2 = vld [vmem:[%s359_s17 + $0x10] sm:$0xff]  ;;  %s364_s29 = scalar_lea.vmem %s2026_s2, %s1758_s18  ;;  %v385_v3 = vld [vmem:[%s359_s17 + $0x8] sm:$0xff]  ;;  %s354_s14 = scalar_lea.vmem %s2024_s0, %s1758_s18  ;;  %481 = vmatpush.msra.mxu1 %v1657_v9 }
  0x18   : > { %428 = vmatpush.msra.mxu0 %v387_v1  ;;  %v388_v4 = vld [vmem:[%s364_s29] sm:$0xff]  ;;  %v389_v7 = vld [vmem:[%s364_s29 + $0x8] sm:$0xff]  ;;  %600 = vmatpush.msra.mxu3 %v1657_v9  ;;  %s1960_s29 = scalar_lea.vmem [#allocation2], %s1399_s23 }
  0x19   : > { %441 = vperm.xlu0 %1475, %v388_v4   ;;  %v384_v5 = vld [vmem:[%s359_s17] sm:$0xff]  ;;  %v383_v8 = vld [vmem:[%s354_s14 + $0x8] sm:$0xff]  ;;  %482 = vmatpush.msra.mxu1 %v1657_v9  ;;  %s1428_s17 = sshll.u32 %s1751_s13, 7  ;;  %s1246_s23 = sshll.u32 %s1960_s29, 4  ;;  %s1247_s23 = int_to_ptr.vmem [resolvable:$true] %s1246_s23 }
  0x1a   : > { %429 = vmatpush.msra.mxu0 %v386_v2  ;;  %v382_v6 = vld [vmem:[%s354_s14] sm:$0xff]  ;;  %601 = vmatpush.msra.mxu3 %v1657_v9  ;;  %s372_s14 = scalar_lea.vmem %s2028_s4, %s1758_s18  ;;  %s1410_s18 = sshll.u32 %s1751_s13, 3 }
  0x1b   : > { %483 = vmatpush.msra.mxu1 %v1657_v9  ;;  %v1481_v10 = vld [vmem:[%s367_s21] ss:$0 sm:$0xff]  ;;  %s1925_s21 = scalar_lea.vmem %s2029_s5, %s1428_s17  ;;  %s1984_s17 = scalar_lea.vmem %s2031_s7, %s1410_s18 }
  0x1c   : > { %430 = vmatpush.msra.mxu0 %v385_v3  ;;  %602 = vmatpush.msra.mxu3 %v1657_v9  ;;  %s1429_s13 = sshll.u32 %s1722_s28, 4 }
  0x1d   : > { %484 = vmatpush.msra.mxu1 %v1657_v9 }
  0x1e   : > { %431 = vmatpush.msra.mxu0 %v384_v5  ;;  %603 = vmatpush.msra.mxu3 %v1657_v9 }
  0x1f   : > { %1411 = vmatmul.msk.f32.vlgmr.msra.gmra.mxu0 %vm409_vm0, %v382_v6  ;;  %485 = vmatpush.msra.mxu1 %v1657_v9 }
  0x20   : > { %715 = vmatpush.msrb.mxu0 %v1657_v9  ;;  %604 = vmatpush.msra.mxu3 %v1657_v9 }
  0x21   : > { %446 = vperm.xlu0 %1475, %v389_v7   ;;  %486 = vmatpush.msra.mxu1 %v1657_v9 }
  0x22   : > { %716 = vmatpush.msrb.mxu0 %v1657_v9  ;;  %605 = vmatpush.msra.mxu3 %v1657_v9 }
  0x23   : > { %487 = vmatpush.msra.mxu1 %v1657_v9 }
  0x24   : > { %717 = vmatpush.msrb.mxu0 %v1657_v9  ;;  %606 = vmatpush.msra.mxu3 %v1657_v9 }
  0x25   : > { %488 = vmatpush.msra.mxu1 %v1657_v9 }
  0x26   : > { %718 = vmatpush.msrb.mxu0 %v1657_v9  ;;  %607 = vmatpush.msra.mxu3 %v1657_v9 }
  0x27   : > { %1412 = vmatmul.msk.f32.gmra.mxu0 %vm409_vm0, %v383_v8  ;;  %489 = vmatpush.msra.mxu1 %v1657_v9  ;;  %vm1226_vm0 = vcmask 16384  }
  0x28   : > { %719 = vmatpush.msrb.mxu0 %v1657_v9  ;;  %608 = vmatpush.msra.mxu3 %v1657_v9 }
  0x29   : > { %490 = vmatpush.msra.mxu1 %v1657_v9 }
  0x2a   : > { %720 = vmatpush.msrb.mxu0 %v1657_v9  ;;  %609 = vmatpush.msra.mxu3 %v1657_v9 }
  0x2b   : > { %491 = vmatpush.msra.mxu1 %v1657_v9 }
  0x2c   : > { %721 = vmatpush.msrb.mxu0 %v1657_v9  ;;  %610 = vmatpush.msra.mxu3 %v1657_v9 }
  0x2d   : > { %492 = vmatpush.msra.mxu1 %v1657_v9 }
  0x2e   : > { %722 = vmatpush.msrb.mxu0 %v1657_v9  ;;  %611 = vmatpush.msra.mxu3 %v1657_v9 }
  0x2f   : > { %493 = vmatpush.msra.mxu1 %v1657_v9 }
  0x30   : > { %723 = vmatpush.msrb.mxu0 %v1657_v9  ;;  %612 = vmatpush.msra.mxu3 %v1657_v9 }
  0x31   : > { %494 = vmatpush.msra.mxu1 %v1657_v9 }
  0x32   : > { %724 = vmatpush.msrb.mxu0 %v1657_v9  ;;  %613 = vmatpush.msra.mxu3 %v1657_v9 }
  0x33   : > { %495 = vmatpush.msra.mxu1 %v1657_v9 }
  0x34   : > { %725 = vmatpush.msrb.mxu0 %v1657_v9  ;;  %614 = vmatpush.msra.mxu3 %v1657_v9 }
  0x36   : > { %726 = vmatpush.msrb.mxu0 %v1657_v9  ;;  %947 = vmatpush.msrb.mxu3 %v1657_v9 }
  0x38   : > { %727 = vmatpush.msrb.mxu0 %v1657_v9  ;;  %948 = vmatpush.msrb.mxu3 %v1657_v9 }
  0x3a   : > { %728 = vmatpush.msrb.mxu0 %v1657_v9  ;;  %949 = vmatpush.msrb.mxu3 %v1657_v9 }
  0x3c   : > { %729 = vmatpush.msrb.mxu0 %v1657_v9  ;;  %950 = vmatpush.msrb.mxu3 %v1657_v9 }
  0x3e   : > { %730 = vmatpush.msrb.mxu0 %v1657_v9  ;;  %951 = vmatpush.msrb.mxu3 %v1657_v9 }
  0x40   : > { %952 = vmatpush.msrb.mxu3 %v1657_v9 }
  0x42   : > { %953 = vmatpush.msrb.mxu3 %v1657_v9 }
  0x44   : > { %954 = vmatpush.msrb.mxu3 %v1657_v9 }
  0x46   : > { %955 = vmatpush.msrb.mxu3 %v1657_v9 }
  0x48   : > { %956 = vmatpush.msrb.mxu3 %v1657_v9 }
  0x4a   : > { %957 = vmatpush.msrb.mxu3 %v1657_v9 }
  0x4c   : > { %958 = vmatpush.msrb.mxu3 %v1657_v9 }
  0x4e   : > { %959 = vmatpush.msrb.mxu3 %v1657_v9 }
  0x50   : > { %960 = vmatpush.msrb.mxu3 %v1657_v9 }
  0x52   : > { %961 = vmatpush.msrb.mxu3 %v1657_v9 }
  0x54   : > { %962 = vmatpush.msrb.mxu3 %v1657_v9 }
  0x8b   : > { %v442_v11 = vpop.permute.xlu0 %441 }
  0x8c   : > { %v452_v12 = vadd.f32 %v1481_v10, %v442_v11 }
  0x93   : > { %v447_v17 = vpop.permute.xlu0 %446 }
  0x94   : > { %v453_v20 = vadd.f32 %v1481_v10, %v447_v17 }
  0x9c   : > { %v433_v13 = vpop.f32.mrf.mxu0 }
  0x9d   : > { %v454_v14 = vmul.f32 2.0, %v433_v13 }
  0x9f   : > { %v456_v15 = vsub.f32 %v452_v12, %v454_v14 }
  0xa1   : > { %v458_v16 = vmul.f32 0.17677669, %v456_v15 }
  0xa3   : > { %v1809_v18 = vsub.f32 0.2, %v458_v16 }
  0xa4   : > { %v436_v19 = vpop.f32.mrf.mxu0 }
  0xa5   : > { %v455_v21 = vmul.f32 2.0, %v436_v19  ;;  %462 = vmax.xlane.f32.xlu1 %v1809_v18 }
  0xa7   : > { %v457_v22 = vsub.f32 %v453_v20, %v455_v21 }
  0xa9   : > { %v459_v23 = vmul.f32 0.17677669, %v457_v22 }
  0xab   : > { %v461_v24 = vsub.f32 0.2, %v459_v23 }
  0xad   : > { %464 = vmax.xlane.f32.xlu1 %v461_v24 }
 0x118   : > { %v463_v25 = vpop.xlane.xlu1 %462 }
 0x119   : > { %v466_v26 = vmax.f32 %v463_v25, 0.0 }
 0x11b   : > { %v468_v27 = vsub.f32 %v1809_v18, %v466_v26  ;;  %v474_v35 = vsub.f32 0.0, %v466_v26 }
 0x11d   : > { %v470_v28 = vmul.f32 1.442695, %v468_v27  ;;  %v476_v36 = vmul.f32 1.442695, %v474_v35 }
 0x11f   : > { %1482 = vpow2.f32 %v470_v28 }
 0x120   : > { %v465_v29 = vpop.xlane.xlu1 %464 }
 0x121   : > { %v467_v30 = vmax.f32 %v465_v29, 0.0 }
 0x123   : > { %v469_v31 = vsub.f32 %v461_v24, %v467_v30  ;;  %v475_v37 = vsub.f32 0.0, %v467_v30 }
 0x125   : > { %v1483_v32 = vpop.eup %1482  ;;  %v472_v33 = vmul.f32 1.442695, %v469_v31  ;;  %v478_v38 = vmul.f32 1.442695, %v475_v37 }
 0x126   : > { %496 = vmatmul.f32.vlgmr.msra.gmra.mxu1 %v1483_v32 }
 0x127   : > { %1484 = vpow2.f32 %v472_v33 }
 0x128   : > { %1486 = vpow2.f32 %v476_v36 }
 0x129   : > { %1488 = vpow2.f32 %v478_v38 }
 0x12d   : > { %v1485_v34 = vpop.eup %1484 }
 0x12e   : > { %499 = vmatmul.f32.gmra.mxu1 %v1485_v34  ;;  %v1487_v39 = vpop.eup %1486 }
 0x12f   : > { %v1489_v42 = vpop.eup %1488 }
 0x1a3   : > { %v497_v40 = vpop.f32.mrf.mxu1 }
 0x1a4   : > { %v498_v41 = vadd.f32 %v1487_v39, %v497_v40 }
 0x1a6   : > { %1490 = vlog2.f32 %v498_v41 }
 0x1ab   : > { %v500_v43 = vpop.f32.mrf.mxu1 }
 0x1ac   : > { %v1491_v44 = vpop.eup %1490  ;;  %v501_v45 = vadd.f32 %v1489_v42, %v500_v43 }
 0x1ad   : > { %v504_v46 = vmul.f32 0.6931472, %v1491_v44 }
 0x1ae   : > { %1492 = vlog2.f32 %v501_v45 }
 0x1af   : > { %v507_v47 = vadd.f32 %v504_v46, %v466_v26 }
 0x1b1   : > { %511 = vperm.xlu2 %1476, %v507_v47   ;;  %v1848_v17 = vsub.f32 0.0, %v507_v47 }
 0x1b4   : > { %v1493_v48 = vpop.eup %1492 }
 0x1b5   : > { %v506_v49 = vmul.f32 0.6931472, %v1493_v48 }
 0x1b7   : > { %v508_v50 = vadd.f32 %v506_v49, %v467_v30 }
 0x1b9   : > { %516 = vperm.xlu2 %1476, %v508_v50  }
 0x20b   : > { %v512_v51 = vpop.permute.xlu2 %511 }
 0x20c   : > { %v519_v53 = vsub.f32 %v1809_v18, %v512_v51  ;;  %v1850_v18 = vsub.f32 0.0, %v508_v50 }
 0x213   : > { %v517_v52 = vpop.permute.xlu2 %516 }
 0x214   : > { %v520_v54 = vsub.f32 %v461_v24, %v517_v52 }
 0x216   : > { %v523_v55 = vmax.f32 %v519_v53, %v520_v54 }
 0x218   : > { %v524_v56 = vrot.slane %v523_v55, 4 }
 0x21a   : > { %v525_v57 = vmax.f32 %v523_v55, %v524_v56 }
 0x21c   : > { %v526_v58 = vrot.slane %v525_v57, 2 }
 0x21e   : > { %v527_v59 = vmax.f32 %v525_v57, %v526_v58 }
 0x220   : > { %v528_v60 = vrot.slane %v527_v59, 1 }
 0x222   : > { %v529_v61 = vmax.f32 %v527_v59, %v528_v60 }
 0x224   : > { %v530_v62 = vmax.f32 %v529_v61, 0.0 }
 0x226   : > { %v532_v63 = vsub.f32 %v520_v54, %v530_v62  ;;  %v531_v0 = vsub.f32 %v519_v53, %v530_v62  ;;  %v537_v5 = vsub.f32 0.0, %v530_v62 }
 0x228   : > { %v535_v1 = vmul.f32 1.442695, %v532_v63  ;;  %v533_v2 = vmul.f32 1.442695, %v531_v0  ;;  %v538_v6 = vmul.f32 1.442695, %v537_v5 }
 0x22a   : > { %1494 = vpow2.f32 %v535_v1 }
 0x22b   : > { %1496 = vpow2.f32 %v533_v2 }
 0x22c   : > { %1498 = vpow2.f32 %v538_v6 }
 0x230   : > { %v1495_v3 = vpop.eup %1494 }
 0x231   : > { %558 = vmatpush.msra.mxu2 %v1495_v3  ;;  %v1497_v4 = vpop.eup %1496 }
 0x232   : > { %v1499_v7 = vpop.eup %1498 }
 0x233   : > { %559 = vmatpush.msra.mxu2 %v1497_v4 }
 0x234   : > { %1413 = vmatmul.msk.f32.vlgmr.msra.gmra.mxu2 %vm540_vm1, %v1657_v9 }
 0x2b7   : > { %v561_v8 = vpop.f32.mrf.mxu2 }
 0x2b8   : > { %v562_v10 = vadd.f32 %v1499_v7, %v561_v8 }
 0x2ba   : > { %1500 = vlog2.f32 %v562_v10 }
 0x2c0   : > { %v1501_v11 = vpop.eup %1500 }
 0x2c1   : > { %v565_v12 = vmul.f32 0.6931472, %v1501_v11 }
 0x2c3   : > { %v566_v13 = vadd.f32 %v565_v12, %v530_v62 }
 0x2c5   : > { %v567_v14 = vperm.slane %v566_v13, 0  ;;  %v1856_v57 = vsub.f32 0.0, %v566_v13 }
 0x2c7   : > { %v569_v15 = vsub.f32 %v520_v54, %v567_v14  ;;  %v568_v16 = vsub.f32 %v519_v53, %v567_v14 }
 0x2c9   : > { %573 = vmax.xlane.f32.xlu1 %v569_v15  ;;  %571 = vmax.xlane.f32.xlu0 %v568_v16 }
 0x33c   : > { %v574_v19 = vpop.xlane.xlu1 %573  ;;  %v572_v20 = vpop.xlane.xlu0 %571 }
 0x33d   : > { %v576_v21 = vmax.f32 %v574_v19, %v1850_v18  ;;  %v575_v22 = vmax.f32 %v572_v20, %v1848_v17 }
 0x33f   : > { %579 = vperm.xlu2 %1476, %v575_v22   ;;  %584 = vperm.xlu1 %1477, %v576_v21   ;;  %v593_v31 = vsub.f32 %v1848_v17, %v575_v22  ;;  %v594_v37 = vsub.f32 %v1850_v18, %v576_v21 }
 0x341   : > { %v595_v32 = vmul.f32 1.442695, %v593_v31  ;;  %v597_v40 = vmul.f32 1.442695, %v594_v37 }
 0x399   : > { %v580_v23 = vpop.permute.xlu2 %579 }
 0x39a   : > { %v587_v24 = vsub.f32 %v568_v16, %v580_v23 }
 0x39c   : > { %v589_v25 = vmul.f32 1.442695, %v587_v24 }
 0x39e   : > { %1502 = vpow2.f32 %v589_v25 }
 0x3a4   : > { %v1503_v26 = vpop.eup %1502 }
 0x3a5   : > { %615 = vmatmul.f32.vlgmr.msra.gmra.mxu3 %v1503_v26 }
 0x3b1   : > { %v585_v27 = vpop.permute.xlu1 %584 }
 0x3b2   : > { %v588_v28 = vsub.f32 %v569_v15, %v585_v27 }
 0x3b4   : > { %v591_v29 = vmul.f32 1.442695, %v588_v28 }
 0x3b6   : > { %1504 = vpow2.f32 %v591_v29 }
 0x3b7   : > { %1506 = vpow2.f32 %v595_v32 }
 0x3bc   : > { %v1505_v30 = vpop.eup %1504 }
 0x3bd   : > { %618 = vmatmul.f32.gmra.mxu3 %v1505_v30  ;;  %v1507_v33 = vpop.eup %1506 }
 0x428   : > { %v616_v34 = vpop.f32.mrf.mxu3 }
 0x429   : > { %v617_v35 = vadd.f32 %v1507_v33, %v616_v34 }
 0x42b   : > { %1508 = vlog2.f32 %v617_v35 }
 0x42c   : > { %1510 = vpow2.f32 %v597_v40 }
 0x431   : > { %v1509_v36 = vpop.eup %1508 }
 0x432   : > { %v623_v38 = vmul.f32 0.6931472, %v1509_v36  ;;  %v1511_v41 = vpop.eup %1510 }
 0x434   : > { %v626_v39 = vadd.f32 %v623_v38, %v575_v22 }
 0x436   : > { %630 = vperm.xlu2 %1476, %v626_v39  }
 0x440   : > { %v619_v42 = vpop.f32.mrf.mxu3 }
 0x441   : > { %v620_v43 = vadd.f32 %v1511_v41, %v619_v42 }
 0x443   : > { %1512 = vlog2.f32 %v620_v43 }
 0x449   : > { %v1513_v44 = vpop.eup %1512 }
 0x44a   : > { %v625_v45 = vmul.f32 0.6931472, %v1513_v44 }
 0x44c   : > { %v627_v46 = vadd.f32 %v625_v45, %v576_v21 }
 0x44e   : > { %635 = vperm.xlu2 %1476, %v627_v46   ;;  %v1867_v21 = vsub.f32 %v1850_v18, %v627_v46 }
 0x490   : > { %v631_v47 = vpop.permute.xlu2 %630 }
 0x491   : > { %v638_v49 = vsub.f32 %v568_v16, %v631_v47 }
 0x4a8   : > { %v636_v48 = vpop.permute.xlu2 %635 }
 0x4a9   : > { %v639_v50 = vsub.f32 %v569_v15, %v636_v48  ;;  %v1863_v15 = vsub.f32 %v1848_v17, %v626_v39 }
 0x4ab   : > { %v642_v51 = vmax.f32 %v638_v49, %v639_v50 }
 0x4ad   : > { %v643_v52 = vrot.slane %v642_v51, 4 }
 0x4af   : > { %v644_v53 = vmax.f32 %v642_v51, %v643_v52 }
 0x4b1   : > { %v645_v54 = vrot.slane %v644_v53, 2 }
 0x4b3   : > { %v646_v55 = vmax.f32 %v644_v53, %v645_v54 }
 0x4b5   : > { %v647_v56 = vrot.slane %v646_v55, 1 }
 0x4b7   : > { %v648_v58 = vmax.f32 %v646_v55, %v647_v56 }
 0x4b9   : > { %v649_v59 = vmax.f32 %v648_v58, %v1856_v57 }
 0x4bb   : > { %v650_v60 = vperm.slane %v649_v59, 0  ;;  %v657_v3 = vsub.f32 %v1856_v57, %v649_v59 }
 0x4bd   : > { %v652_v61 = vsub.f32 %v639_v50, %v650_v60  ;;  %v651_v62 = vsub.f32 %v638_v49, %v650_v60  ;;  %v658_v4 = vmul.f32 1.442695, %v657_v3 }
 0x4bf   : > { %v655_v63 = vmul.f32 1.442695, %v652_v61  ;;  %v653_v0 = vmul.f32 1.442695, %v651_v62 }
 0x4c1   : > { %1514 = vpow2.f32 %v655_v63 }
 0x4c2   : > { %1516 = vpow2.f32 %v653_v0 }
 0x4c3   : > { %1518 = vpow2.f32 %v658_v4 }
 0x4c7   : > { %v1515_v1 = vpop.eup %1514 }
 0x4c8   : > { %674 = vmatpush.msrb.mxu2 %v1515_v1  ;;  %v1517_v2 = vpop.eup %1516 }
 0x4c9   : > { %v1519_v5 = vpop.eup %1518 }
 0x4ca   : > { %675 = vmatpush.msrb.mxu2 %v1517_v2 }
 0x4cb   : > { %1414 = vmatmul.msk.f32.vlgmr.msrb.gmra.mxu2 %vm540_vm1, %v1657_v9 }
 0x54e   : > { %v677_v6 = vpop.f32.mrf.mxu2 }
 0x54f   : > { %v678_v7 = vadd.f32 %v1519_v5, %v677_v6 }
 0x551   : > { %1520 = vlog2.f32 %v678_v7 }
 0x557   : > { %v1521_v8 = vpop.eup %1520 }
 0x558   : > { %v681_v10 = vmul.f32 0.6931472, %v1521_v8 }
 0x55a   : > { %v682_v11 = vadd.f32 %v681_v10, %v649_v59 }
 0x55c   : > { %v683_v12 = vperm.slane %v682_v11, 0  ;;  %v1876_v55 = vsub.f32 %v1856_v57, %v682_v11 }
 0x55e   : > { %v685_v13 = vsub.f32 %v639_v50, %v683_v12  ;;  %v684_v14 = vsub.f32 %v638_v49, %v683_v12 }
 0x560   : > { %689 = vmax.xlane.f32.xlu1 %v685_v13  ;;  %687 = vmax.xlane.f32.xlu2 %v684_v14 }
 0x5d3   : > { %v688_v16 = vpop.xlane.xlu2 %687  ;;  %v690_v20 = vpop.xlane.xlu1 %689 }
 0x5d4   : > { %v691_v19 = vmax.f32 %v688_v16, %v1863_v15  ;;  %v692_v22 = vmax.f32 %v690_v20, %v1867_v21 }
 0x5d6   : > { %695 = vperm.xlu0 %1475, %v691_v19   ;;  %v709_v30 = vsub.f32 %v1863_v15, %v691_v19  ;;  %v710_v18 = vsub.f32 %v1867_v21, %v692_v22 }
 0x5d8   : > { %v711_v31 = vmul.f32 1.442695, %v709_v30  ;;  %v713_v32 = vmul.f32 1.442695, %v710_v18 }
 0x5de   : > { %700 = vperm.xlu0 %1475, %v692_v22  }
 0x648   : > { %v696_v23 = vpop.permute.xlu0 %695 }
 0x649   : > { %v703_v24 = vsub.f32 %v684_v14, %v696_v23 }
 0x64b   : > { %v705_v25 = vmul.f32 1.442695, %v703_v24 }
 0x64d   : > { %1522 = vpow2.f32 %v705_v25 }
 0x650   : > { %v701_v26 = vpop.permute.xlu0 %700 }
 0x651   : > { %v704_v27 = vsub.f32 %v685_v13, %v701_v26 }
 0x653   : > { %v1523_v28 = vpop.eup %1522  ;;  %v707_v17 = vmul.f32 1.442695, %v704_v27 }
 0x654   : > { %731 = vmatmul.f32.vlgmr.msrb.gmra.mxu0 %v1523_v28 }
 0x655   : > { %1524 = vpow2.f32 %v707_v17 }
 0x656   : > { %1526 = vpow2.f32 %v711_v31 }
 0x657   : > { %1528 = vpow2.f32 %v713_v32 }
 0x65b   : > { %v1525_v29 = vpop.eup %1524 }
 0x65c   : > { %734 = vmatmul.f32.gmra.mxu0 %v1525_v29  ;;  %v1527_v33 = vpop.eup %1526 }
 0x65d   : > { %v1529_v36 = vpop.eup %1528 }
 0x6d1   : > { %v732_v34 = vpop.f32.mrf.mxu0 }
 0x6d2   : > { %v733_v35 = vadd.f32 %v1527_v33, %v732_v34 }
 0x6d4   : > { %1530 = vlog2.f32 %v733_v35 }
 0x6d9   : > { %v735_v37 = vpop.f32.mrf.mxu0 }
 0x6da   : > { %v1531_v38 = vpop.eup %1530  ;;  %v736_v39 = vadd.f32 %v1529_v36, %v735_v37 }
 0x6db   : > { %v739_v40 = vmul.f32 0.6931472, %v1531_v38 }
 0x6dc   : > { %1532 = vlog2.f32 %v736_v39 }
 0x6dd   : > { %v1872_v41 = vadd.f32 %v739_v40, %v691_v19 }
 0x6df   : > { %746 = vperm.xlu2 %1476, %v1872_v41  }
 0x6e2   : > { %v1533_v42 = vpop.eup %1532 }
 0x6e3   : > { %v741_v43 = vmul.f32 0.6931472, %v1533_v42 }
 0x6e5   : > { %v743_v44 = vadd.f32 %v741_v43, %v692_v22 }
 0x6e7   : > { %751 = vperm.xlu0 %1475, %v743_v44  }
 0x739   : > { %v747_v45 = vpop.permute.xlu2 %746 }
 0x73a   : > { %v754_v47 = vsub.f32 %v684_v14, %v747_v45  ;;  %v1903_v14 = vsub.f32 %v1863_v15, %v1872_v41 }
 0x759   : > { %v752_v46 = vpop.permute.xlu0 %751 }
 0x75a   : > { %v755_v48 = vsub.f32 %v685_v13, %v752_v46  ;;  %v1899_v13 = vsub.f32 %v1867_v21, %v743_v44 }
 0x75c   : > { %v758_v49 = vmax.f32 %v754_v47, %v755_v48 }
 0x75e   : > { %v759_v50 = vrot.slane %v758_v49, 4 }
 0x760   : > { %v760_v51 = vmax.f32 %v758_v49, %v759_v50 }
 0x762   : > { %v761_v52 = vrot.slane %v760_v51, 2 }
 0x764   : > { %v762_v53 = vmax.f32 %v760_v51, %v761_v52 }
 0x766   : > { %v763_v54 = vrot.slane %v762_v53, 1 }
 0x768   : > { %v764_v56 = vmax.f32 %v762_v53, %v763_v54 }
 0x76a   : > { %v765_v58 = vmax.f32 %v764_v56, %v1876_v55 }
 0x76c   : > { %v766_v59 = vperm.slane %v765_v58, 0  ;;  %v773_v57 = vsub.f32 %v1876_v55, %v765_v58 }
 0x76e   : > { %v767_v60 = vsub.f32 %v754_v47, %v766_v59  ;;  %v768_v61 = vsub.f32 %v755_v48, %v766_v59  ;;  %v774_v2 = vmul.f32 1.442695, %v773_v57 }
 0x770   : > { %v771_v62 = vmul.f32 1.442695, %v768_v61  ;;  %v769_v63 = vmul.f32 1.442695, %v767_v60 }
 0x772   : > { %1534 = vpow2.f32 %v771_v62 }
 0x773   : > { %1536 = vpow2.f32 %v769_v63 }
 0x774   : > { %1538 = vpow2.f32 %v774_v2 }
 0x778   : > { %v1535_v0 = vpop.eup %1534 }
 0x779   : > { %790 = vmatpush.msra.mxu2 %v1535_v0  ;;  %v1537_v1 = vpop.eup %1536 }
 0x77a   : > { %v1539_v3 = vpop.eup %1538 }
 0x77b   : > { %791 = vmatpush.msra.mxu2 %v1537_v1 }
 0x77c   : > { %1415 = vmatmul.msk.f32.vlgmr.msra.gmra.mxu2 %vm540_vm1, %v1657_v9 }
 0x77d   : > { %831 = vmatpush.msrb.mxu2 %v1657_v9 }
 0x77f   : > { %832 = vmatpush.msrb.mxu2 %v1657_v9 }
 0x781   : > { %833 = vmatpush.msrb.mxu2 %v1657_v9 }
 0x783   : > { %834 = vmatpush.msrb.mxu2 %v1657_v9 }
 0x785   : > { %835 = vmatpush.msrb.mxu2 %v1657_v9 }
 0x787   : > { %836 = vmatpush.msrb.mxu2 %v1657_v9 }
 0x789   : > { %837 = vmatpush.msrb.mxu2 %v1657_v9 }
 0x78b   : > { %838 = vmatpush.msrb.mxu2 %v1657_v9 }
 0x78d   : > { %839 = vmatpush.msrb.mxu2 %v1657_v9 }
 0x78f   : > { %840 = vmatpush.msrb.mxu2 %v1657_v9 }
 0x791   : > { %841 = vmatpush.msrb.mxu2 %v1657_v9 }
 0x793   : > { %842 = vmatpush.msrb.mxu2 %v1657_v9 }
 0x795   : > { %843 = vmatpush.msrb.mxu2 %v1657_v9 }
 0x797   : > { %844 = vmatpush.msrb.mxu2 %v1657_v9 }
 0x799   : > { %845 = vmatpush.msrb.mxu2 %v1657_v9 }
 0x79b   : > { %846 = vmatpush.msrb.mxu2 %v1657_v9 }
 0x7ff   : > { %v793_v4 = vpop.f32.mrf.mxu2 }
 0x800   : > { %v794_v5 = vadd.f32 %v1539_v3, %v793_v4 }
 0x802   : > { %1540 = vlog2.f32 %v794_v5 }
 0x808   : > { %v1541_v6 = vpop.eup %1540 }
 0x809   : > { %v797_v7 = vmul.f32 0.6931472, %v1541_v6 }
 0x80b   : > { %v798_v8 = vadd.f32 %v797_v7, %v765_v58 }
 0x80d   : > { %v799_v10 = vperm.slane %v798_v8, 0  ;;  %v1910_v53 = vsub.f32 %v1876_v55, %v798_v8 }
 0x80f   : > { %v801_v11 = vsub.f32 %v755_v48, %v799_v10  ;;  %v800_v12 = vsub.f32 %v754_v47, %v799_v10 }
 0x811   : > { %805 = vmax.xlane.f32.xlu0 %v801_v11  ;;  %803 = vmax.xlane.f32.xlu1 %v800_v12 }
 0x884   : > { %v806_v16 = vpop.xlane.xlu0 %805  ;;  %v804_v19 = vpop.xlane.xlu1 %803 }
 0x885   : > { %v808_v20 = vmax.f32 %v806_v16, %v1899_v13  ;;  %v807_v22 = vmax.f32 %v804_v19, %v1903_v14 }
 0x887   : > { %811 = vperm.xlu1 %1477, %v807_v22   ;;  %816 = vperm.xlu2 %1476, %v808_v20   ;;  %v825_v17 = vsub.f32 %v1903_v14, %v807_v22  ;;  %v826_v30 = vsub.f32 %v1899_v13, %v808_v20 }
 0x889   : > { %v827_v29 = vmul.f32 1.442695, %v825_v17  ;;  %v829_v31 = vmul.f32 1.442695, %v826_v30 }
 0x8e1   : > { %v817_v25 = vpop.permute.xlu2 %816 }
 0x8e2   : > { %v820_v27 = vsub.f32 %v801_v11, %v817_v25 }
 0x8e4   : > { %v823_v21 = vmul.f32 1.442695, %v820_v27 }
 0x8f9   : > { %v812_v23 = vpop.permute.xlu1 %811 }
 0x8fa   : > { %v819_v24 = vsub.f32 %v800_v12, %v812_v23 }
 0x8fc   : > { %v821_v26 = vmul.f32 1.442695, %v819_v24 }
 0x8fe   : > { %1542 = vpow2.f32 %v821_v26 }
 0x8ff   : > { %1544 = vpow2.f32 %v823_v21 }
 0x900   : > { %1546 = vpow2.f32 %v827_v29 }
 0x901   : > { %1548 = vpow2.f32 %v829_v31 }
 0x904   : > { %v1543_v28 = vpop.eup %1542 }
 0x905   : > { %847 = vmatmul.f32.vlgmr.msrb.gmra.mxu2 %v1543_v28  ;;  %v1545_v15 = vpop.eup %1544 }
 0x906   : > { %v1547_v18 = vpop.eup %1546 }
 0x907   : > { %v1549_v34 = vpop.eup %1548 }
 0x90d   : > { %850 = vmatmul.f32.gmra.mxu2 %v1545_v15 }
 0x988   : > { %v848_v32 = vpop.f32.mrf.mxu2 }
 0x989   : > { %v849_v33 = vadd.f32 %v1547_v18, %v848_v32 }
 0x98b   : > { %1550 = vlog2.f32 %v849_v33 }
 0x990   : > { %v851_v35 = vpop.f32.mrf.mxu2 }
 0x991   : > { %v1551_v36 = vpop.eup %1550  ;;  %v852_v37 = vadd.f32 %v1549_v34, %v851_v35 }
 0x992   : > { %v855_v38 = vmul.f32 0.6931472, %v1551_v36 }
 0x993   : > { %1552 = vlog2.f32 %v852_v37 }
 0x994   : > { %v858_v39 = vadd.f32 %v855_v38, %v807_v22 }
 0x996   : > { %862 = vperm.xlu2 %1476, %v858_v39  }
 0x999   : > { %v1553_v40 = vpop.eup %1552 }
 0x99a   : > { %v857_v41 = vmul.f32 0.6931472, %v1553_v40 }
 0x99c   : > { %v859_v42 = vadd.f32 %v857_v41, %v808_v20 }
 0x99e   : > { %867 = vperm.xlu2 %1476, %v859_v42   ;;  %v873_v20 = vsub.f32 %v1899_v13, %v859_v42 }
 0x9f0   : > { %v863_v43 = vpop.permute.xlu2 %862 }
 0x9f1   : > { %v870_v45 = vsub.f32 %v800_v12, %v863_v43 }
 0x9f8   : > { %v868_v44 = vpop.permute.xlu2 %867 }
 0x9f9   : > { %v871_v46 = vsub.f32 %v801_v11, %v868_v44  ;;  %v872_v11 = vsub.f32 %v1903_v14, %v858_v39 }
 0x9fb   : > { %v874_v47 = vmax.f32 %v870_v45, %v871_v46 }
 0x9fd   : > { %v875_v48 = vrot.slane %v874_v47, 4 }
 0x9ff   : > { %v876_v49 = vmax.f32 %v874_v47, %v875_v48  ;;  %v407_v47 = vld [vmem:[%s1925_s21 + $0x70] sm:$0xff] }
 0xa01   : > { %v877_v50 = vrot.slane %v876_v49, 2 }
 0xa03   : > { %v878_v51 = vmax.f32 %v876_v49, %v877_v50 }
 0xa05   : > { %v879_v52 = vrot.slane %v878_v51, 1 }
 0xa07   : > { %v880_v54 = vmax.f32 %v878_v51, %v879_v52 }
 0xa09   : > { %v881_v56 = vmax.f32 %v880_v54, %v1910_v53 }
 0xa0b   : > { %v882_v58 = vperm.slane %v881_v56, 0  ;;  %v889_v55 = vsub.f32 %v1910_v53, %v881_v56 }
 0xa0d   : > { %v883_v59 = vsub.f32 %v870_v45, %v882_v58  ;;  %v884_v60 = vsub.f32 %v871_v46, %v882_v58  ;;  %v890_v1 = vmul.f32 1.442695, %v889_v55  ;;  %v406_v55 = vld [vmem:[%s1925_s21 + $0x68] sm:$0xff] }
 0xa0f   : > { %v887_v61 = vmul.f32 1.442695, %v884_v60  ;;  %v885_v62 = vmul.f32 1.442695, %v883_v59 }
 0xa11   : > { %1554 = vpow2.f32 %v887_v61 }
 0xa12   : > { %1556 = vpow2.f32 %v885_v62 }
 0xa13   : > { %1558 = vpow2.f32 %v890_v1  ;;  %v405_v1 = vld [vmem:[%s1925_s21 + $0x60] sm:$0xff] }
 0xa17   : > { %v1555_v63 = vpop.eup %1554 }
 0xa18   : > { %906 = vmatpush.msra.mxu2 %v1555_v63  ;;  %v1557_v0 = vpop.eup %1556 }
 0xa19   : > { %v1559_v57 = vpop.eup %1558 }
 0xa1a   : > { %907 = vmatpush.msra.mxu2 %v1557_v0 }
 0xa1b   : > { %1416 = vmatmul.msk.f32.vlgmr.msra.gmra.mxu2 %vm540_vm1, %v1657_v9 }
 0xa9e   : > { %v909_v2 = vpop.f32.mrf.mxu2 }
 0xa9f   : > { %v910_v3 = vadd.f32 %v1559_v57, %v909_v2  ;;  %v404_v57 = vld [vmem:[%s1925_s21 + $0x58] sm:$0xff]  ;;  %v403_v2 = vld [vmem:[%s1925_s21 + $0x50] sm:$0xff] }
 0xaa1   : > { %1560 = vlog2.f32 %v910_v3  ;;  %v402_v3 = vld [vmem:[%s1925_s21 + $0x48] sm:$0xff] }
 0xaa7   : > { %v1561_v4 = vpop.eup %1560 }
 0xaa8   : > { %v913_v5 = vmul.f32 0.6931472, %v1561_v4  ;;  %v401_v4 = vld [vmem:[%s1925_s21 + $0x40] sm:$0xff] }
 0xaaa   : > { %v1916_v6 = vadd.f32 %v913_v5, %v881_v56  ;;  %v400_v5 = vld [vmem:[%s1925_s21 + $0x38] sm:$0xff] }
 0xaac   : > { %v915_v7 = vperm.slane %v1916_v6, 0  ;;  %v918_v54 = vsub.f32 %v1910_v53, %v1916_v6  ;;  %v398_v6 = vld [vmem:[%s1925_s21 + $0x28] sm:$0xff] }
 0xaae   : > { %v917_v8 = vsub.f32 %v871_v46, %v915_v7  ;;  %v916_v10 = vsub.f32 %v870_v45, %v915_v7  ;;  %v408_v46 = vld [vmem:[%s1925_s21 + $0x78] sm:$0xff]  ;;  %v397_v7 = vld [vmem:[%s1925_s21 + $0x20] sm:$0xff] }
 0xaaf   : > { %1038 = vmatpush.msrb.mxu1 %v408_v46 }
 0xab0   : > { %921 = vmax.xlane.f32.xlu2 %v917_v8  ;;  %919 = vmax.xlane.f32.xlu1 %v916_v10 }
 0xab1   : > { %1039 = vmatpush.msrb.mxu1 %v407_v47 }
 0xab3   : > { %1040 = vmatpush.msrb.mxu1 %v406_v55 }
 0xab5   : > { %1041 = vmatpush.msrb.mxu1 %v405_v1 }
 0xab7   : > { %1042 = vmatpush.msrb.mxu1 %v404_v57 }
 0xab9   : > { %1043 = vmatpush.msrb.mxu1 %v403_v2 }
 0xabb   : > { %1044 = vmatpush.msrb.mxu1 %v402_v3 }
 0xabd   : > { %1045 = vmatpush.msrb.mxu1 %v401_v4 }
 0xabf   : > { %1046 = vmatpush.msrb.mxu1 %v400_v5 }
 0xb23   : > { %v920_v12 = vpop.xlane.xlu1 %919  ;;  %v922_v19 = vpop.xlane.xlu2 %921 }
 0xb24   : > { %v923_v16 = vmax.f32 %v920_v12, %v872_v11  ;;  %v924_v22 = vmax.f32 %v922_v19, %v873_v20  ;;  %v394_v12 = vld [vmem:[%s1925_s21 + $0x8] sm:$0xff]  ;;  %v393_v19 = vld [vmem:[%s1925_s21] sm:$0xff] }
 0xb26   : > { %927 = vperm.xlu0 %1475, %v923_v16   ;;  %v941_v14 = vsub.f32 %v872_v11, %v923_v16  ;;  %v942_v29 = vsub.f32 %v873_v20, %v924_v22  ;;  %v395_v11 = vld [vmem:[%s1925_s21 + $0x10] sm:$0xff] }
 0xb28   : > { %v943_v17 = vmul.f32 1.442695, %v941_v14  ;;  %v945_v30 = vmul.f32 1.442695, %v942_v29 }
 0xb2e   : > { %932 = vperm.xlu0 %1475, %v924_v22  }
 0xb98   : > { %v928_v23 = vpop.permute.xlu0 %927 }
 0xb99   : > { %v935_v24 = vsub.f32 %v916_v10, %v928_v23 }
 0xb9b   : > { %v937_v25 = vmul.f32 1.442695, %v935_v24 }
 0xb9d   : > { %1562 = vpow2.f32 %v937_v25 }
 0xba0   : > { %v933_v26 = vpop.permute.xlu0 %932 }
 0xba1   : > { %v936_v27 = vsub.f32 %v917_v8, %v933_v26 }
 0xba3   : > { %v1563_v21 = vpop.eup %1562  ;;  %v939_v28 = vmul.f32 1.442695, %v936_v27 }
 0xba4   : > { %963 = vmatmul.f32.vlgmr.msrb.gmra.mxu3 %v1563_v21 }
 0xba5   : > { %1564 = vpow2.f32 %v939_v28 }
 0xba6   : > { %1566 = vpow2.f32 %v943_v17 }
 0xba7   : > { %1568 = vpow2.f32 %v945_v30  ;;  %v1658_v30 = vmov 3  }
 0xba8   : > { %1478 = vset.pattern.permute.xlu2 %v1658_v30 }
 0xbab   : > { %v1565_v15 = vpop.eup %1564 }
 0xbac   : > { %966 = vmatmul.f32.gmra.mxu3 %v1565_v15  ;;  %v1567_v13 = vpop.eup %1566 }
 0xbad   : > { %v1569_v32 = vpop.eup %1568 }
 0xc27   : > { %v964_v31 = vpop.f32.mrf.mxu3 }
 0xc28   : > { %v965_v18 = vadd.f32 %v1567_v13, %v964_v31 }
 0xc2a   : > { %1570 = vlog2.f32 %v965_v18 }
 0xc2f   : > { %v967_v33 = vpop.f32.mrf.mxu3 }
 0xc30   : > { %v1571_v34 = vpop.eup %1570  ;;  %v968_v35 = vadd.f32 %v1569_v32, %v967_v33 }
 0xc31   : > { %v971_v36 = vmul.f32 0.6931472, %v1571_v34 }
 0xc32   : > { %1572 = vlog2.f32 %v968_v35 }
 0xc33   : > { %v974_v37 = vadd.f32 %v971_v36, %v923_v16 }
 0xc35   : > { %978 = vperm.xlu0 %1475, %v974_v37  }
 0xc38   : > { %v1573_v38 = vpop.eup %1572 }
 0xc39   : > { %v973_v39 = vmul.f32 0.6931472, %v1573_v38 }
 0xc3b   : > { %v975_v40 = vadd.f32 %v973_v39, %v924_v22 }
 0xc3d   : > { %983 = vperm.xlu1 %1477, %v975_v40   ;;  %1479 = vset.pattern.permute.xlu0 %v1658_v30 }
 0xc45   : > { %1480 = vset.pattern.permute.xlu1 %v1658_v30 }
 0xca7   : > { %v979_v41 = vpop.permute.xlu0 %978 }
 0xca8   : > { %v1927_v43 = vsub.f32 %v916_v10, %v979_v41  ;;  %v396_v10 = vld [vmem:[%s1925_s21 + $0x18] sm:$0xff] }
 0xcaf   : > { %v984_v42 = vpop.permute.xlu1 %983 }
 0xcb0   : > { %v1929_v44 = vsub.f32 %v917_v8, %v984_v42 }
 0xcb2   : > { %v988_v45 = vmax.f32 %v1927_v43, %v1929_v44 }
 0xcb4   : > { %v989_v48 = vrot.slane %v988_v45, 4 }
 0xcb6   : > { %v990_v49 = vmax.f32 %v988_v45, %v989_v48 }
 0xcb8   : > { %v991_v50 = vrot.slane %v990_v49, 2 }
 0xcba   : > { %v992_v51 = vmax.f32 %v990_v49, %v991_v50 }
 0xcbc   : > { %v993_v52 = vrot.slane %v992_v51, 1 }
 0xcbe   : > { %v994_v56 = vmax.f32 %v992_v51, %v993_v52 }
 0xcc0   : > { %v995_v58 = vmax.f32 %v994_v56, %v918_v54 }
 0xcc2   : > { %v996_v59 = vperm.slane %v995_v58, 0  ;;  %v1003_v8 = vsub.f32 %v918_v54, %v995_v58 }
 0xcc4   : > { %v997_v60 = vsub.f32 %v1927_v43, %v996_v59  ;;  %v998_v61 = vsub.f32 %v1929_v44, %v996_v59  ;;  %v1004_v16 = vmul.f32 1.442695, %v1003_v8 }
 0xcc6   : > { %v1001_v62 = vmul.f32 1.442695, %v998_v61  ;;  %v999_v63 = vmul.f32 1.442695, %v997_v60 }
 0xcc8   : > { %1574 = vpow2.f32 %v1001_v62 }
 0xcc9   : > { %1576 = vpow2.f32 %v999_v63 }
 0xcca   : > { %1578 = vpow2.f32 %v1004_v16  ;;  %v392_v16 = vld [vmem:[%s372_s14 + $0x8] sm:$0xff] }
 0xcce   : > { %v1575_v0 = vpop.eup %1574 }
 0xccf   : > { %1020 = vmatpush.msra.mxu0 %v1575_v0  ;;  %v1577_v53 = vpop.eup %1576 }
 0xcd0   : > { %v1579_v20 = vpop.eup %1578 }
 0xcd1   : > { %1021 = vmatpush.msra.mxu0 %v1577_v53 }
 0xcd2   : > { %1417 = vmatmul.msk.f32.vlgmr.msra.gmra.mxu0 %vm540_vm1, %v1657_v9  ;;  %v399_v9 = vld [vmem:[%s1925_s21 + $0x30] sm:$0xff]  ;;  %s1245_s21 = scalar_lea.hbm %s2030_s6, %s1429_s13 }
 0xcd3   : > { %1047 = vmatpush.msrb.mxu1 %v399_v9  ;;  %s1248_s8 = sshll.u32 %s1245_s21, 4  ;;  %s1249_s8 = int_to_ptr.hbm [resolvable:$true] %s1248_s8 }
 0xcd5   : > { %1048 = vmatpush.msrb.mxu1 %v398_v6 }
 0xcd7   : > { %1049 = vmatpush.msrb.mxu1 %v397_v7 }
 0xcd9   : > { %1050 = vmatpush.msrb.mxu1 %v396_v10 }
 0xcdb   : > { %1051 = vmatpush.msrb.mxu1 %v395_v11 }
 0xcdd   : > { %1052 = vmatpush.msrb.mxu1 %v394_v12 }
 0xcdf   : > { %1053 = vmatpush.msrb.mxu1 %v393_v19  ;;  %v391_v19 = vld [vmem:[%s372_s14] sm:$0xff]  ;;  %s1606_s14 = sshra.s32 %s1249_s8, 4  ;;  %s1607_s14 = int_to_ptr.hbm [resolvable:$true] %s1606_s14 }
 0xce0   : > { %s1608_s18 = scalar_lea.hbm %s1607_s14, 16  ;;  %p1613_p0 = scmp.lt.s32.totalorder %s1607_s14, %s2030_s6 }
 0xce1   : > { %p1609_p11 = scmp.ne.s32.totalorder %s1607_s14, %s1608_s18  ;;  %p1614_p1 = scmp.lt.s32.totalorder %s1612_s16, %s1608_s18 }
 0xce3   : > { %p1610_p12 = pnand %p1609_p11, %p1739_p5  ;;  %p1615_p2 = por %p1614_p1, %p1613_p0 }
 0xce5   : > { %p1611_p13 = pneg %p1610_p12 }
 0xce7   : > { %p1616_p3 = pnand %p1615_p2, %p1611_p13 }
 0xd4f   : > { %v1023_v22 = vpop.f32.mrf.mxu0 }
 0xd50   : > { %v1024_v23 = vadd.f32 %v1579_v20, %v1023_v22 }
 0xd52   : > { %1580 = vlog2.f32 %v1024_v23 }
 0xd58   : > { %v1581_v24 = vpop.eup %1580 }
 0xd59   : > { %v1027_v25 = vmul.f32 0.6931472, %v1581_v24 }
 0xd5b   : > { %v1028_v26 = vadd.f32 %v1027_v25, %v995_v58 }
 0xd5d   : > { %v1029_v27 = vperm.slane %v1028_v26, 0 }
 0xd5f   : > { %v1030_v21 = vsub.f32 %v1927_v43, %v1029_v27  ;;  %v1031_v28 = vsub.f32 %v1929_v44, %v1029_v27 }
 0xd61   : > { %v1032_v15 = vmul.f32 1.442695, %v1030_v21  ;;  %v1034_v14 = vmul.f32 1.442695, %v1031_v28 }
 0xd63   : > { %1582 = vpow2.f32 %v1032_v15 }
 0xd64   : > { %1584 = vpow2.f32 %v1034_v14 }
 0xd69   : > { %v1583_v17 = vpop.eup %1582 }
 0xd6a   : > { %v1585_v29 = vpop.eup %1584  ;;  %1054 = vmatmul.f32.vlgmr.msrb.gmra.mxu1 %v1583_v17  ;;  %1036 = vst [vmem:[%s1960_s29] sm:$0xff] %v1583_v17 }
 0xd6b   : > { %1037 = vst [vmem:[%s1960_s29 + $0x8] sm:$0xff] %v1585_v29 }
 0xd72   : > { %1057 = vmatmul.f32.gmra.mxu1 %v1585_v29 }
 0xde7   : > { %v1964_v13 = vpop.f32.mrf.mxu1 }
 0xde8   : > { %v1061_v31 = vadd.f32 1e-06, %v1964_v13  ;;  %v1104_v33 = vsel %vm1103_vm2, %v1964_v13, 0.0 }
 0xdea   : > { %1065 = vperm.xlu2 %1478, %v1061_v31  }
 0xdef   : > { %v1967_v18 = vpop.f32.mrf.mxu1 }
 0xdf0   : > { %v1062_v32 = vadd.f32 1e-06, %v1967_v18  ;;  %v1105_v34 = vsel %vm1103_vm2, %v1967_v18, 0.0 }
 0xdf1   : > { %v1106_v35 = vadd.f32 %v1105_v34, %v1104_v33 }
 0xdf2   : > { %1070 = vperm.xlu0 %1479, %v1062_v32  }
 0xdf3   : > { %v1107_v36 = vrot.slane %v1106_v35, 4 }
 0xdf5   : > { %v1108_v37 = vadd.f32 %v1107_v36, %v1106_v35 }
 0xdf7   : > { %v1109_v38 = vrot.slane %v1108_v37, 2 }
 0xdf9   : > { %v1110_v39 = vadd.f32 %v1109_v38, %v1108_v37 }
 0xdfb   : > { %v1111_v40 = vrot.slane %v1110_v39, 1 }
 0xdfd   : > { %v1112_v41 = vadd.f32 %v1111_v40, %v1110_v39 }
 0xdff   : > { %v1113_v42 = vadd.f32 1e-06, %v1112_v41 }
 0xe01   : > { %1586 = vrcp.f32 %v1113_v42  ;;  %v1125_v46 = vand.u32 2147483648, %v1113_v42  ;;  %v1123_v48 = vand.u32 2147483647, %v1113_v42  ;;  %vm1119_vm4 = vweird.f32 %v1113_v42 }
 0xe03   : > { %v1126_v50 = vor.u32 1.1754944e-38, %v1125_v46  ;;  %vm1124_vm6 = vcmp.eq.f32.partialorder %v1123_v48, 8.507059e+37 }
 0xe07   : > { %v1587_v43 = vpop.eup %1586 }
 0xe08   : > { %v1115_v44 = vmul.f32 %v1587_v43, %v1113_v42  ;;  %vm1120_vm3 = vweird.f32 %v1587_v43 }
 0xe09   : > { %vm1121_vm5 = vmor %vm1119_vm4, %vm1120_vm3 }
 0xe0a   : > { %v1116_v45 = vsub.f32 1.0, %v1115_v44 }
 0xe0c   : > { %v1117_v47 = vmul.f32 %v1587_v43, %v1116_v45 }
 0xe0e   : > { %v1118_v49 = vadd.f32 %v1587_v43, %v1117_v47 }
 0xe10   : > { %v1122_v51 = vsel %vm1121_vm5, %v1587_v43, %v1118_v49 }
 0xe11   : > { %v1127_v52 = vsel %vm1124_vm6, %v1126_v50, %v1122_v51 }
 0xe12   : > { %v1129_v54 = vmul.f32 %v1127_v52, %v1967_v18  ;;  %v1128_v56 = vmul.f32 %v1127_v52, %v1964_v13 }
 0xe14   : > { %1137 = vperm.xlu1 %1480, %v1129_v54   ;;  %1132 = vperm.xlu0 %1479, %v1128_v56  }
 0xe44   : > { %v1066_v58 = vpop.permute.xlu2 %1065 }
 0xe45   : > { %1588 = vrcp.f32 %v1066_v58  ;;  %vm1078_vm9 = vweird.f32 %v1066_v58  ;;  %v1084_v3 = vand.u32 2147483648, %v1066_v58  ;;  %v1082_v9 = vand.u32 2147483647, %v1066_v58 }
 0xe47   : > { %v1085_v8 = vor.u32 1.1754944e-38, %v1084_v3  ;;  %vm1083_vm14 = vcmp.eq.f32.partialorder %v1082_v9, 8.507059e+37 }
 0xe4b   : > { %v1589_v60 = vpop.eup %1588 }
 0xe4c   : > { %v1074_v62 = vmul.f32 %v1589_v60, %v1066_v58  ;;  %vm1079_vm7 = vweird.f32 %v1589_v60 }
 0xe4d   : > { %vm1080_vm11 = vmor %vm1078_vm9, %vm1079_vm7 }
 0xe4e   : > { %v1075_v0 = vsub.f32 1.0, %v1074_v62 }
 0xe50   : > { %v1076_v55 = vmul.f32 %v1589_v60, %v1075_v0 }
 0xe52   : > { %v1077_v2 = vadd.f32 %v1589_v60, %v1076_v55 }
 0xe54   : > { %v1081_v7 = vsel %vm1080_vm11, %v1589_v60, %v1077_v2 }
 0xe55   : > { %v1086_v12 = vsel %vm1083_vm14, %v1085_v8, %v1081_v7 }
 0xe56   : > { %v1087_v22 = vmul.f32 %v1086_v12, %v1964_v13 }
 0xe64   : > { %v1071_v59 = vpop.permute.xlu0 %1070 }
 0xe65   : > { %1590 = vrcp.f32 %v1071_v59  ;;  %v1099_v4 = vand.u32 2147483648, %v1071_v59  ;;  %vm1093_vm10 = vweird.f32 %v1071_v59  ;;  %v1097_v5 = vand.u32 2147483647, %v1071_v59 }
 0xe67   : > { %v1100_v10 = vor.u32 1.1754944e-38, %v1099_v4  ;;  %vm1098_vm13 = vcmp.eq.f32.partialorder %v1097_v5, 8.507059e+37 }
 0xe6b   : > { %v1591_v61 = vpop.eup %1590 }
 0xe6c   : > { %v1089_v63 = vmul.f32 %v1591_v61, %v1071_v59  ;;  %vm1094_vm8 = vweird.f32 %v1591_v61 }
 0xe6d   : > { %vm1095_vm12 = vmor %vm1093_vm10, %vm1094_vm8 }
 0xe6e   : > { %v1090_v53 = vsub.f32 1.0, %v1089_v63 }
 0xe70   : > { %v1091_v1 = vmul.f32 %v1591_v61, %v1090_v53 }
 0xe72   : > { %v1092_v57 = vadd.f32 %v1591_v61, %v1091_v1 }
 0xe74   : > { %v1096_v6 = vsel %vm1095_vm12, %v1591_v61, %v1092_v57 }
 0xe75   : > { %v1101_v11 = vsel %vm1098_vm13, %v1100_v10, %v1096_v6 }
 0xe76   : > { %v1102_v20 = vmul.f32 %v1101_v11, %v1967_v18 }
 0xe86   : > { %v1138_v23 = vpop.permute.xlu1 %1137  ;;  %v1133_v24 = vpop.permute.xlu0 %1132 }
 0xe87   : > { %v1141_v25 = vmul.f32 %v1138_v23, %v392_v16  ;;  %v1153_v26 = vmul.f32 %v1138_v23, %v1102_v20  ;;  %v1140_v27 = vmul.f32 %v1133_v24, %v391_v19  ;;  %v1152_v21 = vmul.f32 %v1133_v24, %v1087_v22 }
 0xe89   : > { %v1144_v28 = vsel %vm1142_vm15, %v1141_v25, 0.0  ;;  %v1155_v15 = vsel %vm1142_vm15, %v1153_v26, 0.0  ;;  %v1143_v14 = vsel %vm1142_vm15, %v1140_v27, 0.0  ;;  %v1154_v17 = vsel %vm1142_vm15, %v1152_v21, 0.0 }
 0xe8a   : > { %v1145_v29 = vadd.f32 %v1144_v28, %v1143_v14  ;;  %v1156_v30 = vadd.f32 %v1155_v15, %v1154_v17 }
 0xe8c   : > { %v1146_v31 = vrot.slane %v1145_v29, 4  ;;  %v1157_v32 = vrot.slane %v1156_v30, 4 }
 0xe8e   : > { %v1147_v33 = vadd.f32 %v1146_v31, %v1145_v29  ;;  %v1158_v18 = vadd.f32 %v1157_v32, %v1156_v30 }
 0xe90   : > { %v1148_v34 = vrot.slane %v1147_v33, 2  ;;  %v1159_v13 = vrot.slane %v1158_v18, 2 }
 0xe92   : > { %v1149_v35 = vadd.f32 %v1148_v34, %v1147_v33  ;;  %v1160_v36 = vadd.f32 %v1159_v13, %v1158_v18 }
 0xe94   : > { %v1150_v37 = vrot.slane %v1149_v35, 1  ;;  %v1161_v38 = vrot.slane %v1160_v36, 1 }
 0xe96   : > { %v1151_v39 = vadd.f32 %v1150_v37, %v1149_v35  ;;  %v1162_v40 = vadd.f32 %v1161_v38, %v1160_v36 }
 0xe98   : > { %v1163_v41 = vsub.f32 %v391_v19, %v1151_v39  ;;  %v1166_v42 = vsub.f32 %v1102_v20, %v1162_v40  ;;  %1227 = vst.msk [vmem:[%s1984_s17 + $0x3] sm:$0x1] %vm1226_vm0, %v1151_v39  ;;  %v1165_v44 = vsub.f32 %v1087_v22, %v1162_v40  ;;  %v1164_v45 = vsub.f32 %v392_v16, %v1151_v39 }
 0xe99   : > { %1228 = vst.msk [vmem:[%s1984_s17 + $0x4] sm:$0x1] %vm1226_vm0, %v1162_v40 }
 0xe9a   : > { %v1167_v43 = vmul.f32 %v1163_v41, %v1133_v24  ;;  %1218 = vmatpush.msrb.mxu0 %v1166_v42  ;;  %v1168_v46 = vmul.f32 %v1164_v45, %v1138_v23 }
 0xe9c   : > { %1219 = vmatpush.msrb.mxu0 %v1165_v44  ;;  %1169 = vxpose.xlu2.b32.start [1/2] (short) (narrow) %v1167_v43, 8 }
 0xea4   : > { %1170 = vxpose.xlu2.b32.end [2/2] (short) (narrow) %v1168_v46, 8 }
 0xf35   : > { %v1185_v47 = vpop.trf.xlu2 }
 0xf36   : > { %1418 = vmatmul.msk.f32.vlgmr.msrb.gmra.mxu0 %vm540_vm1, %v1185_v47 }
 0xf37   : > { %1619 = shalt.err (!%p1616_p3)
}
 0xf38   : > { %s1659_s22 = smov 128   ;;  %s1660_s19 = smov 8   ;;  %vm1224_vm1 = vcmask 18432  }
 0xf39   : > { %1430 = dma.vmem_to_hbm [thread:$0]  (%p1739_p5), %s1247_s23, 256, %s1249_s8, %s1230_s9, %s1659_s22, %s1659_s22, %s1660_s19  }
 0xfb3   : > { %v1221_v48 = vpop.f32.mrf.mxu0 }
 0xfb4   : > { %1225 = vst.msk [vmem:[%s1984_s17] sm:$0x7] %vm1224_vm1, %v1221_v48 }
 0xfb5 PF: > { %p1436_p4 = scmp.ge.s32.totalorder %s1654_s27, 2  ;;  %s1266_s20 = sand.u32 1, %s1642_s24  }
 0xfb6   : > { %s1267_s21 = scalar_lea.sflag [#allocation3], %s1266_s20 }
 0xfb7   : > { %p1433_p7 = pnand %p1436_p4, %p1743_p6 }
 0xfb9   : > { %p1434_p8 = pneg %p1433_p7 }
 0xfbb   : > { %1637 = dma.done.wait (%p1434_p8), %s1267_s21, 256  }
 0xfbc   : > { %1639 = vsyncadd (%p1434_p8), %s1267_s21, 4294967040  ;;  %p18_p5 = scmp.ge.s32.totalorder %s1726_s30, 4   ;;  %s2034_s24 = smov %s1646_s25 }
 0xfbd   : > { %s2035_s25 = smov %s1650_s26  ;;  %s2036_s26 = smov %s1737_s10 }
 0xfbe   : > { %s2037_s27 = smov %s1726_s30  ;;  %20 = sbr.rel (!%p18_p5) target bundleno = 3 (0x3), region = 106 }
 0xfc3   :  { %1280 = vsyncpa [#allocation3], 1 }
 0xfc4   :  { %1282 = vsyncpa [#allocation3 + $0x1], 1 }

// kernel: custom-call.22
= control target key start
LH: loop header
LB: loop body
LE: loop exit
PB: predicated region body
PF: predicated region fallthrough
CT: control target
= control target key end

     0   :  { %s1764_s30 = smov 0   ;;  %s1766_s10 = smov 0   ;;  %s2097_s0 = inlined_call_operand.vmem [shape: f32[2,2,2], index: 0, kind: input, shape index: {}]   ;;  %s2098_s1 = inlined_call_operand.vmem [shape: f32[2,2,2], index: 1, kind: input, shape index: {}]   ;;  %s2099_s2 = inlined_call_operand.vmem [shape: f32[2,2,2], index: 2, kind: input, shape index: {}]   ;;  %s2100_s3 = inlined_call_operand.vmem [shape: f32[2,2,2], index: 3, kind: input, shape index: {}]   ;;  %s2101_s4 = inlined_call_operand.vmem [shape: f32[2,2], index: 4, kind: output, shape index: {0}]   ;;  %s2102_s5 = inlined_call_operand.vmem [shape: f32[2,2], index: 5, kind: output, shape index: {1}]   ;;  %s2103_s6 = inlined_call_operand.vmem [shape: f32[2,2,2], index: 6, kind: output, shape index: {2}]   ;;  %s2104_s7 = inlined_call_operand.vmem [shape: f32[2,2,2], index: 7, kind: output, shape index: {3}]   ;;  %s2105_s8 = inlined_call_operand.vmem [shape: f32[2,2,2], index: 8, kind: output, shape index: {4}]   ;;  %s2106_s9 = inlined_call_operand.vmem [shape: f32[2,2,2], index: 9, kind: output, shape index: {5}]  }
   0x1   :  { %s1768_s11 = smov 0  }
   0x2 LB: > { %s1780_s12 = sadd.s32 4294967295, %s1701_s11   ;;  %s1783_s13 = sadd.s32 1, %s1701_s11   ;;  %s1701_s11 = sphi %s1768_s11, %s2123_s11   ;;  %s1697_s10 = sphi %s1766_s10, %s2122_s10   ;;  %s1693_s30 = sphi %s1764_s30, %s2121_s30  }
   0x3   : > { %s20_s14 = sshrl.u32 %s1701_s11, 3  ;;  %s21_s15 = sshrl.u32 %s1783_s13, 3 }
   0x4   : > { %s22_s16 = ssub.s32 %s20_s14, %s21_s15  ;;  %s25_s17 = sadd.s32 1, %s1697_s10 }
   0x5   : > { %p23_p0 = scmp.eq.s32.totalorder %s22_s16, 0  ;;  %p35_p1 = scmp.ne.s32.totalorder %s1697_s10, %s1693_s30 }
   0x6   : > { %p36_p2 = scmp.eq.s32.totalorder %s1780_s12, 1  ;;  %p1562_p4 = scmp.ge.s32.totalorder %s1701_s11, 2 }
   0x7   : > { %s1792_s18 = scalar_select %p23_p0, %s1697_s10, %s25_s17  }
   0x8   : > { %p1794_p3 = por %p36_p2, %p35_p1  ;;  %86 = sbr.rel (%p1562_p4) target bundleno = 18 (0x12), region = 16 }
   0x9   : > { %2107 = sst [smem:[#allocation33_spill]] %s1792_s18  ;;  %s88_s20 = sand.u32 (!%p1562_p4), 1, %s1701_s11  }
   0xa   : > { %s1564_s21 = sshll.u32 (!%p1562_p4), %s1701_s11, 1  ;;  %s1563_s22 = sshll.u32 (!%p1562_p4), %s88_s20, 1 }
   0xb   : > { %s92_s25 = scalar_lea.vmem (!%p1562_p4), %s2097_s0, %s1564_s21  ;;  %s90_s26 = scalar_lea.vmem (!%p1562_p4), [#allocation1], %s1563_s22 }
   0xc   : > { %s131_s29 = scalar_lea.vmem (!%p1562_p4), %s2098_s1, %s1564_s21  ;;  %s170_s16 = scalar_lea.vmem (!%p1562_p4), %s2099_s2, %s1564_s21 }
   0xd   : > { %v109_v0 = vld [vmem:[%s92_s25] sm:$0x3]  ;;  %s129_s17 = scalar_lea.vmem [#allocation3], %s1563_s22  ;;  %s209_s23 = scalar_lea.vmem %s2100_s3, %s1564_s21 }
   0xe   : > { %110 = vst [vmem:[%s90_s26] sm:$0x3] %v109_v0  ;;  %v148_v1 = vld [vmem:[%s131_s29] sm:$0x3]  ;;  %s168_s24 = scalar_lea.vmem [#allocation5], %s1563_s22  ;;  %s207_s25 = scalar_lea.vmem [#allocation7], %s1563_s22 }
   0xf   : > { %149 = vst [vmem:[%s129_s17] sm:$0x3] %v148_v1  ;;  %v187_v2 = vld [vmem:[%s170_s16] sm:$0x3] }
  0x10   : > { %188 = vst [vmem:[%s168_s24] sm:$0x3] %v187_v2  ;;  %v226_v3 = vld [vmem:[%s209_s23] sm:$0x3] }
  0x11   : > { %227 = vst [vmem:[%s207_s25] sm:$0x3] %v226_v3 }
  0x12 PF: > { %p1571_p5 = scmp.ge.s32.totalorder %s1701_s11, 1  ;;  %p244_p6 = scmp.lt.s32.totalorder %s1701_s11, 3 }
  0x14   : > { %p245_p7 = pnand %p1571_p5, %p244_p6 }
  0x16   : > { %248 = sbr.rel (%p245_p7) target bundleno = 952 (0x3b8), region = 140 }
  0x1b   : > { %s267_s26 = sand.u32 1, %s1780_s12   ;;  %s285_s27 = sand.u32 1, %s1693_s30   ;;  %v345_v4 = vlaneseq  ;;  %v1711_v5 = vmov 0.0  }
  0x1c   : > { %s1817_s28 = sshll.u32 %s267_s26, 1  ;;  %s1819_s18 = sshll.u32 %s285_s27, 1  ;;  %340 = vst [vmem:[#allocation12] sm:$0xff] %v1711_v5 }
  0x1d   : > { %341 = vst [vmem:[#allocation14] sm:$0xff] %v1711_v5  ;;  %v1821_v6 = vand.u32 127, %v345_v4  ;;  %v1823_v7 = vshrl.u32 %v345_v4, 7  ;;  %s269_s11 = scalar_lea.vmem [#allocation1], %s1817_s28  ;;  %s273_s21 = scalar_lea.vmem [#allocation3], %s1817_s28 }
  0x1e   : > { %v312_v8 = vld [vmem:[%s269_s11] sm:$0x3]  ;;  %v316_v9 = vld [vmem:[%s273_s21] sm:$0x3]  ;;  %s277_s30 = scalar_lea.vmem [#allocation5], %s1817_s28  ;;  %s281_s22 = scalar_lea.vmem [#allocation7], %s1817_s28 }
  0x1f   : > { %313 = vst [vmem:[#allocation0] sm:$0x3] %v312_v8  ;;  %v320_v10 = vld [vmem:[%s277_s30] sm:$0x3]  ;;  %v324_v11 = vld [vmem:[%s281_s22] sm:$0x3]  ;;  %v347_v6 = vmov %v1821_v6  ;;  %v350_v7 = vmov %v1823_v7 }
  0x20   : > { %317 = vst [vmem:[#allocation2] sm:$0x3] %v316_v9  ;;  %s328_s29 = smov [#allocation20]  ;;  %s344_s14 = smov [#allocation12]  ;;  %vm354_vm0 = vcmp.eq.s32.totalorder %v350_v7, %v347_v6  ;;  %v360_v6 = vmov %v1821_v6  ;;  %v363_v7 = vmov %v1823_v7  ;;  %vm1451_vm2 = vcmp.lt.s32.totalorder %v1821_v6, 2 }
  0x21   : > { %321 = vst [vmem:[#allocation4] sm:$0x3] %v320_v10  ;;  %s331_s15 = smov [#allocation21]  ;;  %s334_s16 = smov [#allocation22]  ;;  %vm367_vm1 = vcmp.eq.s32.totalorder %v363_v7, %v360_v6  ;;  %v1443_v6 = vmov %v1821_v6  ;;  %v1446_v7 = vmov %v1823_v7 }
  0x22   : > { %325 = vst [vmem:[#allocation6] sm:$0x3] %v324_v11  ;;  %s337_s17 = smov [#allocation23]  ;;  %s357_s20 = smov [#allocation18]  ;;  %v1460_v6 = vmov %v1821_v6  ;;  %v1463_v7 = vmov %v1823_v7  ;;  %vm1456_vm3 = vcmp.eq.s32.totalorder %v1446_v7, %v1443_v6 }
  0x23   : > { %342 = vst [vmem:[#allocation16] sm:$0xff] %v1711_v5  ;;  %v351_v12 = vld [vmem:[%s344_s14] sm:$0x3]  ;;  %s297_s25 = scalar_lea.vmem [#allocation13], %s1817_s28  ;;  %s1447_s21 = smov [#allocation20]  ;;  %v1477_v6 = vmov %v1821_v6  ;;  %v1480_v7 = vmov %v1823_v7 }
  0x24   : > { %343 = vst [vmem:[#allocation18] sm:$0xff] %v1711_v5  ;;  %v355_v16 = vsel %vm354_vm0, 1.0, %v351_v12  ;;  %s1464_s30 = smov [#allocation21]  ;;  %s1481_s22 = smov [#allocation22]  ;;  %v1494_v6 = vmov %v1821_v6  ;;  %v1497_v7 = vmov %v1823_v7 }
  0x25   : > { %356 = vst [vmem:[%s344_s14] sm:$0x3] %v355_v16  ;;  %vm1507_vm4 = vcmp.eq.s32.totalorder %v1497_v7, %v1494_v6 }
  0x26   : > { %v329_v13 = vld [vmem:[#allocation0] sm:$0xff] }
  0x27   : > { %330 = vst [vmem:[%s328_s29] sm:$0xff] %v329_v13  ;;  %v332_v14 = vld [vmem:[#allocation2] sm:$0xff]  ;;  %s1498_s29 = smov [#allocation23] }
  0x28   : > { %333 = vst [vmem:[%s331_s15] sm:$0xff] %v332_v14  ;;  %v335_v15 = vld [vmem:[#allocation4] sm:$0xff] }
  0x29   : > { %336 = vst [vmem:[%s334_s16] sm:$0xff] %v335_v15  ;;  %v338_v17 = vld [vmem:[#allocation6] sm:$0xff] }
  0x2a   : > { %339 = vst [vmem:[%s337_s17] sm:$0xff] %v338_v17 }
  0x2b   : > { %v364_v18 = vld [vmem:[%s357_s20] sm:$0x3] }
  0x2c   : > { %v368_v19 = vsel %vm367_vm1, 1.0, %v364_v18 }
  0x2d   : > { %369 = vst [vmem:[%s357_s20] sm:$0x3] %v368_v19 }
  0x2e   : > { %v1453_v20 = vld [vmem:[%s1447_s21] sm:$0x3] }
  0x2f   : > { %v1470_v21 = vld [vmem:[%s1464_s30] sm:$0x3]  ;;  %v1454_v22 = vsel %vm1451_vm2, %v1453_v20, 0.0 }
  0x30   : > { %v1471_v23 = vsel %vm1451_vm2, %v1470_v21, 0.0  ;;  %v1487_v24 = vld [vmem:[%s1481_s22] sm:$0x3]  ;;  %v1455_v26 = vmul.f32 %v1454_v22, %v1454_v22 }
  0x31   : > { %v1504_v25 = vld [vmem:[%s1498_s29] sm:$0x3]  ;;  %v1472_v27 = vmul.f32 %v1471_v23, %v1471_v23  ;;  %v1488_v28 = vsel %vm1451_vm2, %v1487_v24, 0.0 }
  0x32   : > { %v1505_v29 = vsel %vm1451_vm2, %v1504_v25, 0.0  ;;  %v1489_v30 = vmul.f32 %v1488_v28, %v1488_v28  ;;  %v1457_v33 = vsel %vm1456_vm3, 0.0, %v1455_v26 }
  0x33   : > { %v1474_v31 = vadd.f32 %v1472_v27, %v1455_v26  ;;  %v1506_v32 = vmul.f32 %v1505_v29, %v1505_v29  ;;  %v1473_v35 = vadd.f32 %v1472_v27, %v1457_v33 }
  0x35   : > { %v1491_v34 = vadd.f32 %v1489_v30, %v1474_v31  ;;  %v1490_v37 = vadd.f32 %v1489_v30, %v1473_v35  ;;  %v1508_v38 = vsel %vm1507_vm4, 0.0, %v1506_v32 }
  0x37   : > { %v1510_v36 = vadd.f32 %v1506_v32, %v1491_v34  ;;  %v1509_v39 = vadd.f32 %v1508_v38, %v1490_v37 }
  0x39   : > { %1511 = vadd.xlane.f32.xlu0 %v1510_v36 }
  0x41   : > { %1519 = vadd.xlane.f32.xlu0 %v1509_v39 }
  0xac   : > { %v1512_v40 = vpop.xlane.xlu0 %1511 }
  0xad   : > { %v1513_v41 = vrot.slane %v1512_v40, 4 }
  0xaf   : > { %v1514_v42 = vadd.f32 %v1513_v41, %v1512_v40 }
  0xb1   : > { %v1515_v43 = vrot.slane %v1514_v42, 2 }
  0xb3   : > { %v1516_v47 = vadd.f32 %v1515_v43, %v1514_v42 }
  0xb4   : > { %v1520_v44 = vpop.xlane.xlu0 %1519 }
  0xb5   : > { %v1521_v45 = vrot.slane %v1520_v44, 4  ;;  %v1517_v50 = vrot.slane %v1516_v47, 1 }
  0xb7   : > { %v1522_v46 = vadd.f32 %v1521_v45, %v1520_v44  ;;  %v1518_v53 = vadd.f32 %v1517_v50, %v1516_v47 }
  0xb9   : > { %v1523_v48 = vrot.slane %v1522_v46, 2 }
  0xbb   : > { %v1524_v49 = vadd.f32 %v1523_v48, %v1522_v46 }
  0xbd   : > { %v1525_v51 = vrot.slane %v1524_v49, 1 }
  0xbf   : > { %v1526_v52 = vadd.f32 %v1525_v51, %v1524_v49 }
  0xc1   : > { %1612 = vpush %v1526_v52 }
  0xc2   : > { %1614 = vpush %v1518_v53 }
  0xf2   : > { %s1613_s14 = spop %1612 }
  0xf3   : > { %s1615_s15 = spop %1614 }
  0xf4   : > { %s1529_s16 = smul.f32 1e-10, %s1615_s15 }
  0xf6   : > { %p1530_p8 = scmp.le.f32.partialorder %s1613_s14, %s1529_s16 }
  0xf7   : > { %s1856_s17 = smov (!%p1530_p8), 0  }
  0xf8   : > { %1533 = sbr.rel (%p1530_p8) target bundleno = 906 (0x38a), region = 467 }
  0xfd LB: >> { %s1861_s20 = smov 0   ;;  %s1705_s17 = sphi %s1856_s17, %s2109_s17  }
  0xfe LB: >>> { %s474_s21 = smov [#allocation20]  ;;  %v478_v6 = vmov %v1821_v6  ;;  %v481_v7 = vmov %v1823_v7  ;;  %s494_s30 = smov [#allocation21]  ;;  %s1709_s20 = sphi %s1861_s20, %s473_s20  }
  0xff   : >>> { %v498_v6 = vmov %v1821_v6  ;;  %v501_v7 = vmov %v1823_v7  ;;  %v482_v54 = vld [vmem:[%s474_s21] sm:$0x3]  ;;  %vm485_vm5 = vcmp.eq.s32.totalorder %v481_v7, %v478_v6  ;;  %s514_s22 = smov [#allocation23]  ;;  %s475_s29 = smov [#allocation24] }
 0x100   : >>> { %vm505_vm6 = vcmp.eq.s32.totalorder %v501_v7, %v498_v6  ;;  %v518_v6 = vmov %v1821_v6  ;;  %v521_v7 = vmov %v1823_v7  ;;  %v486_v55 = vsel %vm485_vm5, %v482_v54, 0.0  ;;  %v502_v56 = vld [vmem:[%s494_s30] sm:$0x3]  ;;  %s495_s14 = smov [#allocation25]  ;;  %s515_s15 = smov [#allocation26] }
 0x101   : >>> { %vm525_vm7 = vcmp.eq.s32.totalorder %v521_v7, %v518_v6  ;;  %v487_v57 = vrot.slane %v486_v55, 4  ;;  %v506_v58 = vsel %vm505_vm6, %v502_v56, 0.0  ;;  %v522_v59 = vld [vmem:[%s514_s22] sm:$0x3]  ;;  %s538_s16 = smov [#allocation25]  ;;  %s536_s21 = smov [#allocation24]  ;;  %v627_v6 = vmov %v1821_v6 }
 0x102   : >>> { %v507_v60 = vrot.slane %v506_v58, 4  ;;  %v526_v61 = vsel %vm525_vm7, %v522_v59, 0.0  ;;  %s540_s30 = smov [#allocation26]  ;;  %s615_s22 = smov [#allocation27]  ;;  %v630_v7 = vmov %v1823_v7 }
 0x103   : >>> { %v488_v62 = vadd.f32 %v487_v57, %v486_v55  ;;  %v527_v63 = vrot.slane %v526_v61, 4  ;;  %s1887_s24 = smov [#allocation12]  ;;  %s1889_s23 = smov [#allocation14] }
 0x104   : >>> { %v508_v0 = vadd.f32 %v507_v60, %v506_v58  ;;  %s1894_s11 = smov [#allocation16]  ;;  %s879_s27 = smov [#allocation32] }
 0x105   : >>> { %v489_v1 = vrot.slane %v488_v62, 2  ;;  %v528_v2 = vadd.f32 %v527_v63, %v526_v61  ;;  %s1897_s26 = smov [#allocation18]  ;;  %s473_s20 = sadd.s32 1, %s1709_s20  }
 0x106   : >>> { %v509_v3 = vrot.slane %v508_v0, 2  ;;  %p470_p9 = scmp.ge.s32.totalorder %s473_s20, 3  }
 0x107   : >>> { %v490_v4 = vadd.f32 %v489_v1, %v488_v62  ;;  %v529_v5 = vrot.slane %v528_v2, 2 }
 0x108   : >>> { %v510_v8 = vadd.f32 %v509_v3, %v508_v0 }
 0x109   : >>> { %v491_v9 = vrot.slane %v490_v4, 1  ;;  %v530_v10 = vadd.f32 %v529_v5, %v528_v2 }
 0x10a   : >>> { %v511_v11 = vrot.slane %v510_v8, 1 }
 0x10b   : >>> { %v492_v12 = vadd.f32 %v491_v9, %v490_v4  ;;  %v531_v13 = vrot.slane %v530_v10, 1 }
 0x10c   : >>> { %v512_v14 = vadd.f32 %v511_v11, %v510_v8 }
 0x10d   : >>> { %493 = vst [vmem:[%s475_s29] sm:$0x1] %v492_v12  ;;  %v532_v15 = vadd.f32 %v531_v13, %v530_v10  ;;  %s617_s29 = smov [#allocation28] }
 0x10e   : >>> { %513 = vst [vmem:[%s495_s14] sm:$0x1] %v512_v14  ;;  %s534_s14 = smov [#allocation29] }
 0x10f   : >>> { %533 = vst [vmem:[%s515_s15] sm:$0x1] %v532_v15  ;;  %s535_s15 = smov [#allocation30]  ;;  %s619_s14 = smov %s534_s14 }
 0x110   : >>> { %s621_s15 = smov %s535_s15 }
 0x114   : >>> { %v537_v23 = vld [vmem:[%s536_s21] sm:$0xff]  ;;  %s638_s21 = smov [#allocation30] }
 0x115   : >>> { %v1872_v16 = vld [vmem:[%s538_s16] sm:$0xff]  ;;  %v591_v47 = vand.u32 2147483647, %v537_v23  ;;  %s623_s16 = smov [#allocation29] }
 0x116   : >>> { %v543_v17 = vmul.f32 2.0, %v1872_v16  ;;  %v541_v24 = vld [vmem:[%s540_s30] sm:$0xff]  ;;  %v592_v55 = vand.u32 2147483647, %v1872_v16  ;;  %s636_s30 = smov [#allocation31] }
 0x117   : >>> { %v542_v27 = vsub.f32 %v541_v24, %v537_v23  ;;  %v593_v48 = vand.u32 2147483647, %v541_v24 }
 0x118   : >>> { %1663 = vrcp.f32 %v543_v17  ;;  %v555_v20 = vand.u32 2147483648, %v543_v17  ;;  %vm549_vm8 = vweird.f32 %v543_v17  ;;  %v553_v22 = vand.u32 2147483647, %v543_v17 }
 0x119   : >>> { %v594_v50 = vmin.f32 %v591_v47, %v593_v48 }
 0x11a   : >>> { %v556_v26 = vor.u32 1.1754944e-38, %v555_v20  ;;  %vm554_vm11 = vcmp.eq.f32.partialorder %v553_v22, 8.507059e+37 }
 0x11b   : >>> { %v595_v56 = vmul.f32 1.1920929e-08, %v594_v50 }
 0x11d   : >>> { %vm596_vm4 = vcmp.le.f32.partialorder %v592_v55, %v595_v56 }
 0x11e   : >>> { %v1664_v18 = vpop.eup %1663 }
 0x11f   : >>> { %v545_v19 = vmul.f32 %v1664_v18, %v543_v17  ;;  %vm550_vm9 = vweird.f32 %v1664_v18 }
 0x120   : >>> { %vm551_vm10 = vmor %vm549_vm8, %vm550_vm9  ;;  %vm632_vm8 = vcmp.eq.s32.totalorder %v630_v7, %v627_v6  ;;  %v642_v6 = vmov %v1821_v6  ;;  %v645_v7 = vmov %v1823_v7 }
 0x121   : >>> { %v546_v21 = vsub.f32 1.0, %v545_v19  ;;  %vm647_vm9 = vcmp.eq.s32.totalorder %v645_v7, %v642_v6  ;;  %v713_v6 = vmov %v1821_v6 }
 0x122   : >>> { %v754_v6 = vmov %v1821_v6 }
 0x123   : >>> { %v547_v25 = vmul.f32 %v1664_v18, %v546_v21  ;;  %v740_v6 = vmov %v1821_v6 }
 0x125   : >>> { %v548_v28 = vadd.f32 %v1664_v18, %v547_v25 }
 0x127   : >>> { %v552_v29 = vsel %vm551_vm10, %v1664_v18, %v548_v28  ;;  %v887_v28 = vld [vmem:[%s1894_s11] sm:$0x3]  ;;  %vm837_vm10 = vcmp.eq.s32.totalorder %v1823_v7, 0 }
 0x128   : >>> { %v557_v30 = vsel %vm554_vm11, %v556_v26, %v552_v29  ;;  %vm849_vm11 = vcmp.eq.s32.totalorder %v1823_v7, 1  ;;  %v716_v7 = vmov %v1823_v7 }
 0x129   : >>> { %v558_v31 = vmul.f32 %v557_v30, %v542_v27  ;;  %v757_v7 = vmov %v1823_v7 }
 0x12a   : >>> { %v743_v7 = vmov %v1823_v7 }
 0x12b   : >>> { %v560_v32 = vmul.f32 %v558_v31, %v558_v31  ;;  %vm559_vm14 = vcmp.ge.f32.partialorder %v558_v31, 0.0 }
 0x12d   : >>> { %v561_v33 = vadd.f32 1.0, %v560_v32 }
 0x12f   : >>> { %1665 = vrsqrt.f32 %v561_v33  ;;  %vm569_vm12 = vcmp.eq.f32.partialorder %v561_v33, inf  ;;  %v572_v40 = vand.u32 2147483648, %v561_v33  ;;  %vm571_vm13 = vcmp.eq.f32.partialorder %v561_v33, 0.0 }
 0x135   : >>> { %v1666_v34 = vpop.eup %1665 }
 0x136   : >>> { %v563_v35 = vmul.f32 %v1666_v34, %v561_v33 }
 0x138   : >>> { %v564_v36 = vmul.f32 %v1666_v34, %v563_v35 }
 0x13a   : >>> { %v565_v37 = vmul.f32 0.5, %v564_v36 }
 0x13c   : >>> { %v566_v38 = vsub.f32 1.5, %v565_v37 }
 0x13e   : >>> { %v567_v39 = vmul.f32 %v1666_v34, %v566_v38 }
 0x140   : >>> { %v568_v41 = vmul.f32 %v567_v39, %v561_v33 }
 0x142   : >>> { %v570_v42 = vsel %vm569_vm12, %v561_v33, %v568_v41  ;;  %v888_v33 = vld [vmem:[%s1897_s26] sm:$0x3]  ;;  %vm721_vm12 = vcmp.eq.s32.totalorder %v716_v7, %v713_v6  ;;  %v727_v6 = vmov %v1821_v6  ;;  %v730_v7 = vmov %v1823_v7 }
 0x143   : >>> { %v573_v43 = vsel %vm571_vm13, %v572_v40, %v570_v42  ;;  %vm762_vm13 = vcmp.eq.s32.totalorder %v757_v7, %v754_v6 }
 0x144   : >>> { %v574_v44 = vxor.u32 2147483648, %v573_v43 }
 0x146   : >>> { %v575_v45 = vsel %vm559_vm14, %v573_v43, %v574_v44  ;;  %vm747_vm14 = vcmp.eq.s32.totalorder %v743_v7, %v740_v6 }
 0x147   : >>> { %v576_v46 = vadd.f32 %v575_v45, %v558_v31 }
 0x149   : >>> { %1667 = vrcp.f32 %v576_v46  ;;  %v588_v52 = vand.u32 2147483648, %v576_v46  ;;  %vm582_vm15 = vweird.f32 %v576_v46  ;;  %v586_v54 = vand.u32 2147483647, %v576_v46 }
 0x14b   : >>> { %v589_v58 = vor.u32 1.1754944e-38, %v588_v52  ;;  %vm587_vm3 = vcmp.eq.f32.partialorder %v586_v54, 8.507059e+37 }
 0x14f   : >>> { %v1668_v49 = vpop.eup %1667 }
 0x150   : >>> { %v578_v51 = vmul.f32 %v1668_v49, %v576_v46  ;;  %vm583_vm0 = vweird.f32 %v1668_v49 }
 0x151   : >>> { %vm584_vm1 = vmor %vm582_vm15, %vm583_vm0  ;;  %vm734_vm15 = vcmp.eq.s32.totalorder %v730_v7, %v727_v6  ;;  %vm780_vm0 = vcmp.eq.s32.totalorder %v1821_v6, 1  ;;  %v377_v7 = vmov (%p470_p9), %v1823_v7 }
 0x152   : >>> { %v579_v53 = vsub.f32 1.0, %v578_v51 }
 0x154   : >>> { %v580_v57 = vmul.f32 %v1668_v49, %v579_v53 }
 0x156   : >>> { %v581_v59 = vadd.f32 %v1668_v49, %v580_v57 }
 0x158   : >>> { %v585_v60 = vsel %vm584_vm1, %v1668_v49, %v581_v59  ;;  %vm776_vm1 = vcmp.eq.s32.totalorder %v1821_v6, 0  ;;  %v374_v6 = vmov (%p470_p9), %v1821_v6 }
 0x159   : >>> { %v590_v61 = vsel %vm587_vm3, %v589_v58, %v585_v60  ;;  %vm389_vm3 = vcmp.eq.s32.totalorder (%p470_p9), %v377_v7, %v374_v6  ;;  %v393_v6 = vmov (%p470_p9), %v1821_v6  ;;  %v396_v7 = vmov (%p470_p9), %v1823_v7 }
 0x15a   : >>> { %v597_v62 = vsel %vm596_vm4, 0.0, %v590_v61  ;;  %v410_v6 = vmov (%p470_p9), %v1821_v6  ;;  %v413_v7 = vmov (%p470_p9), %v1823_v7 }
 0x15b   : >>> { %v598_v63 = vmul.f32 %v597_v62, %v597_v62  ;;  %v611_v0 = vmul.f32 %v597_v62, %v1872_v16  ;;  %v427_v6 = vmov (%p470_p9), %v1821_v6  ;;  %v430_v7 = vmov (%p470_p9), %v1823_v7 }
 0x15c   : >> { %vm442_vm4 = vcmp.eq.s32.totalorder (%p470_p9), %v430_v7, %v427_v6 }
 0x15d   : >>> { %v599_v1 = vadd.f32 1.0, %v598_v63  ;;  %v612_v2 = vsub.f32 %v537_v23, %v611_v0  ;;  %v614_v3 = vadd.f32 %v611_v0, %v541_v24  ;;  %v885_v23 = vld [vmem:[%s1887_s24] sm:$0x3] }
 0x15e   : >>> { %v886_v24 = vld [vmem:[%s1889_s23] sm:$0x3] }
 0x15f   : >>> { %1669 = vrsqrt.f32 %v599_v1  ;;  %616 = vst [vmem:[%s615_s22] sm:$0xff] %v612_v2  ;;  %vm606_vm5 = vweird.f32 %v599_v1  ;;  %s651_s22 = smov [#allocation32] }
 0x160   : >>> { %618 = vst [vmem:[%s617_s29] sm:$0xff] %v614_v3  ;;  %s653_s29 = smov [#allocation31] }
 0x165   : >>> { %v1670_v4 = vpop.eup %1669 }
 0x166   : >>> { %v601_v5 = vmul.f32 %v1670_v4, %v599_v1  ;;  %vm607_vm6 = vweird.f32 %v1670_v4 }
 0x167   : >>> { %vm608_vm7 = vmor %vm606_vm5, %vm607_vm6 }
 0x168   : >>> { %v602_v8 = vmul.f32 %v1670_v4, %v601_v5 }
 0x16a   : >>> { %v603_v9 = vmul.f32 0.5, %v602_v8 }
 0x16c   : >>> { %v604_v10 = vsub.f32 1.5, %v603_v9 }
 0x16e   : >>> { %v605_v11 = vmul.f32 %v1670_v4, %v604_v10 }
 0x170   : >>> { %v609_v12 = vsel %vm608_vm7, %v1670_v4, %v605_v11 }
 0x171   : >>> { %620 = vst [vmem:[%s619_s14] sm:$0xff] %v609_v12  ;;  %v610_v13 = vmul.f32 %v609_v12, %v597_v62  ;;  %s1881_s14 = smov [#allocation20] }
 0x172   : >>> { %v661_v26 = vld [vmem:[%s1881_s14] sm:$0x3] }
 0x173   : >>> { %622 = vst [vmem:[%s621_s15] sm:$0xff] %v610_v13  ;;  %s1883_s15 = smov [#allocation21] }
 0x174   : >>> { %v662_v20 = vld [vmem:[%s1883_s15] sm:$0x3] }
 0x178   : >>> { %v624_v14 = vld [vmem:[%s623_s16] ss:$0 sm:$0xff]  ;;  %s1885_s16 = smov [#allocation22] }
 0x179   : >>> { %v633_v15 = vsel %vm632_vm8, %v624_v14, 0.0  ;;  %v663_v21 = vld [vmem:[%s1885_s16] sm:$0x3] }
 0x17a   : >>> { %634 = vadd.xlane.f32.xlu0 %v633_v15  ;;  %v639_v16 = vld [vmem:[%s638_s21] ss:$0 sm:$0xff]  ;;  %s877_s21 = smov [#allocation31] }
 0x17b   : >>> { %v648_v17 = vsel %vm647_vm9, %v639_v16, 0.0 }
 0x182   : >>> { %649 = vadd.xlane.f32.xlu0 %v648_v17 }
 0x1ed   : >>> { %v635_v18 = vpop.xlane.xlu0 %634 }
 0x1ee   : >>> { %637 = vst [vmem:[%s636_s30] sm:$0xff] %v635_v18  ;;  %s1891_s30 = smov [#allocation23] }
 0x1ef   : >>> { %v664_v27 = vld [vmem:[%s1891_s30] sm:$0x3] }
 0x1f5   : >>> { %v650_v19 = vpop.xlane.xlu0 %649  ;;  %v654_v22 = vld [vmem:[%s653_s29] sm:$0xff]  ;;  %s681_s29 = smov [#allocation29] }
 0x1f6   : >>> { %652 = vst [vmem:[%s651_s22] sm:$0xff] %v650_v19  ;;  %s655_s22 = smov [#allocation32]  ;;  %v878_v25 = vld [vmem:[%s877_s21] sm:$0xff]  ;;  %v668_v29 = vmul.f32 %v662_v20, %v654_v22  ;;  %v672_v30 = vmul.f32 %v663_v21, %v654_v22  ;;  %v665_v50 = vmul.f32 %v661_v26, %v654_v22  ;;  %v675_v52 = vmul.f32 %v664_v27, %v654_v22  ;;  %s683_s21 = smov [#allocation30] }
 0x1f7   : >>> { %v889_v34 = vmul.f32 %v885_v23, %v878_v25  ;;  %v892_v35 = vmul.f32 %v886_v24, %v878_v25  ;;  %v896_v42 = vmul.f32 %v887_v28, %v878_v25  ;;  %v899_v46 = vmul.f32 %v888_v33, %v878_v25  ;;  %v682_v56 = vld [vmem:[%s681_s29] ss:$0 sm:$0xff]  ;;  %s750_s29 = smov [#allocation23] }
 0x1f8   : >>> { %v684_v57 = vld [vmem:[%s683_s21] ss:$0 sm:$0xff]  ;;  %s737_s21 = smov [#allocation22] }
 0x1fd   : >>> { %v656_v31 = vld [vmem:[%s655_s22] sm:$0xff]  ;;  %s1913_s22 = smov [#allocation22] }
 0x1fe   : >>> { %v880_v32 = vld [vmem:[%s879_s27] sm:$0xff]  ;;  %v669_v36 = vmul.f32 %v664_v27, %v656_v31  ;;  %v671_v37 = vmul.f32 %v661_v26, %v656_v31  ;;  %v666_v43 = vmul.f32 %v663_v21, %v656_v31  ;;  %v674_v47 = vmul.f32 %v662_v20, %v656_v31  ;;  %s1908_s27 = smov [#allocation12] }
 0x1ff   : >>> { %v890_v38 = vmul.f32 %v887_v28, %v880_v32  ;;  %v893_v39 = vmul.f32 %v888_v33, %v880_v32  ;;  %v895_v40 = vmul.f32 %v885_v23, %v880_v32  ;;  %v898_v41 = vmul.f32 %v886_v24, %v880_v32 }
 0x200   : >>> { %v670_v44 = vsub.f32 %v668_v29, %v669_v36  ;;  %v673_v45 = vadd.f32 %v672_v30, %v671_v37  ;;  %v667_v54 = vsub.f32 %v665_v50, %v666_v43  ;;  %v676_v55 = vadd.f32 %v675_v52, %v674_v47 }
 0x201   : >>> { %v891_v48 = vsub.f32 %v889_v34, %v890_v38  ;;  %v894_v49 = vsub.f32 %v892_v35, %v893_v39  ;;  %v897_v51 = vadd.f32 %v896_v42, %v895_v40  ;;  %v900_v53 = vadd.f32 %v899_v46, %v898_v41 }
 0x202   : >>> { %678 = vst [vmem:[%s1883_s15] sm:$0x3] %v670_v44  ;;  %s1915_s15 = smov [#allocation21] }
 0x203   : >>> { %679 = vst [vmem:[%s1885_s16] sm:$0x3] %v673_v45  ;;  %s906_s16 = smov [#allocation16] }
 0x204   : >>> { %901 = vst [vmem:[%s1887_s24] sm:$0x3] %v891_v48  ;;  %s1917_s24 = smov [#allocation14] }
 0x205   : >>> { %902 = vst [vmem:[%s1889_s23] sm:$0x3] %v894_v49  ;;  %s1922_s23 = smov [#allocation18] }
 0x206   : >>> { %903 = vst [vmem:[%s1894_s11] sm:$0x3] %v897_v51  ;;  %s688_s11 = smov [#allocation23] }
 0x207   : >>> { %904 = vst [vmem:[%s1897_s26] sm:$0x3] %v900_v53  ;;  %s1925_s26 = smov [#allocation20] }
 0x208   : >>> { %677 = vst [vmem:[%s1881_s14] sm:$0x3] %v667_v54  ;;  %s710_s14 = smov [#allocation27] }
 0x209   : >>> { %680 = vst [vmem:[%s1891_s30] sm:$0x3] %v676_v55  ;;  %v690_v59 = vld [vmem:[%s1915_s15] sm:$0x3]  ;;  %s751_s30 = smov [#allocation28] }
 0x20a   : >>> { %v691_v58 = vld [vmem:[%s1913_s22] sm:$0x3]  ;;  %v694_v10 = vmul.f32 %v690_v59, %v684_v57  ;;  %v697_v16 = vmul.f32 %v690_v59, %v682_v56 }
 0x20b   : >>> { %v907_v60 = vld [vmem:[%s1908_s27] ss:$0 sm:$0xff]  ;;  %v1591_v62 = vld [vmem:[%s1908_s27 + $0x1] ss:$0 sm:$0xff]  ;;  %v702_v13 = vmul.f32 %v691_v58, %v684_v57  ;;  %v699_v14 = vmul.f32 %v691_v58, %v682_v56 }
 0x20c   : >>> { %v1590_v61 = vld [vmem:[%s1908_s27 - $0x1] sm:$0x2]  ;;  %v1595_v2 = vld [vmem:[%s1917_s24 + $0x1] ss:$0 sm:$0xff] }
 0x20d   : >>> { %v914_v63 = vsel %vm837_vm10, %v907_v60, %v1590_v61  ;;  %v931_v0 = vld [vmem:[%s1917_s24] ss:$0 sm:$0xff]  ;;  %v1593_v4 = vld [vmem:[%s906_s16 + $0x1] sm:$0x1] }
 0x20e   : >>> { %v1594_v1 = vld [vmem:[%s1917_s24 - $0x1] sm:$0x2]  ;;  %917 = vst [vmem:[%s1908_s27] sm:$0x3] %v914_v63  ;;  %v926_v8 = vsel %vm849_vm11, %v1591_v62, %v1593_v4  ;;  %v1597_v9 = vld [vmem:[%s1922_s23 + $0x1] sm:$0x1] }
 0x20f   : >>> { %v918_v3 = vld [vmem:[%s906_s16] ss:$0 sm:$0xff]  ;;  %v938_v5 = vsel %vm837_vm10, %v931_v0, %v1594_v1  ;;  %v950_v12 = vsel %vm849_vm11, %v1595_v2, %v1597_v9 }
 0x210   : >>> { %1592 = vst [vmem:[%s1908_s27 + $0x1] sm:$0x1] %v918_v3  ;;  %v942_v11 = vld [vmem:[%s1922_s23] ss:$0 sm:$0xff]  ;;  %s709_s27 = smov [#allocation20] }
 0x211   : >>> { %928 = vst [vmem:[%s906_s16] sm:$0x3] %v926_v8  ;;  %v689_v15 = vld [vmem:[%s1925_s26] sm:$0x3]  ;;  %s1964_s16 = smov [#allocation23] }
 0x212   : >>> { %941 = vst [vmem:[%s1917_s24] sm:$0x3] %v938_v5  ;;  %v692_v17 = vld [vmem:[%s688_s11] sm:$0x3]  ;;  %v693_v18 = vmul.f32 %v689_v15, %v682_v56  ;;  %v696_v19 = vmul.f32 %v689_v15, %v684_v57 }
 0x213   : >>> { %1596 = vst [vmem:[%s1917_s24 + $0x1] sm:$0x1] %v942_v11  ;;  %v703_v20 = vmul.f32 %v692_v17, %v682_v56  ;;  %v700_v21 = vmul.f32 %v692_v17, %v684_v57  ;;  %v717_v26 = vld [vmem:[%s710_s14] ss:$0 sm:$0xff]  ;;  %s1966_s24 = smov [#allocation22]  ;;  %s1976_s14 = smov [#allocation21] }
 0x214   : >>> { %952 = vst [vmem:[%s1922_s23] sm:$0x3] %v950_v12  ;;  %v695_v22 = vsub.f32 %v693_v18, %v694_v10  ;;  %v698_v25 = vadd.f32 %v697_v16, %v696_v19  ;;  %v758_v27 = vld [vmem:[%s751_s30] ss:$0 sm:$0xff]  ;;  %s1712_s23 = smov 1   ;;  %s830_s30 = smov [#allocation22] }
 0x215   : >>> { %v704_v23 = vadd.f32 %v703_v20, %v702_v13  ;;  %v701_v24 = vsub.f32 %v699_v14, %v700_v21 }
 0x216   : >>> { %705 = vst [vmem:[%s1925_s26] sm:$0x3] %v695_v22  ;;  %s766_s26 = smov [#allocation21] }
 0x217   : >>> { %708 = vst [vmem:[%s688_s11] sm:$0x3] %v704_v23  ;;  %s1713_s11 = smov 127  }
 0x218   : >>> { %707 = vst [vmem:[%s1913_s22] sm:$0x3] %v701_v24  ;;  %s724_s22 = smov [#allocation21] }
 0x219   : >>> { %706 = vst [vmem:[%s1915_s15] sm:$0x3] %v698_v25  ;;  %s1962_s15 = smov [#allocation20] }
 0x21d   : >>> { %v718_v28 = vld [vmem:[%s709_s27] sm:$0x3] }
 0x21e   : >>> { %v759_v29 = vld [vmem:[%s750_s29] sm:$0x3]  ;;  %v722_v30 = vsel %vm721_vm12, %v717_v26, %v718_v28 }
 0x21f   : >>> { %v763_v31 = vsel %vm762_vm13, %v758_v27, %v759_v29  ;;  %v744_v32 = vld [vmem:[%s737_s21] sm:$0x3]  ;;  %723 = vst [vmem:[%s709_s27] sm:$0x3] %v722_v30  ;;  %s829_s27 = smov [#allocation20] }
 0x220   : >>> { %764 = vst [vmem:[%s750_s29] sm:$0x3] %v763_v31  ;;  %v748_v33 = vsel %vm747_vm14, 0.0, %v744_v32  ;;  %v731_v34 = vld [vmem:[%s724_s22] sm:$0x3]  ;;  %s854_s29 = smov [#allocation23] }
 0x221   : >>> { %749 = vst [vmem:[%s737_s21] sm:$0x3] %v748_v33  ;;  %v735_v35 = vsel %vm734_vm15, 0.0, %v731_v34  ;;  %s953_s21 = sadd.s32 (%p470_p9), 1, %s1705_s17  }
 0x222   : >>> { %736 = vst [vmem:[%s724_s22] sm:$0x3] %v735_v35  ;;  %s378_s22 = smov (%p470_p9), [#allocation20]  ;;  %p466_p10 = scmp.ge.s32.totalorder (%p470_p9), %s953_s21, 15 }
 0x223   : >> { %s2109_s17 = smov (%p470_p9), %s953_s21 }
 0x226   : >>> { %v771_v36 = vld [vmem:[%s1962_s15] sm:$0x3] }
 0x227   : >>> { %v799_v37 = vld [vmem:[%s1964_s16] sm:$0x3]  ;;  %772 = vrot.lane.b32.xlu1 %v771_v36, %s1712_s23 }
 0x228   : >>> { %800 = vrot.lane.b32.xlu0 %v799_v37, %s1712_s23  ;;  %v803_v38 = vld [vmem:[%s1966_s24] sm:$0x3] }
 0x229   : >>> { %804 = vrot.lane.b32.xlu2 %v803_v38, %s1712_s23  ;;  %v767_v39 = vld [vmem:[%s766_s26] sm:$0x3] }
 0x22a   : >>> { %v788_v40 = vld [vmem:[%s766_s26] sm:$0x3] }
 0x22b   : >>> { %v820_v41 = vld [vmem:[%s1964_s16] sm:$0x3] }
 0x22c   : >>> { %v770_v44 = vld [vmem:[%s1962_s15] sm:$0x3] }
 0x22d   : >>> { %v802_v55 = vld [vmem:[%s1966_s24] sm:$0x3] }
 0x22f   : >>> { %768 = vrot.lane.b32.xlu1 %v767_v39, %s1712_s23 }
 0x231   : >>> { %789 = vrot.lane.b32.xlu2 %v788_v40, %s1713_s11 }
 0x237   : >>> { %821 = vrot.lane.b32.xlu1 %v820_v41, %s1713_s11 }
 0x283   : >>> { %v805_v42 = vpop.permute.xlu2 %804 }
 0x284   : >>> { %v809_v51 = vsel %vm776_vm1, %v803_v38, %v805_v42 }
 0x28b   : >>> { %v790_v43 = vpop.permute.xlu2 %789 }
 0x28c   : >>> { %v794_v45 = vsel %vm780_vm0, %v770_v44, %v790_v43 }
 0x28d   : >>> { %796 = vst [vmem:[%s766_s26] sm:$0x3] %v794_v45 }
 0x294   : >>> { %v855_v46 = vld [vmem:[%s1976_s14] ss:$0 sm:$0xff]  ;;  %v1587_v48 = vld [vmem:[%s1976_s14 + $0x1] ss:$0 sm:$0xff] }
 0x295   : >>> { %v1586_v47 = vld [vmem:[%s1976_s14 - $0x1] sm:$0x2] }
 0x296   : >>> { %v862_v49 = vsel %vm837_vm10, %v855_v46, %v1586_v47 }
 0x297   : >>> { %865 = vst [vmem:[%s1976_s14] sm:$0x3] %v862_v49 }
 0x299   : >>> { %v773_v50 = vpop.permute.xlu1 %772 }
 0x29a   : >>> { %v801_v52 = vpop.permute.xlu0 %800  ;;  %v777_v56 = vsel %vm776_vm1, %v771_v36, %v773_v50 }
 0x29b   : >>> { %v813_v53 = vsel %vm780_vm0, %v801_v52, %v809_v51 }
 0x29c   : >>> { %v819_v54 = vsel %vm1451_vm2, %v813_v53, 0.0 }
 0x29d   : >>> { %827 = vst [vmem:[%s1966_s24] sm:$0x3] %v819_v54  ;;  %s431_s24 = smov (%p470_p9), [#allocation23] }
 0x2a1   : >>> { %v769_v57 = vpop.permute.xlu1 %768 }
 0x2a2   : >>> { %v781_v58 = vsel %vm780_vm0, %v769_v57, %v777_v56 }
 0x2a3   : >>> { %v787_v59 = vsel %vm1451_vm2, %v781_v58, 0.0 }
 0x2a4   : >>> { %795 = vst [vmem:[%s1962_s15] sm:$0x3] %v787_v59  ;;  %v1585_v61 = vld [vmem:[%s830_s30 + $0x1] sm:$0x1]  ;;  %v842_v4 = vld [vmem:[%s830_s30] ss:$0 sm:$0xff]  ;;  %s397_s15 = smov (%p470_p9), [#allocation21] }
 0x2a9   : >>> { %v822_v60 = vpop.permute.xlu1 %821 }
 0x2aa   : >>> { %v826_v62 = vsel %vm780_vm0, %v802_v55, %v822_v60 }
 0x2ab   : >>> { %v831_v63 = vld [vmem:[%s829_s27] ss:$0 sm:$0xff]  ;;  %v1583_v1 = vld [vmem:[%s829_s27 + $0x1] ss:$0 sm:$0xff]  ;;  %828 = vst [vmem:[%s1964_s16] sm:$0x3] %v826_v62  ;;  %s414_s16 = smov (%p470_p9), [#allocation22] }
 0x2ac   : >>> { %v1582_v0 = vld [vmem:[%s829_s27 - $0x1] sm:$0x2]  ;;  %v850_v3 = vsel %vm849_vm11, %v1583_v1, %v1585_v61 }
 0x2ad   : >>> { %v838_v2 = vsel %vm837_vm10, %v831_v63, %v1582_v0  ;;  %852 = vst [vmem:[%s830_s30] sm:$0x3] %v850_v3 }
 0x2ae   : >>> { %841 = vst [vmem:[%s829_s27] sm:$0x3] %v838_v2 }
 0x2af   : >>> { %1584 = vst [vmem:[%s829_s27 + $0x1] sm:$0x1] %v842_v4 }
 0x2b2   : >>> { %v866_v5 = vld [vmem:[%s854_s29] ss:$0 sm:$0xff]  ;;  %v1589_v8 = vld [vmem:[%s854_s29 + $0x1] sm:$0x1] }
 0x2b3   : >>> { %1588 = vst [vmem:[%s1976_s14 + $0x1] sm:$0x1] %v866_v5  ;;  %v874_v9 = vsel %vm849_vm11, %v1587_v48, %v1589_v8  ;;  %472 = sbr.rel (!%p470_p9) target bundleno = 254 (0xfe), region = 462 }
 0x2b4   : >>> { %876 = vst [vmem:[%s854_s29] sm:$0x3] %v874_v9  ;;  %v420_v14 = vld [vmem:[%s414_s16] sm:$0x3] (%p470_p9) }
 0x2b5   : >> { %v421_v18 = vsel (%p470_p9), %vm1451_vm2, %v420_v14, 0.0 }
 0x2b6   : >> { %v384_v10 = vld [vmem:[%s378_s22] sm:$0x3] (%p470_p9)  ;;  %v422_v20 = vmul.f32 (%p470_p9), %v421_v18, %v421_v18 }
 0x2b7   : >> { %v385_v12 = vsel (%p470_p9), %vm1451_vm2, %v384_v10, 0.0 }
 0x2b8   : >> { %v386_v16 = vmul.f32 %v385_v12, %v385_v12 }
 0x2ba   : >> { %v403_v11 = vld [vmem:[%s397_s15] sm:$0x3]  ;;  %v390_v23 = vsel %vm389_vm3, 0.0, %v386_v16 }
 0x2bb   : >> { %v404_v13 = vsel %vm1451_vm2, %v403_v11, 0.0  ;;  %v437_v15 = vld [vmem:[%s431_s24] sm:$0x3] }
 0x2bc   : >> { %v405_v17 = vmul.f32 %v404_v13, %v404_v13  ;;  %v438_v19 = vsel %vm1451_vm2, %v437_v15, 0.0 }
 0x2bd   : >> { %v439_v22 = vmul.f32 %v438_v19, %v438_v19 }
 0x2be   : >> { %v407_v21 = vadd.f32 %v405_v17, %v386_v16  ;;  %v406_v25 = vadd.f32 %v405_v17, %v390_v23 }
 0x2bf   : >> { %v443_v28 = vsel %vm442_vm4, 0.0, %v439_v22 }
 0x2c0   : >> { %v424_v24 = vadd.f32 %v422_v20, %v407_v21  ;;  %v423_v27 = vadd.f32 %v422_v20, %v406_v25 }
 0x2c2   : >> { %v445_v26 = vadd.f32 %v439_v22, %v424_v24  ;;  %v444_v29 = vadd.f32 %v443_v28, %v423_v27 }
 0x2c4   : >> { %446 = vadd.xlane.f32.xlu0 %v445_v26 }
 0x2cc   : >> { %454 = vadd.xlane.f32.xlu0 %v444_v29 }
 0x337   : >> { %v447_v30 = vpop.xlane.xlu0 %446 }
 0x338   : >> { %v448_v31 = vrot.slane %v447_v30, 4 }
 0x33a   : >> { %v449_v32 = vadd.f32 %v448_v31, %v447_v30 }
 0x33c   : >> { %v450_v33 = vrot.slane %v449_v32, 2 }
 0x33e   : >> { %v451_v37 = vadd.f32 %v450_v33, %v449_v32 }
 0x33f   : >> { %v455_v34 = vpop.xlane.xlu0 %454 }
 0x340   : >> { %v456_v35 = vrot.slane %v455_v34, 4  ;;  %v452_v40 = vrot.slane %v451_v37, 1 }
 0x342   : >> { %v457_v36 = vadd.f32 %v456_v35, %v455_v34  ;;  %v453_v43 = vadd.f32 %v452_v40, %v451_v37 }
 0x344   : >> { %v458_v38 = vrot.slane %v457_v36, 2 }
 0x346   : >> { %v459_v39 = vadd.f32 %v458_v38, %v457_v36 }
 0x348   : >> { %v460_v41 = vrot.slane %v459_v39, 1 }
 0x34a   : >> { %v461_v42 = vadd.f32 %v460_v41, %v459_v39 }
 0x34c   : >> { %1616 = vpush %v461_v42 }
 0x34d   : >> { %1618 = vpush %v453_v43 }
 0x37d   : >> { %s1617_s20 = spop %1616 }
 0x37e   : >> { %s1619_s23 = spop %1618 }
 0x37f   : >> { %s464_s26 = smul.f32 1e-10, %s1619_s23 }
 0x381   : >> { %p465_p11 = scmp.le.f32.partialorder %s1617_s20, %s464_s26 }
 0x383   : >> { %p467_p12 = por %p466_p10, %p465_p11 }
 0x385   : > { %955 = sbr.rel (!%p467_p12) target bundleno = 253 (0xfd), region = 473 }
 0x38a PF: > { %s960_s11 = smov [#allocation20]  ;;  %v964_v6 = vmov %v1821_v6  ;;  %v967_v7 = vmov %v1823_v7  ;;  %v1014_v44 = vld [vmem:[#allocation12] sm:$0x3]  ;;  %v1020_v45 = vld [vmem:[#allocation14] sm:$0x3]  ;;  %s980_s17 = smov [#allocation23] }
 0x38b   : > { %v984_v6 = vmov %v1821_v6  ;;  %v987_v7 = vmov %v1823_v7  ;;  %v968_v46 = vld [vmem:[%s960_s11] sm:$0x3]  ;;  %vm971_vm5 = vcmp.eq.s32.totalorder %v967_v7, %v964_v6  ;;  %1017 = vst [vmem:[%s297_s25] sm:$0x3] %v1014_v44  ;;  %s2110_s14 = scalar_lea.vmem [#allocation15], %s1817_s28  ;;  %s2111_s30 = scalar_lea.vmem [#allocation17], %s1817_s28 }
 0x38c   : > { %vm991_vm6 = vcmp.eq.s32.totalorder %v987_v7, %v984_v6  ;;  %v972_v47 = vsel %vm971_vm5, %v968_v46, 0.0  ;;  %1023 = vst [vmem:[%s2110_s14] sm:$0x3] %v1020_v45  ;;  %v1026_v48 = vld [vmem:[#allocation16] sm:$0x3]  ;;  %v1032_v51 = vld [vmem:[#allocation18] sm:$0x3] }
 0x38d   : > { %v973_v49 = vrot.slane %v972_v47, 4  ;;  %v988_v50 = vld [vmem:[%s980_s17] sm:$0x3]  ;;  %1029 = vst [vmem:[%s2111_s30] sm:$0x3] %v1026_v48  ;;  %s2112_s27 = scalar_lea.vmem [#allocation19], %s1817_s28  ;;  %s956_s29 = sand.u32 7, %s1780_s12  }
 0x38e   : > { %v992_v52 = vsel %vm991_vm6, %v988_v50, 0.0  ;;  %1035 = vst [vmem:[%s2112_s27] sm:$0x3] %v1032_v51  ;;  %s957_s21 = scalar_lea.vmem [#allocation8], %s956_s29  ;;  %s959_s22 = scalar_lea.vmem [#allocation10], %s956_s29 }
 0x38f   : > { %v974_v53 = vadd.f32 %v973_v49, %v972_v47  ;;  %v993_v54 = vrot.slane %v992_v52, 4  ;;  %s961_s21 = smov %s957_s21  ;;  %s981_s22 = smov %s959_s22 }
 0x390   : > { %s2113_s15 = scalar_lea.vmem [#allocation9], %s1819_s18  ;;  %s2114_s16 = scalar_lea.vmem [#allocation11], %s1819_s18 }
 0x391   : > { %v975_v55 = vrot.slane %v974_v53, 2  ;;  %v994_v6 = vadd.f32 %v993_v54, %v992_v52  ;;  %s1063_s24 = sshrl.u32 (%p1794_p3), %s1780_s12, 3  ;;  %s2115_s20 = scalar_lea.vmem (%p1794_p3), [#allocation9], %s1819_s18 }
 0x392   : > { %s1604_s23 = sshll.u32 (%p1794_p3), %s1063_s24, 1 }
 0x393   : > { %v976_v7 = vadd.f32 %v975_v55, %v974_v53  ;;  %v995_v56 = vrot.slane %v994_v6, 2  ;;  %s1065_s17 = scalar_lea.vmem (%p1794_p3), %s2101_s4, %s1604_s23 }
 0x395   : > { %v977_v57 = vrot.slane %v976_v7, 1  ;;  %v996_v58 = vadd.f32 %v995_v56, %v994_v6 }
 0x397   : > { %v978_v59 = vadd.f32 %v977_v57, %v976_v7  ;;  %v997_v60 = vrot.slane %v996_v58, 1 }
 0x399   : > { %979 = vst [vmem:[%s961_s21] sm:$0x1] %v978_v59  ;;  %v998_v61 = vadd.f32 %v997_v60, %v996_v58 }
 0x39b   : > { %999 = vst [vmem:[%s981_s22] sm:$0x1] %v998_v61 }
 0x39f   : > { %1062 = sbr.rel (!%p1794_p3) target bundleno = 938 (0x3aa), region = 158 }
 0x3a0   : > { %v1002_v62 = vld [vmem:[#allocation8] sm:$0x3] }
 0x3a1   : > { %1005 = vst [vmem:[%s2113_s15] sm:$0x3] %v1002_v62 }
 0x3a2   : > { %v1008_v63 = vld [vmem:[#allocation10] sm:$0x3] }
 0x3a3   : > { %1011 = vst [vmem:[%s2114_s16] sm:$0x3] %v1008_v63 }
 0x3a8   : > { %v1082_v0 = vld [vmem:[%s2115_s20] sm:$0x3] }
 0x3a9   : > { %1083 = vst [vmem:[%s1065_s17] sm:$0x3] %v1082_v0 }
 0x3aa PF: > { %1101 = sbr.rel (!%p1794_p3) target bundleno = 946 (0x3b2), region = 192  ;;  %s1102_s14 = sshrl.u32 (%p1794_p3), %s1780_s12, 3 }
 0x3ab   : > { %s2116_s30 = scalar_lea.vmem (%p1794_p3), [#allocation11], %s1819_s18  ;;  %s1605_s27 = sshll.u32 (%p1794_p3), %s1102_s14, 1 }
 0x3ac   : > { %s1104_s22 = scalar_lea.vmem (%p1794_p3), %s2102_s5, %s1605_s27 }
 0x3b0   : > { %v1121_v1 = vld [vmem:[%s2116_s30] sm:$0x3] }
 0x3b1   : > { %1122 = vst [vmem:[%s1104_s22] sm:$0x3] %v1121_v1 }
 0x3b2 PF: > { %s1606_s15 = sshll.u32 %s1780_s12, 1  ;;  %v1156_v2 = vld [vmem:[%s297_s25] sm:$0x3]  ;;  %s2117_s19 = scalar_lea.vmem [#allocation15], %s1817_s28 }
 0x3b3   : > { %v1191_v3 = vld [vmem:[%s2117_s19] sm:$0x3]  ;;  %s1139_s24 = scalar_lea.vmem %s2103_s6, %s1606_s15  ;;  %s1174_s26 = scalar_lea.vmem %s2104_s7, %s1606_s15 }
 0x3b4   : > { %s2118_s11 = scalar_lea.vmem [#allocation17], %s1817_s28  ;;  %1157 = vst [vmem:[%s1139_s24] sm:$0x3] %v1156_v2  ;;  %s1209_s30 = scalar_lea.vmem %s2105_s8, %s1606_s15 }
 0x3b5   : > { %v1226_v4 = vld [vmem:[%s2118_s11] sm:$0x3]  ;;  %s1244_s25 = scalar_lea.vmem %s2106_s9, %s1606_s15  ;;  %s2119_s29 = scalar_lea.vmem [#allocation19], %s1817_s28  ;;  %1192 = vst [vmem:[%s1174_s26] sm:$0x3] %v1191_v3 }
 0x3b6   : > { %v1261_v5 = vld [vmem:[%s2119_s29] sm:$0x3]  ;;  %1227 = vst [vmem:[%s1209_s30] sm:$0x3] %v1226_v4 }
 0x3b7   : > { %1262 = vst [vmem:[%s1244_s25] sm:$0x3] %v1261_v5 }
 0x3b8 PF: > { %s2120_s21 = sld [smem:[#allocation33_spill]]  ;;  %p13_p13 = scmp.ge.s32.totalorder %s1783_s13, 4  }
 0x3b9   : > { %s2121_s30 = smov %s1697_s10  ;;  %s2123_s11 = smov %s1783_s13 }
 0x3ba   :  { %15 = sbr.rel (!%p13_p13) target bundleno = 2 (0x2), region = 484 }
 0x3be   : > { %s2122_s10 = smov %s2120_s21 }

// kernel: reverse
= control target key start
LH: loop header
LB: loop body
LE: loop exit
PB: predicated region body
PF: predicated region fallthrough
CT: control target
= control target key end

     0   :  { %v2_v0 = vlaneseq  ;;  %s109_s0 = inlined_call_operand.vmem [shape: f32[2,3], index: 0, kind: input, shape index: {}]   ;;  %s110_s1 = inlined_call_operand.vmem [shape: f32[2,3], index: 1, kind: output, shape index: {}]  }
   0x2   :  { %v3_v1 = vsub.s32 2, %v2_v0 }
   0x4   :  { %4 = vset.pattern.permute.xlu0 %v3_v1 }
   0x5   :  { %v21_v2 = vld [vmem:[%s109_s0] sm:$0x3] }
   0x6   :  { %22 = vst [vmem:[#allocation1] sm:$0x3] %v21_v2 }
   0xd   :  { %v40_v3 = vld [vmem:[#allocation1] sm:$0x3] }
   0xe   :  { %41 = vst [vmem:[#allocation0] sm:$0x3] %v40_v3 }
  0x15   :  { %v42_v4 = vld [vmem:[#allocation0] sm:$0xff] }
  0x16   :  { %43 = vperm.xlu0 %4, %v42_v4  }
  0x88   :  { %v44_v5 = vpop.permute.xlu0 %43 }
  0x89   :  { %45 = vst [vmem:[#allocation2] sm:$0xff] %v44_v5 }
  0x90   :  { %v48_v6 = vld [vmem:[#allocation2] sm:$0x3] }
  0x91   :  { %51 = vst [vmem:[#allocation3] sm:$0x3] %v48_v6 }
  0x98   :  { %v68_v7 = vld [vmem:[#allocation3] sm:$0x3] }
  0x99   :  { %69 = vst [vmem:[%s110_s1] sm:$0x3] %v68_v7 }

// kernel: custom-call.16
= control target key start
LH: loop header
LB: loop body
LE: loop exit
PB: predicated region body
PF: predicated region fallthrough
CT: control target
= control target key end

     0   :  { %s734_s9 = smov 0   ;;  %s736_s10 = smov 0   ;;  %s909_s0 = inlined_call_operand.vmem [shape: f32[2,3,3], index: 0, kind: input, shape index: {}]   ;;  %s910_s1 = inlined_call_operand.vmem [shape: f32[2,3,3], index: 1, kind: output, shape index: {0}]   ;;  %s911_s2 = inlined_call_operand.vmem [shape: f32[2,3], index: 2, kind: output, shape index: {1}]  }
   0x1   :  { %s738_s11 = smov 0   ;;  %s740_s12 = smov 0  }
   0x2   :  { %s742_s13 = smov 0  }
   0x3 LB: > { %s28_s14 = sadd.s32 1, %s707_s12  ;;  %s589_s15 = sadd.s32 4294967295, %s711_s13   ;;  %s711_s13 = sphi %s742_s13, %s9_s13   ;;  %s707_s12 = sphi %s740_s12, %s920_s12   ;;  %s703_s11 = sphi %s738_s11, %s919_s11   ;;  %s699_s10 = sphi %s736_s10, %s918_s10   ;;  %s695_s9 = sphi %s734_s9, %s917_s9  }
   0x4   : > { %p30_p0 = scmp.ge.s32.totalorder %s28_s14, 2  ;;  %s33_s16 = ssub.s32 0, %s707_s12 }
   0x5   : > { %s591_s17 = smin.u32 %s707_s12, %s33_s16  ;;  %p57_p1 = scmp.ne.s32.totalorder %s699_s10, %s695_s9 }
   0x6   : > { %s922_s14 = smov (%p30_p0, %s28_s14), 0  ;;  %s35_s18 = sshrl.u32 %s591_s17, 3 }
   0x7   : > { %s39_s19 = ssub.s32 0, %s922_s14  ;;  %p58_p2 = scmp.eq.s32.totalorder %s589_s15, 1 }
   0x8   : > { %s592_s20 = smin.u32 %s39_s19, %s922_s14  ;;  %s47_s24 = sadd.s32 1, %s699_s10 }
   0x9   : > { %s41_s21 = sshrl.u32 %s592_s20, 3  ;;  %p769_p3 = por %p58_p2, %p57_p1 }
   0xa   : > { %s44_s23 = ssub.s32 %s35_s18, %s41_s21  ;;  %p594_p5 = scmp.ge.s32.totalorder %s711_s13, 2 }
   0xb   : > { %p45_p4 = scmp.eq.s32.totalorder %s44_s23, 0  ;;  %s82_s26 = sand.u32 (!%p594_p5), 1, %s711_s13  }
   0xc   : > { %80 = sbr.rel (%p594_p5) target bundleno = 19 (0x13), region = 16  ;;  %s596_s27 = sshll.u32 (!%p594_p5), %s707_s12, 2 }
   0xd   : > { %s775_s25 = scalar_select %p45_p4, %s699_s10, %s47_s24  }
   0xe   : > { %s595_s28 = sshll.u32 (!%p594_p5), %s82_s26, 2  ;;  %s88_s3 = scalar_lea.vmem (!%p594_p5), %s909_s0, %s596_s27 }
   0xf   : > { %s84_s4 = scalar_lea.vmem (!%p594_p5), [#allocation1], %s595_s28 }
  0x11   : > { %v105_v0 = vld [vmem:[%s88_s3] sm:$0xf] }
  0x12   : > { %106 = vst [vmem:[%s84_s4] sm:$0xf] %v105_v0 }
  0x13 PF: > { %p597_p6 = scmp.ge.s32.totalorder %s711_s13, 1  ;;  %p123_p7 = scmp.lt.s32.totalorder %s711_s13, 3 }
  0x15   : > { %p124_p8 = pnand %p597_p6, %p123_p7 }
  0x17   : > { %127 = sbr.rel (%p124_p8) target bundleno = 342 (0x156), region = 50 }
  0x1c   : > { %s134_s5 = sand.u32 1, %s589_s15   ;;  %s144_s6 = sand.u32 1, %s695_s9   ;;  %v717_v2 = vmov 0.0  }
  0x1d   : > { %s598_s7 = sshll.u32 %s134_s5, 2  ;;  %s786_s8 = sshll.u32 %s144_s6, 1 }
  0x1e   : > { %s136_s16 = scalar_lea.vmem [#allocation1], %s598_s7  ;;  %s157_s17 = sand.u32 7, %s703_s11  }
  0x1f   : > { %v149_v1 = vld [vmem:[%s136_s16] sm:$0xf]  ;;  %s789_s18 = scalar_lea.vmem [#allocation4], %s157_s17  ;;  %s792_s19 = scalar_lea.vmem [#allocation3], %s598_s7 }
  0x20   : > { %150 = vst [vmem:[#allocation0] sm:$0xf] %v149_v1  ;;  %s146_s15 = scalar_lea.vmem [#allocation5], %s786_s8  ;;  %s795_s20 = smov 0  }
  0x21   : > { %161 = vst [vmem:[%s789_s18] sm:$0x1] %v717_v2 }
  0x27   : > { %v159_v3 = vld [vmem:[#allocation0] sm:$0xff] }
  0x28   : > { %160 = vst [vmem:[#allocation2] sm:$0xff] %v159_v3 }
  0x29 LB: >> { %v169_v4 = vlaneseq  ;;  %v804_v6 = vstv %s715_s20  ;;  %s201_s9 = scalar_lea.vmem [#allocation2], %s715_s20  ;;  %s294_s21 = smov [#allocation2]  ;;  %s715_s20 = sphi %s795_s20, %s167_s20  }
  0x2a   : >> { %s329_s23 = scalar_lea.vmem [#allocation6], %s715_s20  ;;  %s345_s24 = smov [#allocation2] }
  0x2b   : >> { %v801_v5 = vshrl.u32 %v169_v4, 7  ;;  %s346_s26 = smov [#allocation6] }
  0x2d   : >> { %vm173_vm0 = vcmp.gt.s32.totalorder %v801_v5, %v804_v6  ;;  %vm174_vm1 = vcmp.lt.s32.totalorder %v801_v5, 3  ;;  %v297_v5 = vmov %v801_v5 }
  0x2e   : >> { %vm175_vm2 = vmand %vm173_vm0, %vm174_vm1  ;;  %vm301_vm13 = vcmp.gt.s32.totalorder %v297_v5, %v804_v6  ;;  %vm302_vm14 = vcmp.lt.s32.totalorder %v297_v5, 3  ;;  %v349_v5 = vmov %v801_v5 }
  0x2f   : >> { %v168_v7 = vld [vmem:[#allocation2] sm:$0xff]  ;;  %v814_v20 = vld [vmem:[%s201_s9] ss:$0 sm:$0xff] }
  0x30   : >> { %v176_v8 = vsel %vm175_vm2, %v168_v7, 0.0  ;;  %v203_v23 = vand.u32 2147483647, %v814_v20  ;;  %vm272_vm12 = vcmp.lt.f32.partialorder %v814_v20, 0.0 }
  0x31   : >> { %v177_v9 = vmul.f32 %v176_v8, %v176_v8 }
  0x32   : >> { %v204_v27 = vmax.f32 %v203_v23, 0.0 }
  0x33   : >> { %v178_v10 = vrot.slane %v177_v9, 4 }
  0x35   : >> { %v179_v11 = vadd.f32 %v178_v10, %v177_v9 }
  0x37   : >> { %v180_v12 = vrot.slane %v179_v11, 2 }
  0x39   : >> { %v181_v13 = vadd.f32 %v180_v12, %v179_v11 }
  0x3b   : >> { %v182_v14 = vrot.slane %v181_v13, 1 }
  0x3d   : >> { %v809_v15 = vadd.f32 %v182_v14, %v181_v13 }
  0x3f   : >> { %659 = vrsqrt.f32 %v809_v15  ;;  %vm191_vm3 = vcmp.eq.f32.partialorder %v809_v15, inf  ;;  %v194_v24 = vand.u32 2147483648, %v809_v15  ;;  %vm193_vm4 = vcmp.eq.f32.partialorder %v809_v15, 0.0 }
  0x45   : >> { %v660_v16 = vpop.eup %659 }
  0x46   : >> { %v185_v17 = vmul.f32 %v660_v16, %v809_v15 }
  0x48   : >> { %v186_v18 = vmul.f32 %v660_v16, %v185_v17 }
  0x4a   : >> { %v187_v19 = vmul.f32 0.5, %v186_v18  ;;  %v298_v18 = vld [vmem:[%s294_s21] sm:$0xff] }
  0x4c   : >> { %v188_v21 = vsub.f32 1.5, %v187_v19 }
  0x4e   : >> { %v189_v22 = vmul.f32 %v660_v16, %v188_v21 }
  0x50   : >> { %v190_v25 = vmul.f32 %v189_v22, %v809_v15  ;;  %v323_v22 = vand.u32 127, %v169_v4 }
  0x52   : >> { %v192_v26 = vsel %vm191_vm3, %v809_v15, %v190_v25 }
  0x53   : >> { %v195_v28 = vsel %vm193_vm4, %v194_v24, %v192_v26 }
  0x54   : >> { %v205_v29 = vand.u32 2147483647, %v195_v28 }
  0x56   : >> { %v206_v30 = vmax.f32 %v204_v27, %v205_v29 }
  0x58   : >> { %661 = vrcp.f32 %v206_v30  ;;  %v218_v33 = vand.u32 2147483648, %v206_v30  ;;  %vm212_vm5 = vweird.f32 %v206_v30  ;;  %v216_v35 = vand.u32 2147483647, %v206_v30 }
  0x59   : >> { %vm257_vm11 = vcmp.eq.f32.partialorder %v206_v30, 0.0 }
  0x5a   : >> { %v219_v37 = vor.u32 1.1754944e-38, %v218_v33  ;;  %vm217_vm8 = vcmp.eq.f32.partialorder %v216_v35, 8.507059e+37 }
  0x5e   : >> { %v662_v31 = vpop.eup %661 }
  0x5f   : >> { %v208_v32 = vmul.f32 %v662_v31, %v206_v30  ;;  %vm213_vm6 = vweird.f32 %v662_v31 }
  0x60   : >> { %vm214_vm7 = vmor %vm212_vm5, %vm213_vm6 }
  0x61   : >> { %v209_v34 = vsub.f32 1.0, %v208_v32  ;;  %vm303_vm5 = vmand %vm301_vm13, %vm302_vm14 }
  0x62   : >> { %v304_v26 = vsel %vm303_vm5, %v298_v18, 0.0 }
  0x63   : >> { %v210_v36 = vmul.f32 %v662_v31, %v209_v34 }
  0x65   : >> { %v211_v38 = vadd.f32 %v662_v31, %v210_v36 }
  0x67   : >> { %v215_v39 = vsel %vm214_vm7, %v662_v31, %v211_v38  ;;  %v342_v38 = vld [vmem:[%s789_s18] ss:$0 sm:$0xff] }
  0x68   : >> { %v220_v40 = vsel %vm217_vm8, %v219_v37, %v215_v39  ;;  %v718_v37 = vmov 1.0   ;;  %v352_v39 = vld [vmem:[%s345_s24] sm:$0xff]  ;;  %s362_s24 = smov %s345_s24 }
  0x69   : >> { %v221_v41 = vmul.f32 %v220_v40, %v203_v23  ;;  %v237_v42 = vmul.f32 0.0, %v220_v40  ;;  %v254_v43 = vmul.f32 %v220_v40, %v205_v29  ;;  %s387_s27 = scalar_lea.vmem %s362_s24, %s715_s20  ;;  %s167_s20 = sadd.s32 1, %s715_s20  }
  0x6a   : >> { %p164_p9 = scmp.ge.s32.totalorder %s167_s20, 3  }
  0x6b   : >> { %v222_v44 = vmul.f32 %v221_v41, %v221_v41  ;;  %v238_v45 = vmul.f32 %v237_v42, %v237_v42  ;;  %v255_v46 = vmul.f32 %v254_v43, %v254_v43  ;;  %s604_s28 = sshll.u32 (%p164_p9), %s703_s11, 2 }
  0x6c   : > { %s418_s3 = scalar_lea.vmem (%p164_p9), %s910_s1, %s604_s28 }
  0x6d   : >> { %v239_v47 = vadd.f32 %v238_v45, %v222_v44 }
  0x6f   : >> { %v256_v48 = vadd.f32 %v255_v46, %v239_v47 }
  0x71   : >> { %663 = vrsqrt.f32 %v256_v48  ;;  %vm265_vm9 = vcmp.eq.f32.partialorder %v256_v48, inf  ;;  %v268_v55 = vand.u32 2147483648, %v256_v48  ;;  %vm267_vm10 = vcmp.eq.f32.partialorder %v256_v48, 0.0 }
  0x77   : >> { %v664_v49 = vpop.eup %663 }
  0x78   : >> { %v259_v50 = vmul.f32 %v664_v49, %v256_v48 }
  0x7a   : >> { %v260_v51 = vmul.f32 %v664_v49, %v259_v50 }
  0x7c   : >> { %v261_v52 = vmul.f32 0.5, %v260_v51 }
  0x7e   : >> { %v262_v53 = vsub.f32 1.5, %v261_v52  ;;  %v373_v52 = vld [vmem:[%s362_s24] sm:$0xff] }
  0x80   : >> { %v263_v54 = vmul.f32 %v664_v49, %v262_v53 }
  0x82   : >> { %v264_v56 = vmul.f32 %v263_v54, %v256_v48 }
  0x84   : >> { %v266_v57 = vsel %vm265_vm9, %v256_v48, %v264_v56  ;;  %vm846_vm9 = vcmp.eq.s32.totalorder %v323_v22, %v804_v6 }
  0x85   : >> { %v269_v58 = vsel %vm267_vm10, %v268_v55, %v266_v57  ;;  %vm354_vm10 = vcmp.lt.s32.totalorder %v349_v5, 3  ;;  %v366_v5 = vmov %v801_v5 }
  0x86   : >> { %v270_v59 = vmul.f32 %v269_v58, %v206_v30 }
  0x88   : >> { %v271_v60 = vsel %vm257_vm11, 0.0, %v270_v59  ;;  %vm375_vm11 = vcmp.gt.s32.totalorder %v323_v22, %v804_v6 }
  0x89   : >> { %v273_v61 = vxor.u32 2147483648, %v271_v60 }
  0x8b   : >> { %v274_v62 = vsel %vm272_vm12, %v271_v60, %v273_v61 }
  0x8c   : >> { %v828_v63 = vsel %vm193_vm4, %v814_v20, %v274_v62  ;;  %665 = vrcp.f32 %v274_v62  ;;  %vm281_vm15 = vweird.f32 %v274_v62  ;;  %v285_v11 = vand.u32 2147483647, %v274_v62 }
  0x8d   : >> { %v293_v0 = vsub.f32 %v814_v20, %v828_v63  ;;  %v287_v12 = vand.u32 2147483648, %v274_v62  ;;  %v275_v28 = vsub.f32 %v274_v62, %v814_v20 }
  0x8e   : >> { %vm286_vm8 = vcmp.eq.f32.partialorder %v285_v11, 8.507059e+37 }
  0x8f   : >> { %667 = vrcp.f32 %v293_v0  ;;  %v316_v9 = vand.u32 2147483648, %v293_v0  ;;  %vm310_vm1 = vweird.f32 %v293_v0  ;;  %v314_v14 = vand.u32 2147483647, %v293_v0 }
  0x90   : >> { %v288_v23 = vor.u32 1.1754944e-38, %v287_v12 }
  0x91   : >> { %v317_v21 = vor.u32 1.1754944e-38, %v316_v9  ;;  %vm315_vm7 = vcmp.eq.f32.partialorder %v314_v14, 8.507059e+37 }
  0x92   : >> { %v666_v1 = vpop.eup %665 }
  0x93   : >> { %v277_v2 = vmul.f32 %v666_v1, %v274_v62  ;;  %vm282_vm0 = vweird.f32 %v666_v1 }
  0x94   : >> { %vm834_vm3 = vmor %vm281_vm15, %vm282_vm0 }
  0x95   : >> { %v668_v3 = vpop.eup %667  ;;  %v278_v7 = vsub.f32 1.0, %v277_v2 }
  0x96   : >> { %v306_v8 = vmul.f32 %v668_v3, %v293_v0  ;;  %vm311_vm2 = vweird.f32 %v668_v3 }
  0x97   : >> { %v279_v10 = vmul.f32 %v666_v1, %v278_v7  ;;  %vm312_vm6 = vmor %vm310_vm1, %vm311_vm2 }
  0x98   : >> { %v307_v13 = vsub.f32 1.0, %v306_v8 }
  0x99   : >> { %v280_v16 = vadd.f32 %v666_v1, %v279_v10 }
  0x9a   : >> { %v308_v19 = vmul.f32 %v668_v3, %v307_v13 }
  0x9b   : >> { %v284_v25 = vsel %vm834_vm3, %v666_v1, %v280_v16 }
  0x9c   : >> { %v309_v24 = vadd.f32 %v668_v3, %v308_v19  ;;  %v289_v30 = vsel %vm286_vm8, %v288_v23, %v284_v25 }
  0x9d   : >> { %v290_v33 = vmul.f32 %v289_v30, %v275_v28 }
  0x9e   : >> { %v313_v27 = vsel %vm312_vm6, %v668_v3, %v309_v24 }
  0x9f   : >> { %v318_v29 = vsel %vm315_vm7, %v317_v21, %v313_v27  ;;  %v292_v20 = vsel %vm193_vm4, 0.0, %v290_v33 }
  0xa0   : >> { %v319_v31 = vmul.f32 %v318_v29, %v304_v26  ;;  %v335_v35 = vsel %vm846_vm9, %v292_v20, 0.0 }
  0xa2   : >> { %v320_v4 = vsel %vm193_vm4, 0.0, %v319_v31  ;;  %vm383_vm4 = vcmp.ge.s32.totalorder %v366_v5, %v804_v6 }
  0xa3   : >> { %v325_v34 = vsel %vm846_vm9, %v320_v4, 0.0  ;;  %vm384_vm12 = vmand %vm846_vm9, %vm383_vm4 }
  0xa4   : >> { %326 = vadd.xlane.f32.xlu0 %v325_v34 }
  0xac   : >> { %336 = vadd.xlane.f32.xlu0 %v335_v35 }
 0x117   : >> { %v327_v36 = vpop.xlane.xlu0 %326 }
 0x118   : >> { %328 = vst [vmem:[#allocation6] sm:$0xff] %v327_v36 }
 0x119   : >> { %330 = vst [vmem:[%s329_s23] sm:$0x1] %v718_v37 }
 0x11f   : >> { %v337_v40 = vpop.xlane.xlu0 %336 }
 0x120   : >> { %v351_v41 = vld [vmem:[%s346_s26] sm:$0xff]  ;;  %v343_v15 = vsel %vm846_vm9, %v337_v40, %v342_v38  ;;  %s363_s26 = smov %s346_s26 }
 0x121   : >> { %v353_v42 = vmul.f32 %v352_v39, %v351_v41  ;;  %344 = vst [vmem:[%s789_s18] sm:$0x1] %v343_v15  ;;  %v371_v51 = vld [vmem:[%s363_s26] sm:$0xff] }
 0x123   : >> { %v355_v43 = vsel %vm354_vm10, %v353_v42, 0.0 }
 0x124   : >> { %v356_v44 = vrot.slane %v355_v43, 4 }
 0x126   : >> { %v357_v45 = vadd.f32 %v356_v44, %v355_v43 }
 0x128   : >> { %v358_v46 = vrot.slane %v357_v45, 2  ;;  %v403_v6 = vld [vmem:[#allocation4] sm:$0x3] (%p164_p9) }
 0x129   : > { %406 = vst [vmem:[%s146_s15] sm:$0x3] (%p164_p9), %v403_v6 }
 0x12a   : >> { %v359_v47 = vadd.f32 %v358_v46, %v357_v45 }
 0x12c   : >> { %v360_v48 = vrot.slane %v359_v47, 1 }
 0x12e   : >> { %v361_v49 = vadd.f32 %v360_v48, %v359_v47 }
 0x130   : >> { %v367_v50 = vmul.f32 %v361_v49, %v337_v40 }
 0x132   : >> { %v372_v53 = vmul.f32 %v371_v51, %v367_v50 }
 0x134   : >> { %v376_v54 = vsub.f32 %v373_v52, %v372_v53 }
 0x136   : >> { %v377_v55 = vsel %vm375_vm11, %v376_v54, %v373_v52 }
 0x137   : >> { %v385_v56 = vsel %vm384_vm12, %v371_v51, %v377_v55 }
 0x138   : >> { %386 = vst [vmem:[%s362_s24] sm:$0xff] %v385_v56 }
 0x13d   : > { %166 = sbr.rel (!%p164_p9) target bundleno = 41 (0x29), region = 167 }
 0x13f   : >> { %v388_v57 = vld [vmem:[%s387_s27] ss:$0 sm:$0xff] }
 0x140   : >> { %v393_v58 = vsel %vm846_vm9, %v828_v63, %v388_v57 }
 0x141   : >> { %394 = vst [vmem:[%s387_s27] sm:$0x1] %v393_v58 }
 0x142   : > { %p455_p10 = scmp.lt.s32.totalorder (%p769_p3), %s703_s11, 0  ;;  %s456_s4 = ssub.s32 (%p769_p3), 0, %s703_s11  ;;  %v479_v60 = vld [vmem:[%s146_s15] sm:$0x3] (%p769_p3) }
 0x143   : > { %s605_s5 = smin.u32 (%p769_p3), %s703_s11, %s456_s4 }
 0x144   : > { %s458_s6 = sshrl.u32 (%p769_p3), %s605_s5, 3 }
 0x145   : > { %s459_s7 = ssub.s32 (%p769_p3), 0, %s458_s6 }
 0x148   : > { %v397_v5 = vld [vmem:[#allocation2] sm:$0xf] }
 0x149   : > { %400 = vst [vmem:[%s792_s19] sm:$0xf] %v397_v5 }
 0x14d   : > { %454 = sbr.rel (!%p769_p3) target bundleno = 342 (0x156), region = 91 }
 0x150   : > { %v435_v59 = vld [vmem:[%s792_s19] sm:$0xf] }
 0x151   : > { %436 = vst [vmem:[%s418_s3] sm:$0xf] %v435_v59 }
 0x152   : > { %s924_s7 = smov (!%p455_p10, %s459_s7), %s458_s6 }
 0x153   : > { %s606_s16 = sshll.u32 %s924_s7, 1 }
 0x154   : > { %s462_s19 = scalar_lea.vmem %s911_s2, %s606_s16 }
 0x155   : > { %480 = vst [vmem:[%s462_s19] sm:$0x3] %v479_v60 }
 0x156 PF: > { %s9_s13 = sadd.s32 1, %s711_s13   ;;  %s917_s9 = smov %s699_s10 }
 0x157   : > { %p6_p11 = scmp.ge.s32.totalorder %s9_s13, 4   ;;  %s918_s10 = smov %s775_s25 }
 0x158   : > { %s919_s11 = smov %s707_s12  ;;  %s920_s12 = smov %s922_s14 }
 0x159   :  { %8 = sbr.rel (!%p6_p11) target bundleno = 3 (0x3), region = 178 }

</bundles_post_ra>
